<compile_context>
chip_gen: v7x
topology: tpu7x:2x2x1
jax: 0.10.0
libtpu: 0.0.40
codegen_flags: <defaults>
</compile_context>

<pallas_src>
import functools

import jax
import jax.numpy as jnp
from jax import lax
from jax.experimental import pallas as pl
from jax.experimental.pallas import tpu as pltpu

# ---- model hyper-params (small, consistent with the PyTorch module) ----
VOB_SIZE = 50
VOCAB_PAD = 128       # vocab padded to a full 128-lane vreg for the output head
EMBED_DIM = 32
HIDDEN_DIM = 32
PAD_IDX = 0
EPS = 1e-12
BIG_NEG = -1e30
B = 2                 # real batch
BP = 8                # sublane-padded batch used inside the kernel
S_ENC = 8             # encoder seq len
T_DEC = 6             # decoder seq len (== batch_max_decoder_len by construction)
N_OOV = 3             # number of OOV slots (oovs_zero width)


# ----------------------------- fused forward kernel --------------------------
def _pgn_fused_kernel(S, T, Bp, B_real, H, eps,
                      xproj_enc_ref, whh_bd_ref, w_att_bd_ref,
                      red_wh_ref, red_wc_ref,
                      enc_mask_ref, ctx0_ref,
                      xproj_dec_ref, wdec_ref, att_ws_ref, v_bd_ref,
                      w1_ref, w2_ref,
                      tgt_oh_ref, aux_ref, smalls_ref,
                      loss_ref,
                      eo2_ref, ef2_ref, dstate_ref, lacc_ref):
    f32 = jnp.float32
    H2 = 2 * H
    H4 = 4 * H

    def lstm_gates(pre, c):
        # PyTorch gate order: i, f, g, o
        i = jax.nn.sigmoid(pre[:, 0 * H:1 * H])
        f = jax.nn.sigmoid(pre[:, 1 * H:2 * H])
        g = jnp.tanh(pre[:, 2 * H:3 * H])
        o = jax.nn.sigmoid(pre[:, 3 * H:4 * H])
        c_new = f * c + i * g
        h_new = o * jnp.tanh(c_new)
        return h_new, c_new

    # ---------------- fused bidirectional encoder (one matmul / step) --------
    h_f = jnp.zeros((Bp, H), f32)
    c_f = jnp.zeros((Bp, H), f32)
    h_b = jnp.zeros((Bp, H), f32)
    c_b = jnp.zeros((Bp, H), f32)
    for s in range(S):
        h_cat = jnp.concatenate([h_f, h_b], axis=1)                       # (Bp, 2H)
        pre = xproj_enc_ref[s] + jnp.dot(h_cat, whh_bd_ref[...],
                                         preferred_element_type=f32)      # (Bp, 8H)
        h_f, c_f = lstm_gates(pre[:, :H4], c_f)                           # fwd @ time s
        h_b, c_b = lstm_gates(pre[:, H4:], c_b)                           # bwd @ time S-1-s
        # encoder_output in lane-flattened layout: eo2[b, s*2H + h]
        eo2_ref[:, s * H2: s * H2 + H] = h_f
        eo2_ref[:, (S - 1 - s) * H2 + H: (S - 1 - s) * H2 + H2] = h_b

    # loop-invariant attention features: ONE matmul against blockdiag(att_wh)
    ef2_ref[...] = jnp.dot(eo2_ref[...], w_att_bd_ref[...], preferred_element_type=f32)

    # ---------------- Reduce: exact torch h.reshape(-1, 2H) semantics --------
    def _reduce(hf, hb, w_ref, b_row):
        blocks = ([hf[bb:bb + 1, :] for bb in range(B_real)]
                  + [hb[bb:bb + 1, :] for bb in range(B_real)])
        ridx = lax.broadcasted_iota(jnp.int32, (Bp, H2), 0)
        m = jnp.zeros((Bp, H2), f32)
        for r in range(B_real):
            row = jnp.concatenate([blocks[2 * r], blocks[2 * r + 1]], axis=1)   # (1, 2H)
            m = jnp.where(ridx == r, jnp.broadcast_to(row, (Bp, H2)), m)
        # TODO(synk): dropout inside Reduce treated as identity (eval mode).
        return jnp.maximum(
            jnp.dot(m, w_ref[...], preferred_element_type=f32) + b_row, 0.0)

    h0 = _reduce(h_f, h_b, red_wh_ref, smalls_ref[6:7, 0:H])              # (Bp, H)
    c0 = _reduce(c_f, c_b, red_wc_ref, smalls_ref[7:8, 0:H])              # (Bp, H)

    # decoder state packed into one vreg: [h | c | ctx]
    dstate_ref[...] = jnp.concatenate([h0, c0, ctx0_ref[...]], axis=1)
    lacc_ref[...] = jnp.zeros((Bp, 1), f32)

    # ---------------- decoder loop (real loop, VMEM-resident state) ----------
    @pl.loop(0, T)
    def _dec_step(t):
        h = dstate_ref[:, 0:H]
        c = dstate_ref[:, H:H2]
        ctx = dstate_ref[:, H2:H4]                                         # previous context

        # fused decoder LSTM cell (get_lstm_input ctx-part + w_ih folded into wdec)
        pre = (jnp.dot(jnp.concatenate([ctx, h], axis=1), wdec_ref[...],
                       preferred_element_type=f32) + xproj_dec_ref[t])     # (Bp, 4H)
        h_new, c_new = lstm_gates(pre, c)
        status = jnp.concatenate([h_new, c_new], axis=1)                   # (Bp, 2H)

        # attention: batched tanh over all S positions + one MXU energy matmul
        dec_feat = jnp.dot(status, att_ws_ref[...], preferred_element_type=f32)
        dec_tile = jnp.concatenate([dec_feat] * S, axis=1)                 # (Bp, S*2H)
        t2 = jnp.tanh(ef2_ref[...] + dec_tile)
        e = jnp.dot(t2, v_bd_ref[...], preferred_element_type=f32)         # (Bp, S)
        e = jnp.where(enc_mask_ref[...] == 0.0, BIG_NEG, e)
        a = jax.nn.softmax(e, axis=-1)                                     # (Bp, S)

        # context vector: einsum('bs,bsh->bh', a, encoder_output) via S FMAs
        ctx_new = jnp.zeros((Bp, H2), f32)
        for s in range(S):
            ctx_new = ctx_new + a[:, s:s + 1] * eo2_ref[:, s * H2:(s + 1) * H2]

        aux = aux_ref[t]                                                   # (Bp, 2+S)
        genx_pre = aux[:, 0:1]
        lw = aux[:, 1:2]
        ptr = aux[:, 2:2 + S]

        # generation probability (gen_wx folded: old-ctx term + precomputed embed term)
        gen_logit = (jnp.sum(ctx_new * smalls_ref[0:1, 0:H2], axis=-1, keepdims=True)
                     + jnp.sum(status * smalls_ref[1:2, 0:H2], axis=-1, keepdims=True)
                     + jnp.sum(ctx * smalls_ref[2:3, 0:H2], axis=-1, keepdims=True)
                     + genx_pre + smalls_ref[3:4, 0:1])
        gen_p = jax.nn.sigmoid(gen_logit)                                  # (Bp, 1)

        # output head over lane-padded vocab; target prob via logsumexp (no full softmax)
        out_feat = jnp.concatenate([h_new, ctx_new], axis=1)               # (Bp, 3H)
        hid = jnp.maximum(jnp.dot(out_feat, w1_ref[...],
                                  preferred_element_type=f32) + smalls_ref[4:5, 0:H], 0.0)
        logits = jnp.dot(hid, w2_ref[...], preferred_element_type=f32) + smalls_ref[5:6, :]
        mrow = jnp.max(logits, axis=-1, keepdims=True)
        z = jnp.sum(jnp.exp(logits - mrow), axis=-1, keepdims=True)
        logit_tgt = jnp.sum(logits * tgt_oh_ref[t], axis=-1, keepdims=True)
        vocab_part = gen_p * jnp.exp(logit_tgt - mrow) / z                 # 0 for OOV targets
        ptr_part = (1.0 - gen_p) * jnp.sum(a * ptr, axis=-1, keepdims=True)
        prob = vocab_part + ptr_part                                       # (Bp, 1)

        # loss_w already folds decoder_mask / decoder_lens (0 for padded rows)
        lacc_ref[...] = lacc_ref[...] + (-jnp.log(prob + eps)) * lw
        dstate_ref[...] = jnp.concatenate([h_new, c_new, ctx_new], axis=1)

    total = jnp.sum(lacc_ref[...], axis=0, keepdims=True) * (1.0 / B_real)  # (1, 1)
    loss_ref[...] = jnp.broadcast_to(total, loss_ref.shape)


# ------------------------- parameter initialization ---------------------------
def init_params(key):
    H, E, V = HIDDEN_DIM, EMBED_DIM, VOB_SIZE
    ks = iter(jax.random.split(key, 40))

    def w(shape, scale=0.08):
        return jax.random.normal(next(ks), shape, jnp.float32) * scale

    p = {}
    # encoder (bidirectional LSTM, 1 layer); bias = b_ih + b_hh folded
    p['enc_embed'] = w((V, E)).at[PAD_IDX].set(0.0)
    p['enc_wih_f'] = w((E, 4 * H)); p['enc_whh_f'] = w((H, 4 * H)); p['enc_b_f'] = w((1, 4 * H))
    p['enc_wih_b'] = w((E, 4 * H)); p['enc_whh_b'] = w((H, 4 * H)); p['enc_b_b'] = w((1, 4 * H))
    # reduce
    p['red_wh'] = w((2 * H, H)); p['red_bh'] = w((1, H))
    p['red_wc'] = w((2 * H, H)); p['red_bc'] = w((1, H))
    # decoder
    p['dec_embed'] = w((V, E)).at[PAD_IDX].set(0.0)
    p['dec_wli'] = w((2 * H + E, E)); p['dec_bli'] = w((1, E))
    p['dec_wih'] = w((E, 4 * H)); p['dec_whh'] = w((H, 4 * H)); p['dec_blstm'] = w((1, 4 * H))
    p['att_wh'] = w((2 * H, 2 * H)); p['att_ws'] = w((2 * H, 2 * H)); p['att_v'] = w((2 * H, 1))
    p['gen_wh'] = w((2 * H, 1)); p['gen_ws'] = w((2 * H, 1)); p['gen_wx'] = w((E, 1))
    p['gen_b'] = w((1, 1))
    p['out_w1'] = w((3 * H, H)); p['out_b1'] = w((1, H))
    p['out_w2'] = w((H, V)); p['out_b2'] = w((1, V))
    return p


# ------------------------- full forward pass (train mode) ---------------------
def pointer_generator_forward(params, encoder_input, encoder_mask, encoder_with_oov,
                              oovs_zero, context_vec, coverage,
                              decoder_input, decoder_mask, decoder_target):
    H, E, V, Vp = HIDDEN_DIM, EMBED_DIM, VOB_SIZE, VOCAB_PAD
    Breal, S = encoder_input.shape
    T = decoder_input.shape[1]           # == batch_max_decoder_len (masked steps weigh 0)
    f32 = jnp.float32
    H2 = 2 * H

    # TODO(synk): pack_padded/pad_packed is identity for the all-ones encoder mask;
    #             encoder/reduce dropout treated as identity (eval mode).

    # ---- pad batch to 8 sublanes; padded rows carry zero loss weight ----
    def pad_rows(x):
        return jnp.pad(x, [(0, BP - Breal)] + [(0, 0)] * (x.ndim - 1))

    enc_in_p = pad_rows(encoder_input)
    enc_mask_p = pad_rows(encoder_mask).astype(f32)
    enc_oov_p = pad_rows(encoder_with_oov).astype(jnp.int32)
    ctx0_p = pad_rows(context_vec).astype(f32)
    dec_in_p = pad_rows(decoder_input)
    dec_mask_p = pad_rows(decoder_mask)
    tgt_p = pad_rows(decoder_target).astype(jnp.int32)

    # ---- embedding lookups + hoisted loop-invariant projections (plain XLA) ----
    emb_enc_t = jnp.transpose(jnp.take(params['enc_embed'], enc_in_p, axis=0), (1, 0, 2))
    emb_dec_t = jnp.transpose(jnp.take(params['dec_embed'], dec_in_p, axis=0), (1, 0, 2))

    xproj_f = jnp.einsum('sbe,eg->sbg', emb_enc_t, params['enc_wih_f']) + params['enc_b_f']
    xproj_b = jnp.einsum('sbe,eg->sbg', emb_enc_t, params['enc_wih_b']) + params['enc_b_b']
    xproj_enc = jnp.concatenate([xproj_f, xproj_b[::-1]], axis=-1)         # (S, BP, 8H)

    # fused bidirectional hidden->gates weight (block diagonal)
    whh_bd = jnp.zeros((H2, 8 * H), f32)
    whh_bd = whh_bd.at[:H, :4 * H].set(params['enc_whh_f'])
    whh_bd = whh_bd.at[H:, 4 * H:].set(params['enc_whh_b'])

    # attention weights for the lane-flattened (b, s*2H+h) layout
    w_att_bd = jnp.kron(jnp.eye(S, dtype=f32), params['att_wh'])           # (S*2H, S*2H)
    v_bd = jnp.kron(jnp.eye(S, dtype=f32), params['att_v'])                # (S*2H, S)

    # decoder: fold get_lstm_input's ctx part + w_ih into one LSTM matmul,
    # pre-project the embedding part and the gen_wx embedding term per step.
    wli_ctx = params['dec_wli'][:H2, :]
    wli_emb = params['dec_wli'][H2:, :]
    xemb = jnp.einsum('tbe,ef->tbf', emb_dec_t, wli_emb) + params['dec_bli']      # (T,BP,E)
    xproj_dec = jnp.einsum('tbe,eg->tbg', xemb, params['dec_wih']) + params['dec_blstm']
    w_dec_fused = jnp.concatenate([jnp.dot(wli_ctx, params['dec_wih']),
                                   params['dec_whh']], axis=0)             # (3H, 4H)
    genx_pre = jnp.einsum('tbe,eo->tbo', xemb, params['gen_wx'])           # (T, BP, 1)
    gwx_ctx = jnp.dot(wli_ctx, params['gen_wx'])                           # (2H, 1)

    # lane-padded output head: padded columns get -1e30 bias -> softmax prob exactly 0,
    # which also reproduces the cat([vocab_p, oovs_zero]) behaviour for OOV targets.
    w2p = jnp.zeros((H, Vp), f32).at[:, :V].set(params['out_w2'])
    b2p = jnp.full((1, Vp), BIG_NEG, f32).at[:, :V].set(params['out_b2'])

    # gather(target) / scatter_add(encoder_with_oov) as precomputed masks
    tgt_oh = jnp.transpose(jax.nn.one_hot(tgt_p, Vp, dtype=f32), (1, 0, 2))       # (T,BP,Vp)
    ptr_match = (enc_oov_p[:, None, :] == tgt_p[:, :, None]).astype(f32)          # (BP,T,S)
    ptr_t = jnp.transpose(ptr_match, (1, 0, 2))                                   # (T,BP,S)

    # decoder mask folded with 1/len so the kernel accumulates the final loss directly
    lens = dec_mask_p.sum(axis=-1).astype(f32)
    loss_w = dec_mask_p[:, :T].astype(f32) / jnp.maximum(lens, 1.0)[:, None]
    loss_w_t = jnp.transpose(loss_w, (1, 0))[:, :, None]                          # (T,BP,1)

    # per-step auxiliary slab: [genx_pre | loss_w | ptr_match]
    aux = jnp.concatenate([genx_pre, loss_w_t, ptr_t], axis=-1)                   # (T,BP,2+S)

    # pack all tiny (1, N) operands into one (8, 128) slab -> one entry DMA
    smalls = jnp.zeros((8, 128), f32)
    smalls = smalls.at[0, :H2].set(params['gen_wh'][:, 0])
    smalls = smalls.at[1, :H2].set(params['gen_ws'][:, 0])
    smalls = smalls.at[2, :H2].set(gwx_ctx[:, 0])
    smalls = smalls.at[3, 0].set(params['gen_b'][0, 0])
    smalls = smalls.at[4, :H].set(params['out_b1'][0])
    smalls = smalls.at[5, :].set(b2p[0])
    smalls = smalls.at[6, :H].set(params['red_bh'][0])
    smalls = smalls.at[7, :H].set(params['red_bc'][0])

    kernel = functools.partial(_pgn_fused_kernel, S, T, BP, Breal, H, EPS)
    out = pl.pallas_call(
        kernel,
        out_shape=jax.ShapeDtypeStruct((1, 128), f32),   # lane-dense single-slab output
        scratch_shapes=[
            pltpu.VMEM((BP, S * H2), f32),   # eo2: encoder outputs, lane-flattened
            pltpu.VMEM((BP, S * H2), f32),   # ef2: eo2 @ blockdiag(att_wh)
            pltpu.VMEM((BP, 4 * H), f32),    # decoder state [h | c | ctx] (one vreg)
            pltpu.VMEM((BP, 1), f32),        # per-row loss accumulator
        ],
    )(xproj_enc, whh_bd, w_att_bd,
      params['red_wh'], params['red_wc'],
      enc_mask_p, ctx0_p,
      xproj_dec, w_dec_fused, params['att_ws'], v_bd,
      params['out_w1'], w2p,
      tgt_oh, aux, smalls)
    return out[0, 0]


if __name__ == "__main__":
    key = jax.random.PRNGKey(0)
    kp, k1, k2, k3 = jax.random.split(key, 4)
    params = init_params(kp)

    encoder_input = jax.random.randint(k1, (B, S_ENC), 4, VOB_SIZE, dtype=jnp.int32)
    encoder_mask = jnp.ones((B, S_ENC), dtype=jnp.int32)
    # encoder tokens mapped to extended vocab; a couple of OOV positions
    encoder_with_oov = encoder_input.at[0, 3].set(VOB_SIZE + 0).at[1, 5].set(VOB_SIZE + 2)
    oovs_zero = jnp.zeros((B, N_OOV), dtype=jnp.float32)
    context_vec = jnp.zeros((B, 2 * HIDDEN_DIM), dtype=jnp.float32)
    coverage = jnp.zeros((B, S_ENC), dtype=jnp.float32)   # unused (use_coverage=False)

    decoder_input = jax.random.randint(k2, (B, T_DEC), 2, VOB_SIZE, dtype=jnp.int32)
    decoder_target = jax.random.randint(k3, (B, T_DEC), 4, VOB_SIZE + N_OOV, dtype=jnp.int32)
    decoder_mask = jnp.array([[1] * T_DEC,
                              [1] * (T_DEC - 2) + [0, 0]], dtype=jnp.int32)

    fwd = jax.jit(pointer_generator_forward)
    loss = fwd(params, encoder_input, encoder_mask, encoder_with_oov, oovs_zero,
               context_vec, coverage, decoder_input, decoder_mask, decoder_target)
    loss = jax.block_until_ready(loss)
    assert jnp.isfinite(loss)
    print("KERNEL_OK")
</pallas_src>

<mosaic_0001>
module attributes {stable_mosaic.version = 11 : i64} {
  func.func @_pgn_fused_kernel(%arg0: memref<8x8x256xf32, #tpu.memory_space<vmem>>, %arg1: memref<64x256xf32, #tpu.memory_space<vmem>>, %arg2: memref<512x512xf32, #tpu.memory_space<vmem>>, %arg3: memref<64x32xf32, #tpu.memory_space<vmem>>, %arg4: memref<64x32xf32, #tpu.memory_space<vmem>>, %arg5: memref<8x8xf32, #tpu.memory_space<vmem>>, %arg6: memref<8x64xf32, #tpu.memory_space<vmem>>, %arg7: memref<6x8x128xf32, #tpu.memory_space<vmem>>, %arg8: memref<96x128xf32, #tpu.memory_space<vmem>>, %arg9: memref<64x64xf32, #tpu.memory_space<vmem>>, %arg10: memref<512x8xf32, #tpu.memory_space<vmem>>, %arg11: memref<96x32xf32, #tpu.memory_space<vmem>>, %arg12: memref<32x128xf32, #tpu.memory_space<vmem>>, %arg13: memref<6x8x128xf32, #tpu.memory_space<vmem>>, %arg14: memref<6x8x10xf32, #tpu.memory_space<vmem>>, %arg15: memref<8x128xf32, #tpu.memory_space<vmem>>, %arg16: memref<1x128xf32, #tpu.memory_space<vmem>>, %arg17: memref<8x512xf32, #tpu.memory_space<vmem>>, %arg18: memref<8x512xf32, #tpu.memory_space<vmem>>, %arg19: memref<8x128xf32, #tpu.memory_space<vmem>>, %arg20: memref<8x1xf32, #tpu.memory_space<vmem>>) attributes {dimension_semantics = [], scalar_prefetch = 0 : i64, scratch_operands = 4 : i64, tpu.core_type = #tpu.core_type<tc>} {
    %cst = arith.constant 0.000000e+00 : f32
    %0 = vector.broadcast %cst : f32 to vector<8x32xf32>
    %cst_0 = arith.constant 0.000000e+00 : f32
    %1 = vector.broadcast %cst_0 : f32 to vector<8x32xf32>
    %cst_1 = arith.constant 0.000000e+00 : f32
    %2 = vector.broadcast %cst_1 : f32 to vector<8x32xf32>
    %cst_2 = arith.constant 0.000000e+00 : f32
    %3 = vector.broadcast %cst_2 : f32 to vector<8x32xf32>
    %4 = tpu.concatenate %0, %2 in 1 : vector<8x32xf32>, vector<8x32xf32> -> vector<8x64xf32>
    %c0 = arith.constant 0 : index
    %c0_3 = arith.constant 0 : index
    %c0_4 = arith.constant 0 : index
    %5 = vector.load %arg0[%c0, %c0_3, %c0_4] : memref<8x8x256xf32, #tpu.memory_space<vmem>>, vector<1x8x256xf32>
    %6 = vector.shape_cast %5 : vector<1x8x256xf32> to vector<8x256xf32>
    %c0_5 = arith.constant 0 : index
    %c0_6 = arith.constant 0 : index
    %7 = vector.load %arg1[%c0_5, %c0_6] : memref<64x256xf32, #tpu.memory_space<vmem>>, vector<64x256xf32>
    %cst_7 = arith.constant dense<0.000000e+00> : vector<8x256xf32>
    %8 = tpu.matmul %4, %7, %cst_7 {dimension_numbers = #tpu.dot_dimension_numbers<[1], [0], [0], [1], [0, 0, 1, 1], [], []>} : vector<8x64xf32>, vector<64x256xf32>, vector<8x256xf32> -> vector<8x256xf32>
    %9 = arith.addf %6, %8 : vector<8x256xf32>
    %10 = vector.extract_strided_slice %9 {offsets = [0, 0], sizes = [8, 128], strides = [1, 1]} : vector<8x256xf32> to vector<8x128xf32>
    %11 = vector.extract_strided_slice %10 {offsets = [0, 0], sizes = [8, 32], strides = [1, 1]} : vector<8x128xf32> to vector<8x32xf32>
    %12 = arith.negf %11 : vector<8x32xf32>
    %13 = math.exp %12 : vector<8x32xf32>
    %cst_8 = arith.constant 1.000000e+00 : f32
    %14 = vector.broadcast %cst_8 : f32 to vector<8x32xf32>
    %15 = arith.addf %14, %13 : vector<8x32xf32>
    %16 = arith.divf %14, %15 : vector<8x32xf32>
    %17 = vector.extract_strided_slice %10 {offsets = [0, 32], sizes = [8, 32], strides = [1, 1]} : vector<8x128xf32> to vector<8x32xf32>
    %18 = arith.negf %17 : vector<8x32xf32>
    %19 = math.exp %18 : vector<8x32xf32>
    %cst_9 = arith.constant 1.000000e+00 : f32
    %20 = vector.broadcast %cst_9 : f32 to vector<8x32xf32>
    %21 = arith.addf %20, %19 : vector<8x32xf32>
    %22 = arith.divf %20, %21 : vector<8x32xf32>
    %23 = vector.extract_strided_slice %10 {offsets = [0, 64], sizes = [8, 32], strides = [1, 1]} : vector<8x128xf32> to vector<8x32xf32>
    %24 = math.tanh %23 : vector<8x32xf32>
    %25 = vector.extract_strided_slice %10 {offsets = [0, 96], sizes = [8, 32], strides = [1, 1]} : vector<8x128xf32> to vector<8x32xf32>
    %26 = arith.negf %25 : vector<8x32xf32>
    %27 = math.exp %26 : vector<8x32xf32>
    %cst_10 = arith.constant 1.000000e+00 : f32
    %28 = vector.broadcast %cst_10 : f32 to vector<8x32xf32>
    %29 = arith.addf %28, %27 : vector<8x32xf32>
    %30 = arith.divf %28, %29 : vector<8x32xf32>
    %31 = arith.mulf %22, %1 : vector<8x32xf32>
    %32 = arith.mulf %16, %24 : vector<8x32xf32>
    %33 = arith.addf %31, %32 : vector<8x32xf32>
    %34 = math.tanh %33 : vector<8x32xf32>
    %35 = arith.mulf %30, %34 : vector<8x32xf32>
    %36 = vector.extract_strided_slice %9 {offsets = [0, 128], sizes = [8, 128], strides = [1, 1]} : vector<8x256xf32> to vector<8x128xf32>
    %37 = vector.extract_strided_slice %36 {offsets = [0, 0], sizes = [8, 32], strides = [1, 1]} : vector<8x128xf32> to vector<8x32xf32>
    %38 = arith.negf %37 : vector<8x32xf32>
    %39 = math.exp %38 : vector<8x32xf32>
    %cst_11 = arith.constant 1.000000e+00 : f32
    %40 = vector.broadcast %cst_11 : f32 to vector<8x32xf32>
    %41 = arith.addf %40, %39 : vector<8x32xf32>
    %42 = arith.divf %40, %41 : vector<8x32xf32>
    %43 = vector.extract_strided_slice %36 {offsets = [0, 32], sizes = [8, 32], strides = [1, 1]} : vector<8x128xf32> to vector<8x32xf32>
    %44 = arith.negf %43 : vector<8x32xf32>
    %45 = math.exp %44 : vector<8x32xf32>
    %cst_12 = arith.constant 1.000000e+00 : f32
    %46 = vector.broadcast %cst_12 : f32 to vector<8x32xf32>
    %47 = arith.addf %46, %45 : vector<8x32xf32>
    %48 = arith.divf %46, %47 : vector<8x32xf32>
    %49 = vector.extract_strided_slice %36 {offsets = [0, 64], sizes = [8, 32], strides = [1, 1]} : vector<8x128xf32> to vector<8x32xf32>
    %50 = math.tanh %49 : vector<8x32xf32>
    %51 = vector.extract_strided_slice %36 {offsets = [0, 96], sizes = [8, 32], strides = [1, 1]} : vector<8x128xf32> to vector<8x32xf32>
    %52 = arith.negf %51 : vector<8x32xf32>
    %53 = math.exp %52 : vector<8x32xf32>
    %cst_13 = arith.constant 1.000000e+00 : f32
    %54 = vector.broadcast %cst_13 : f32 to vector<8x32xf32>
    %55 = arith.addf %54, %53 : vector<8x32xf32>
    %56 = arith.divf %54, %55 : vector<8x32xf32>
    %57 = arith.mulf %48, %3 : vector<8x32xf32>
    %58 = arith.mulf %42, %50 : vector<8x32xf32>
    %59 = arith.addf %57, %58 : vector<8x32xf32>
    %60 = math.tanh %59 : vector<8x32xf32>
    %61 = arith.mulf %56, %60 : vector<8x32xf32>
    %c0_14 = arith.constant 0 : index
    %c0_15 = arith.constant 0 : index
    %62 = vector.load %arg17[%c0_14, %c0_15] : memref<8x512xf32, #tpu.memory_space<vmem>>, vector<8x32xf32>
    tpu.vector_store %arg17[%c0_14, %c0_15], %35 {strides = array<i32>} : memref<8x512xf32, #tpu.memory_space<vmem>>, vector<8x32xf32>,
    %c0_16 = arith.constant 0 : index
    %c480 = arith.constant 480 : index
    %63 = vector.load %arg17[%c0_16, %c480] : memref<8x512xf32, #tpu.memory_space<vmem>>, vector<8x32xf32>
    tpu.vector_store %arg17[%c0_16, %c480], %61 {strides = array<i32>} : memref<8x512xf32, #tpu.memory_space<vmem>>, vector<8x32xf32>,
    %64 = tpu.concatenate %35, %61 in 1 : vector<8x32xf32>, vector<8x32xf32> -> vector<8x64xf32>
    %c1 = arith.constant 1 : index
    %c0_17 = arith.constant 0 : index
    %c0_18 = arith.constant 0 : index
    %65 = vector.load %arg0[%c1, %c0_17, %c0_18] : memref<8x8x256xf32, #tpu.memory_space<vmem>>, vector<1x8x256xf32>
    %66 = vector.shape_cast %65 : vector<1x8x256xf32> to vector<8x256xf32>
    %c0_19 = arith.constant 0 : index
    %c0_20 = arith.constant 0 : index
    %67 = vector.load %arg1[%c0_19, %c0_20] : memref<64x256xf32, #tpu.memory_space<vmem>>, vector<64x256xf32>
    %cst_21 = arith.constant dense<0.000000e+00> : vector<8x256xf32>
    %68 = tpu.matmul %64, %67, %cst_21 {dimension_numbers = #tpu.dot_dimension_numbers<[1], [0], [0], [1], [0, 0, 1, 1], [], []>} : vector<8x64xf32>, vector<64x256xf32>, vector<8x256xf32> -> vector<8x256xf32>
    %69 = arith.addf %66, %68 : vector<8x256xf32>
    %70 = vector.extract_strided_slice %69 {offsets = [0, 0], sizes = [8, 128], strides = [1, 1]} : vector<8x256xf32> to vector<8x128xf32>
    %71 = vector.extract_strided_slice %70 {offsets = [0, 0], sizes = [8, 32], strides = [1, 1]} : vector<8x128xf32> to vector<8x32xf32>
    %72 = arith.negf %71 : vector<8x32xf32>
    %73 = math.exp %72 : vector<8x32xf32>
    %cst_22 = arith.constant 1.000000e+00 : f32
    %74 = vector.broadcast %cst_22 : f32 to vector<8x32xf32>
    %75 = arith.addf %74, %73 : vector<8x32xf32>
    %76 = arith.divf %74, %75 : vector<8x32xf32>
    %77 = vector.extract_strided_slice %70 {offsets = [0, 32], sizes = [8, 32], strides = [1, 1]} : vector<8x128xf32> to vector<8x32xf32>
    %78 = arith.negf %77 : vector<8x32xf32>
    %79 = math.exp %78 : vector<8x32xf32>
    %cst_23 = arith.constant 1.000000e+00 : f32
    %80 = vector.broadcast %cst_23 : f32 to vector<8x32xf32>
    %81 = arith.addf %80, %79 : vector<8x32xf32>
    %82 = arith.divf %80, %81 : vector<8x32xf32>
    %83 = vector.extract_strided_slice %70 {offsets = [0, 64], sizes = [8, 32], strides = [1, 1]} : vector<8x128xf32> to vector<8x32xf32>
    %84 = math.tanh %83 : vector<8x32xf32>
    %85 = vector.extract_strided_slice %70 {offsets = [0, 96], sizes = [8, 32], strides = [1, 1]} : vector<8x128xf32> to vector<8x32xf32>
    %86 = arith.negf %85 : vector<8x32xf32>
    %87 = math.exp %86 : vector<8x32xf32>
    %cst_24 = arith.constant 1.000000e+00 : f32
    %88 = vector.broadcast %cst_24 : f32 to vector<8x32xf32>
    %89 = arith.addf %88, %87 : vector<8x32xf32>
    %90 = arith.divf %88, %89 : vector<8x32xf32>
    %91 = arith.mulf %82, %33 : vector<8x32xf32>
    %92 = arith.mulf %76, %84 : vector<8x32xf32>
    %93 = arith.addf %91, %92 : vector<8x32xf32>
    %94 = math.tanh %93 : vector<8x32xf32>
    %95 = arith.mulf %90, %94 : vector<8x32xf32>
    %96 = vector.extract_strided_slice %69 {offsets = [0, 128], sizes = [8, 128], strides = [1, 1]} : vector<8x256xf32> to vector<8x128xf32>
    %97 = vector.extract_strided_slice %96 {offsets = [0, 0], sizes = [8, 32], strides = [1, 1]} : vector<8x128xf32> to vector<8x32xf32>
    %98 = arith.negf %97 : vector<8x32xf32>
    %99 = math.exp %98 : vector<8x32xf32>
    %cst_25 = arith.constant 1.000000e+00 : f32
    %100 = vector.broadcast %cst_25 : f32 to vector<8x32xf32>
    %101 = arith.addf %100, %99 : vector<8x32xf32>
    %102 = arith.divf %100, %101 : vector<8x32xf32>
    %103 = vector.extract_strided_slice %96 {offsets = [0, 32], sizes = [8, 32], strides = [1, 1]} : vector<8x128xf32> to vector<8x32xf32>
    %104 = arith.negf %103 : vector<8x32xf32>
    %105 = math.exp %104 : vector<8x32xf32>
    %cst_26 = arith.constant 1.000000e+00 : f32
    %106 = vector.broadcast %cst_26 : f32 to vector<8x32xf32>
    %107 = arith.addf %106, %105 : vector<8x32xf32>
    %108 = arith.divf %106, %107 : vector<8x32xf32>
    %109 = vector.extract_strided_slice %96 {offsets = [0, 64], sizes = [8, 32], strides = [1, 1]} : vector<8x128xf32> to vector<8x32xf32>
    %110 = math.tanh %109 : vector<8x32xf32>
    %111 = vector.extract_strided_slice %96 {offsets = [0, 96], sizes = [8, 32], strides = [1, 1]} : vector<8x128xf32> to vector<8x32xf32>
    %112 = arith.negf %111 : vector<8x32xf32>
    %113 = math.exp %112 : vector<8x32xf32>
    %cst_27 = arith.constant 1.000000e+00 : f32
    %114 = vector.broadcast %cst_27 : f32 to vector<8x32xf32>
    %115 = arith.addf %114, %113 : vector<8x32xf32>
    %116 = arith.divf %114, %115 : vector<8x32xf32>
    %117 = arith.mulf %108, %59 : vector<8x32xf32>
    %118 = arith.mulf %102, %110 : vector<8x32xf32>
    %119 = arith.addf %117, %118 : vector<8x32xf32>
    %120 = math.tanh %119 : vector<8x32xf32>
    %121 = arith.mulf %116, %120 : vector<8x32xf32>
    %c0_28 = arith.constant 0 : index
    %c64 = arith.constant 64 : index
    %122 = vector.load %arg17[%c0_28, %c64] : memref<8x512xf32, #tpu.memory_space<vmem>>, vector<8x32xf32>
    tpu.vector_store %arg17[%c0_28, %c64], %95 {strides = array<i32>} : memref<8x512xf32, #tpu.memory_space<vmem>>, vector<8x32xf32>,
    %c0_29 = arith.constant 0 : index
    %c416 = arith.constant 416 : index
    %123 = vector.load %arg17[%c0_29, %c416] : memref<8x512xf32, #tpu.memory_space<vmem>>, vector<8x32xf32>
    tpu.vector_store %arg17[%c0_29, %c416], %121 {strides = array<i32>} : memref<8x512xf32, #tpu.memory_space<vmem>>, vector<8x32xf32>,
    %124 = tpu.concatenate %95, %121 in 1 : vector<8x32xf32>, vector<8x32xf32> -> vector<8x64xf32>
    %c2 = arith.constant 2 : index
    %c0_30 = arith.constant 0 : index
    %c0_31 = arith.constant 0 : index
    %125 = vector.load %arg0[%c2, %c0_30, %c0_31] : memref<8x8x256xf32, #tpu.memory_space<vmem>>, vector<1x8x256xf32>
    %126 = vector.shape_cast %125 : vector<1x8x256xf32> to vector<8x256xf32>
    %c0_32 = arith.constant 0 : index
    %c0_33 = arith.constant 0 : index
    %127 = vector.load %arg1[%c0_32, %c0_33] : memref<64x256xf32, #tpu.memory_space<vmem>>, vector<64x256xf32>
    %cst_34 = arith.constant dense<0.000000e+00> : vector<8x256xf32>
    %128 = tpu.matmul %124, %127, %cst_34 {dimension_numbers = #tpu.dot_dimension_numbers<[1], [0], [0], [1], [0, 0, 1, 1], [], []>} : vector<8x64xf32>, vector<64x256xf32>, vector<8x256xf32> -> vector<8x256xf32>
    %129 = arith.addf %126, %128 : vector<8x256xf32>
    %130 = vector.extract_strided_slice %129 {offsets = [0, 0], sizes = [8, 128], strides = [1, 1]} : vector<8x256xf32> to vector<8x128xf32>
    %131 = vector.extract_strided_slice %130 {offsets = [0, 0], sizes = [8, 32], strides = [1, 1]} : vector<8x128xf32> to vector<8x32xf32>
    %132 = arith.negf %131 : vector<8x32xf32>
    %133 = math.exp %132 : vector<8x32xf32>
    %cst_35 = arith.constant 1.000000e+00 : f32
    %134 = vector.broadcast %cst_35 : f32 to vector<8x32xf32>
    %135 = arith.addf %134, %133 : vector<8x32xf32>
    %136 = arith.divf %134, %135 : vector<8x32xf32>
    %137 = vector.extract_strided_slice %130 {offsets = [0, 32], sizes = [8, 32], strides = [1, 1]} : vector<8x128xf32> to vector<8x32xf32>
    %138 = arith.negf %137 : vector<8x32xf32>
    %139 = math.exp %138 : vector<8x32xf32>
    %cst_36 = arith.constant 1.000000e+00 : f32
    %140 = vector.broadcast %cst_36 : f32 to vector<8x32xf32>
    %141 = arith.addf %140, %139 : vector<8x32xf32>
    %142 = arith.divf %140, %141 : vector<8x32xf32>
    %143 = vector.extract_strided_slice %130 {offsets = [0, 64], sizes = [8, 32], strides = [1, 1]} : vector<8x128xf32> to vector<8x32xf32>
    %144 = math.tanh %143 : vector<8x32xf32>
    %145 = vector.extract_strided_slice %130 {offsets = [0, 96], sizes = [8, 32], strides = [1, 1]} : vector<8x128xf32> to vector<8x32xf32>
    %146 = arith.negf %145 : vector<8x32xf32>
    %147 = math.exp %146 : vector<8x32xf32>
    %cst_37 = arith.constant 1.000000e+00 : f32
    %148 = vector.broadcast %cst_37 : f32 to vector<8x32xf32>
    %149 = arith.addf %148, %147 : vector<8x32xf32>
    %150 = arith.divf %148, %149 : vector<8x32xf32>
    %151 = arith.mulf %142, %93 : vector<8x32xf32>
    %152 = arith.mulf %136, %144 : vector<8x32xf32>
    %153 = arith.addf %151, %152 : vector<8x32xf32>
    %154 = math.tanh %153 : vector<8x32xf32>
    %155 = arith.mulf %150, %154 : vector<8x32xf32>
    %156 = vector.extract_strided_slice %129 {offsets = [0, 128], sizes = [8, 128], strides = [1, 1]} : vector<8x256xf32> to vector<8x128xf32>
    %157 = vector.extract_strided_slice %156 {offsets = [0, 0], sizes = [8, 32], strides = [1, 1]} : vector<8x128xf32> to vector<8x32xf32>
    %158 = arith.negf %157 : vector<8x32xf32>
    %159 = math.exp %158 : vector<8x32xf32>
    %cst_38 = arith.constant 1.000000e+00 : f32
    %160 = vector.broadcast %cst_38 : f32 to vector<8x32xf32>
    %161 = arith.addf %160, %159 : vector<8x32xf32>
    %162 = arith.divf %160, %161 : vector<8x32xf32>
    %163 = vector.extract_strided_slice %156 {offsets = [0, 32], sizes = [8, 32], strides = [1, 1]} : vector<8x128xf32> to vector<8x32xf32>
    %164 = arith.negf %163 : vector<8x32xf32>
    %165 = math.exp %164 : vector<8x32xf32>
    %cst_39 = arith.constant 1.000000e+00 : f32
    %166 = vector.broadcast %cst_39 : f32 to vector<8x32xf32>
    %167 = arith.addf %166, %165 : vector<8x32xf32>
    %168 = arith.divf %166, %167 : vector<8x32xf32>
    %169 = vector.extract_strided_slice %156 {offsets = [0, 64], sizes = [8, 32], strides = [1, 1]} : vector<8x128xf32> to vector<8x32xf32>
    %170 = math.tanh %169 : vector<8x32xf32>
    %171 = vector.extract_strided_slice %156 {offsets = [0, 96], sizes = [8, 32], strides = [1, 1]} : vector<8x128xf32> to vector<8x32xf32>
    %172 = arith.negf %171 : vector<8x32xf32>
    %173 = math.exp %172 : vector<8x32xf32>
    %cst_40 = arith.constant 1.000000e+00 : f32
    %174 = vector.broadcast %cst_40 : f32 to vector<8x32xf32>
    %175 = arith.addf %174, %173 : vector<8x32xf32>
    %176 = arith.divf %174, %175 : vector<8x32xf32>
    %177 = arith.mulf %168, %119 : vector<8x32xf32>
    %178 = arith.mulf %162, %170 : vector<8x32xf32>
    %179 = arith.addf %177, %178 : vector<8x32xf32>
    %180 = math.tanh %179 : vector<8x32xf32>
    %181 = arith.mulf %176, %180 : vector<8x32xf32>
    %c0_41 = arith.constant 0 : index
    %c128 = arith.constant 128 : index
    %182 = vector.load %arg17[%c0_41, %c128] : memref<8x512xf32, #tpu.memory_space<vmem>>, vector<8x32xf32>
    tpu.vector_store %arg17[%c0_41, %c128], %155 {strides = array<i32>} : memref<8x512xf32, #tpu.memory_space<vmem>>, vector<8x32xf32>,
    %c0_42 = arith.constant 0 : index
    %c352 = arith.constant 352 : index
    %183 = vector.load %arg17[%c0_42, %c352] : memref<8x512xf32, #tpu.memory_space<vmem>>, vector<8x32xf32>
    tpu.vector_store %arg17[%c0_42, %c352], %181 {strides = array<i32>} : memref<8x512xf32, #tpu.memory_space<vmem>>, vector<8x32xf32>,
    %184 = tpu.concatenate %155, %181 in 1 : vector<8x32xf32>, vector<8x32xf32> -> vector<8x64xf32>
    %c3 = arith.constant 3 : index
    %c0_43 = arith.constant 0 : index
    %c0_44 = arith.constant 0 : index
    %185 = vector.load %arg0[%c3, %c0_43, %c0_44] : memref<8x8x256xf32, #tpu.memory_space<vmem>>, vector<1x8x256xf32>
    %186 = vector.shape_cast %185 : vector<1x8x256xf32> to vector<8x256xf32>
    %c0_45 = arith.constant 0 : index
    %c0_46 = arith.constant 0 : index
    %187 = vector.load %arg1[%c0_45, %c0_46] : memref<64x256xf32, #tpu.memory_space<vmem>>, vector<64x256xf32>
    %cst_47 = arith.constant dense<0.000000e+00> : vector<8x256xf32>
    %188 = tpu.matmul %184, %187, %cst_47 {dimension_numbers = #tpu.dot_dimension_numbers<[1], [0], [0], [1], [0, 0, 1, 1], [], []>} : vector<8x64xf32>, vector<64x256xf32>, vector<8x256xf32> -> vector<8x256xf32>
    %189 = arith.addf %186, %188 : vector<8x256xf32>
    %190 = vector.extract_strided_slice %189 {offsets = [0, 0], sizes = [8, 128], strides = [1, 1]} : vector<8x256xf32> to vector<8x128xf32>
    %191 = vector.extract_strided_slice %190 {offsets = [0, 0], sizes = [8, 32], strides = [1, 1]} : vector<8x128xf32> to vector<8x32xf32>
    %192 = arith.negf %191 : vector<8x32xf32>
    %193 = math.exp %192 : vector<8x32xf32>
    %cst_48 = arith.constant 1.000000e+00 : f32
    %194 = vector.broadcast %cst_48 : f32 to vector<8x32xf32>
    %195 = arith.addf %194, %193 : vector<8x32xf32>
    %196 = arith.divf %194, %195 : vector<8x32xf32>
    %197 = vector.extract_strided_slice %190 {offsets = [0, 32], sizes = [8, 32], strides = [1, 1]} : vector<8x128xf32> to vector<8x32xf32>
    %198 = arith.negf %197 : vector<8x32xf32>
    %199 = math.exp %198 : vector<8x32xf32>
    %cst_49 = arith.constant 1.000000e+00 : f32
    %200 = vector.broadcast %cst_49 : f32 to vector<8x32xf32>
    %201 = arith.addf %200, %199 : vector<8x32xf32>
    %202 = arith.divf %200, %201 : vector<8x32xf32>
    %203 = vector.extract_strided_slice %190 {offsets = [0, 64], sizes = [8, 32], strides = [1, 1]} : vector<8x128xf32> to vector<8x32xf32>
    %204 = math.tanh %203 : vector<8x32xf32>
    %205 = vector.extract_strided_slice %190 {offsets = [0, 96], sizes = [8, 32], strides = [1, 1]} : vector<8x128xf32> to vector<8x32xf32>
    %206 = arith.negf %205 : vector<8x32xf32>
    %207 = math.exp %206 : vector<8x32xf32>
    %cst_50 = arith.constant 1.000000e+00 : f32
    %208 = vector.broadcast %cst_50 : f32 to vector<8x32xf32>
    %209 = arith.addf %208, %207 : vector<8x32xf32>
    %210 = arith.divf %208, %209 : vector<8x32xf32>
    %211 = arith.mulf %202, %153 : vector<8x32xf32>
    %212 = arith.mulf %196, %204 : vector<8x32xf32>
    %213 = arith.addf %211, %212 : vector<8x32xf32>
    %214 = math.tanh %213 : vector<8x32xf32>
    %215 = arith.mulf %210, %214 : vector<8x32xf32>
    %216 = vector.extract_strided_slice %189 {offsets = [0, 128], sizes = [8, 128], strides = [1, 1]} : vector<8x256xf32> to vector<8x128xf32>
    %217 = vector.extract_strided_slice %216 {offsets = [0, 0], sizes = [8, 32], strides = [1, 1]} : vector<8x128xf32> to vector<8x32xf32>
    %218 = arith.negf %217 : vector<8x32xf32>
    %219 = math.exp %218 : vector<8x32xf32>
    %cst_51 = arith.constant 1.000000e+00 : f32
    %220 = vector.broadcast %cst_51 : f32 to vector<8x32xf32>
    %221 = arith.addf %220, %219 : vector<8x32xf32>
    %222 = arith.divf %220, %221 : vector<8x32xf32>
    %223 = vector.extract_strided_slice %216 {offsets = [0, 32], sizes = [8, 32], strides = [1, 1]} : vector<8x128xf32> to vector<8x32xf32>
    %224 = arith.negf %223 : vector<8x32xf32>
    %225 = math.exp %224 : vector<8x32xf32>
    %cst_52 = arith.constant 1.000000e+00 : f32
    %226 = vector.broadcast %cst_52 : f32 to vector<8x32xf32>
    %227 = arith.addf %226, %225 : vector<8x32xf32>
    %228 = arith.divf %226, %227 : vector<8x32xf32>
    %229 = vector.extract_strided_slice %216 {offsets = [0, 64], sizes = [8, 32], strides = [1, 1]} : vector<8x128xf32> to vector<8x32xf32>
    %230 = math.tanh %229 : vector<8x32xf32>
    %231 = vector.extract_strided_slice %216 {offsets = [0, 96], sizes = [8, 32], strides = [1, 1]} : vector<8x128xf32> to vector<8x32xf32>
    %232 = arith.negf %231 : vector<8x32xf32>
    %233 = math.exp %232 : vector<8x32xf32>
    %cst_53 = arith.constant 1.000000e+00 : f32
    %234 = vector.broadcast %cst_53 : f32 to vector<8x32xf32>
    %235 = arith.addf %234, %233 : vector<8x32xf32>
    %236 = arith.divf %234, %235 : vector<8x32xf32>
    %237 = arith.mulf %228, %179 : vector<8x32xf32>
    %238 = arith.mulf %222, %230 : vector<8x32xf32>
    %239 = arith.addf %237, %238 : vector<8x32xf32>
    %240 = math.tanh %239 : vector<8x32xf32>
    %241 = arith.mulf %236, %240 : vector<8x32xf32>
    %c0_54 = arith.constant 0 : index
    %c192 = arith.constant 192 : index
    %242 = vector.load %arg17[%c0_54, %c192] : memref<8x512xf32, #tpu.memory_space<vmem>>, vector<8x32xf32>
    tpu.vector_store %arg17[%c0_54, %c192], %215 {strides = array<i32>} : memref<8x512xf32, #tpu.memory_space<vmem>>, vector<8x32xf32>,
    %c0_55 = arith.constant 0 : index
    %c288 = arith.constant 288 : index
    %243 = vector.load %arg17[%c0_55, %c288] : memref<8x512xf32, #tpu.memory_space<vmem>>, vector<8x32xf32>
    tpu.vector_store %arg17[%c0_55, %c288], %241 {strides = array<i32>} : memref<8x512xf32, #tpu.memory_space<vmem>>, vector<8x32xf32>,
    %244 = tpu.concatenate %215, %241 in 1 : vector<8x32xf32>, vector<8x32xf32> -> vector<8x64xf32>
    %c4 = arith.constant 4 : index
    %c0_56 = arith.constant 0 : index
    %c0_57 = arith.constant 0 : index
    %245 = vector.load %arg0[%c4, %c0_56, %c0_57] : memref<8x8x256xf32, #tpu.memory_space<vmem>>, vector<1x8x256xf32>
    %246 = vector.shape_cast %245 : vector<1x8x256xf32> to vector<8x256xf32>
    %c0_58 = arith.constant 0 : index
    %c0_59 = arith.constant 0 : index
    %247 = vector.load %arg1[%c0_58, %c0_59] : memref<64x256xf32, #tpu.memory_space<vmem>>, vector<64x256xf32>
    %cst_60 = arith.constant dense<0.000000e+00> : vector<8x256xf32>
    %248 = tpu.matmul %244, %247, %cst_60 {dimension_numbers = #tpu.dot_dimension_numbers<[1], [0], [0], [1], [0, 0, 1, 1], [], []>} : vector<8x64xf32>, vector<64x256xf32>, vector<8x256xf32> -> vector<8x256xf32>
    %249 = arith.addf %246, %248 : vector<8x256xf32>
    %250 = vector.extract_strided_slice %249 {offsets = [0, 0], sizes = [8, 128], strides = [1, 1]} : vector<8x256xf32> to vector<8x128xf32>
    %251 = vector.extract_strided_slice %250 {offsets = [0, 0], sizes = [8, 32], strides = [1, 1]} : vector<8x128xf32> to vector<8x32xf32>
    %252 = arith.negf %251 : vector<8x32xf32>
    %253 = math.exp %252 : vector<8x32xf32>
    %cst_61 = arith.constant 1.000000e+00 : f32
    %254 = vector.broadcast %cst_61 : f32 to vector<8x32xf32>
    %255 = arith.addf %254, %253 : vector<8x32xf32>
    %256 = arith.divf %254, %255 : vector<8x32xf32>
    %257 = vector.extract_strided_slice %250 {offsets = [0, 32], sizes = [8, 32], strides = [1, 1]} : vector<8x128xf32> to vector<8x32xf32>
    %258 = arith.negf %257 : vector<8x32xf32>
    %259 = math.exp %258 : vector<8x32xf32>
    %cst_62 = arith.constant 1.000000e+00 : f32
    %260 = vector.broadcast %cst_62 : f32 to vector<8x32xf32>
    %261 = arith.addf %260, %259 : vector<8x32xf32>
    %262 = arith.divf %260, %261 : vector<8x32xf32>
    %263 = vector.extract_strided_slice %250 {offsets = [0, 64], sizes = [8, 32], strides = [1, 1]} : vector<8x128xf32> to vector<8x32xf32>
    %264 = math.tanh %263 : vector<8x32xf32>
    %265 = vector.extract_strided_slice %250 {offsets = [0, 96], sizes = [8, 32], strides = [1, 1]} : vector<8x128xf32> to vector<8x32xf32>
    %266 = arith.negf %265 : vector<8x32xf32>
    %267 = math.exp %266 : vector<8x32xf32>
    %cst_63 = arith.constant 1.000000e+00 : f32
    %268 = vector.broadcast %cst_63 : f32 to vector<8x32xf32>
    %269 = arith.addf %268, %267 : vector<8x32xf32>
    %270 = arith.divf %268, %269 : vector<8x32xf32>
    %271 = arith.mulf %262, %213 : vector<8x32xf32>
    %272 = arith.mulf %256, %264 : vector<8x32xf32>
    %273 = arith.addf %271, %272 : vector<8x32xf32>
    %274 = math.tanh %273 : vector<8x32xf32>
    %275 = arith.mulf %270, %274 : vector<8x32xf32>
    %276 = vector.extract_strided_slice %249 {offsets = [0, 128], sizes = [8, 128], strides = [1, 1]} : vector<8x256xf32> to vector<8x128xf32>
    %277 = vector.extract_strided_slice %276 {offsets = [0, 0], sizes = [8, 32], strides = [1, 1]} : vector<8x128xf32> to vector<8x32xf32>
    %278 = arith.negf %277 : vector<8x32xf32>
    %279 = math.exp %278 : vector<8x32xf32>
    %cst_64 = arith.constant 1.000000e+00 : f32
    %280 = vector.broadcast %cst_64 : f32 to vector<8x32xf32>
    %281 = arith.addf %280, %279 : vector<8x32xf32>
    %282 = arith.divf %280, %281 : vector<8x32xf32>
    %283 = vector.extract_strided_slice %276 {offsets = [0, 32], sizes = [8, 32], strides = [1, 1]} : vector<8x128xf32> to vector<8x32xf32>
    %284 = arith.negf %283 : vector<8x32xf32>
    %285 = math.exp %284 : vector<8x32xf32>
    %cst_65 = arith.constant 1.000000e+00 : f32
    %286 = vector.broadcast %cst_65 : f32 to vector<8x32xf32>
    %287 = arith.addf %286, %285 : vector<8x32xf32>
    %288 = arith.divf %286, %287 : vector<8x32xf32>
    %289 = vector.extract_strided_slice %276 {offsets = [0, 64], sizes = [8, 32], strides = [1, 1]} : vector<8x128xf32> to vector<8x32xf32>
    %290 = math.tanh %289 : vector<8x32xf32>
    %291 = vector.extract_strided_slice %276 {offsets = [0, 96], sizes = [8, 32], strides = [1, 1]} : vector<8x128xf32> to vector<8x32xf32>
    %292 = arith.negf %291 : vector<8x32xf32>
    %293 = math.exp %292 : vector<8x32xf32>
    %cst_66 = arith.constant 1.000000e+00 : f32
    %294 = vector.broadcast %cst_66 : f32 to vector<8x32xf32>
    %295 = arith.addf %294, %293 : vector<8x32xf32>
    %296 = arith.divf %294, %295 : vector<8x32xf32>
    %297 = arith.mulf %288, %239 : vector<8x32xf32>
    %298 = arith.mulf %282, %290 : vector<8x32xf32>
    %299 = arith.addf %297, %298 : vector<8x32xf32>
    %300 = math.tanh %299 : vector<8x32xf32>
    %301 = arith.mulf %296, %300 : vector<8x32xf32>
    %c0_67 = arith.constant 0 : index
    %c256 = arith.constant 256 : index
    %302 = vector.load %arg17[%c0_67, %c256] : memref<8x512xf32, #tpu.memory_space<vmem>>, vector<8x32xf32>
    tpu.vector_store %arg17[%c0_67, %c256], %275 {strides = array<i32>} : memref<8x512xf32, #tpu.memory_space<vmem>>, vector<8x32xf32>,
    %c0_68 = arith.constant 0 : index
    %c224 = arith.constant 224 : index
    %303 = vector.load %arg17[%c0_68, %c224] : memref<8x512xf32, #tpu.memory_space<vmem>>, vector<8x32xf32>
    tpu.vector_store %arg17[%c0_68, %c224], %301 {strides = array<i32>} : memref<8x512xf32, #tpu.memory_space<vmem>>, vector<8x32xf32>,
    %304 = tpu.concatenate %275, %301 in 1 : vector<8x32xf32>, vector<8x32xf32> -> vector<8x64xf32>
    %c5 = arith.constant 5 : index
    %c0_69 = arith.constant 0 : index
    %c0_70 = arith.constant 0 : index
    %305 = vector.load %arg0[%c5, %c0_69, %c0_70] : memref<8x8x256xf32, #tpu.memory_space<vmem>>, vector<1x8x256xf32>
    %306 = vector.shape_cast %305 : vector<1x8x256xf32> to vector<8x256xf32>
    %c0_71 = arith.constant 0 : index
    %c0_72 = arith.constant 0 : index
    %307 = vector.load %arg1[%c0_71, %c0_72] : memref<64x256xf32, #tpu.memory_space<vmem>>, vector<64x256xf32>
    %cst_73 = arith.constant dense<0.000000e+00> : vector<8x256xf32>
    %308 = tpu.matmul %304, %307, %cst_73 {dimension_numbers = #tpu.dot_dimension_numbers<[1], [0], [0], [1], [0, 0, 1, 1], [], []>} : vector<8x64xf32>, vector<64x256xf32>, vector<8x256xf32> -> vector<8x256xf32>
    %309 = arith.addf %306, %308 : vector<8x256xf32>
    %310 = vector.extract_strided_slice %309 {offsets = [0, 0], sizes = [8, 128], strides = [1, 1]} : vector<8x256xf32> to vector<8x128xf32>
    %311 = vector.extract_strided_slice %310 {offsets = [0, 0], sizes = [8, 32], strides = [1, 1]} : vector<8x128xf32> to vector<8x32xf32>
    %312 = arith.negf %311 : vector<8x32xf32>
    %313 = math.exp %312 : vector<8x32xf32>
    %cst_74 = arith.constant 1.000000e+00 : f32
    %314 = vector.broadcast %cst_74 : f32 to vector<8x32xf32>
    %315 = arith.addf %314, %313 : vector<8x32xf32>
    %316 = arith.divf %314, %315 : vector<8x32xf32>
    %317 = vector.extract_strided_slice %310 {offsets = [0, 32], sizes = [8, 32], strides = [1, 1]} : vector<8x128xf32> to vector<8x32xf32>
    %318 = arith.negf %317 : vector<8x32xf32>
    %319 = math.exp %318 : vector<8x32xf32>
    %cst_75 = arith.constant 1.000000e+00 : f32
    %320 = vector.broadcast %cst_75 : f32 to vector<8x32xf32>
    %321 = arith.addf %320, %319 : vector<8x32xf32>
    %322 = arith.divf %320, %321 : vector<8x32xf32>
    %323 = vector.extract_strided_slice %310 {offsets = [0, 64], sizes = [8, 32], strides = [1, 1]} : vector<8x128xf32> to vector<8x32xf32>
    %324 = math.tanh %323 : vector<8x32xf32>
    %325 = vector.extract_strided_slice %310 {offsets = [0, 96], sizes = [8, 32], strides = [1, 1]} : vector<8x128xf32> to vector<8x32xf32>
    %326 = arith.negf %325 : vector<8x32xf32>
    %327 = math.exp %326 : vector<8x32xf32>
    %cst_76 = arith.constant 1.000000e+00 : f32
    %328 = vector.broadcast %cst_76 : f32 to vector<8x32xf32>
    %329 = arith.addf %328, %327 : vector<8x32xf32>
    %330 = arith.divf %328, %329 : vector<8x32xf32>
    %331 = arith.mulf %322, %273 : vector<8x32xf32>
    %332 = arith.mulf %316, %324 : vector<8x32xf32>
    %333 = arith.addf %331, %332 : vector<8x32xf32>
    %334 = math.tanh %333 : vector<8x32xf32>
    %335 = arith.mulf %330, %334 : vector<8x32xf32>
    %336 = vector.extract_strided_slice %309 {offsets = [0, 128], sizes = [8, 128], strides = [1, 1]} : vector<8x256xf32> to vector<8x128xf32>
    %337 = vector.extract_strided_slice %336 {offsets = [0, 0], sizes = [8, 32], strides = [1, 1]} : vector<8x128xf32> to vector<8x32xf32>
    %338 = arith.negf %337 : vector<8x32xf32>
    %339 = math.exp %338 : vector<8x32xf32>
    %cst_77 = arith.constant 1.000000e+00 : f32
    %340 = vector.broadcast %cst_77 : f32 to vector<8x32xf32>
    %341 = arith.addf %340, %339 : vector<8x32xf32>
    %342 = arith.divf %340, %341 : vector<8x32xf32>
    %343 = vector.extract_strided_slice %336 {offsets = [0, 32], sizes = [8, 32], strides = [1, 1]} : vector<8x128xf32> to vector<8x32xf32>
    %344 = arith.negf %343 : vector<8x32xf32>
    %345 = math.exp %344 : vector<8x32xf32>
    %cst_78 = arith.constant 1.000000e+00 : f32
    %346 = vector.broadcast %cst_78 : f32 to vector<8x32xf32>
    %347 = arith.addf %346, %345 : vector<8x32xf32>
    %348 = arith.divf %346, %347 : vector<8x32xf32>
    %349 = vector.extract_strided_slice %336 {offsets = [0, 64], sizes = [8, 32], strides = [1, 1]} : vector<8x128xf32> to vector<8x32xf32>
    %350 = math.tanh %349 : vector<8x32xf32>
    %351 = vector.extract_strided_slice %336 {offsets = [0, 96], sizes = [8, 32], strides = [1, 1]} : vector<8x128xf32> to vector<8x32xf32>
    %352 = arith.negf %351 : vector<8x32xf32>
    %353 = math.exp %352 : vector<8x32xf32>
    %cst_79 = arith.constant 1.000000e+00 : f32
    %354 = vector.broadcast %cst_79 : f32 to vector<8x32xf32>
    %355 = arith.addf %354, %353 : vector<8x32xf32>
    %356 = arith.divf %354, %355 : vector<8x32xf32>
    %357 = arith.mulf %348, %299 : vector<8x32xf32>
    %358 = arith.mulf %342, %350 : vector<8x32xf32>
    %359 = arith.addf %357, %358 : vector<8x32xf32>
    %360 = math.tanh %359 : vector<8x32xf32>
    %361 = arith.mulf %356, %360 : vector<8x32xf32>
    %c0_80 = arith.constant 0 : index
    %c320 = arith.constant 320 : index
    %362 = vector.load %arg17[%c0_80, %c320] : memref<8x512xf32, #tpu.memory_space<vmem>>, vector<8x32xf32>
    tpu.vector_store %arg17[%c0_80, %c320], %335 {strides = array<i32>} : memref<8x512xf32, #tpu.memory_space<vmem>>, vector<8x32xf32>,
    %c0_81 = arith.constant 0 : index
    %c160 = arith.constant 160 : index
    %363 = vector.load %arg17[%c0_81, %c160] : memref<8x512xf32, #tpu.memory_space<vmem>>, vector<8x32xf32>
    tpu.vector_store %arg17[%c0_81, %c160], %361 {strides = array<i32>} : memref<8x512xf32, #tpu.memory_space<vmem>>, vector<8x32xf32>,
    %364 = tpu.concatenate %335, %361 in 1 : vector<8x32xf32>, vector<8x32xf32> -> vector<8x64xf32>
    %c6 = arith.constant 6 : index
    %c0_82 = arith.constant 0 : index
    %c0_83 = arith.constant 0 : index
    %365 = vector.load %arg0[%c6, %c0_82, %c0_83] : memref<8x8x256xf32, #tpu.memory_space<vmem>>, vector<1x8x256xf32>
    %366 = vector.shape_cast %365 : vector<1x8x256xf32> to vector<8x256xf32>
    %c0_84 = arith.constant 0 : index
    %c0_85 = arith.constant 0 : index
    %367 = vector.load %arg1[%c0_84, %c0_85] : memref<64x256xf32, #tpu.memory_space<vmem>>, vector<64x256xf32>
    %cst_86 = arith.constant dense<0.000000e+00> : vector<8x256xf32>
    %368 = tpu.matmul %364, %367, %cst_86 {dimension_numbers = #tpu.dot_dimension_numbers<[1], [0], [0], [1], [0, 0, 1, 1], [], []>} : vector<8x64xf32>, vector<64x256xf32>, vector<8x256xf32> -> vector<8x256xf32>
    %369 = arith.addf %366, %368 : vector<8x256xf32>
    %370 = vector.extract_strided_slice %369 {offsets = [0, 0], sizes = [8, 128], strides = [1, 1]} : vector<8x256xf32> to vector<8x128xf32>
    %371 = vector.extract_strided_slice %370 {offsets = [0, 0], sizes = [8, 32], strides = [1, 1]} : vector<8x128xf32> to vector<8x32xf32>
    %372 = arith.negf %371 : vector<8x32xf32>
    %373 = math.exp %372 : vector<8x32xf32>
    %cst_87 = arith.constant 1.000000e+00 : f32
    %374 = vector.broadcast %cst_87 : f32 to vector<8x32xf32>
    %375 = arith.addf %374, %373 : vector<8x32xf32>
    %376 = arith.divf %374, %375 : vector<8x32xf32>
    %377 = vector.extract_strided_slice %370 {offsets = [0, 32], sizes = [8, 32], strides = [1, 1]} : vector<8x128xf32> to vector<8x32xf32>
    %378 = arith.negf %377 : vector<8x32xf32>
    %379 = math.exp %378 : vector<8x32xf32>
    %cst_88 = arith.constant 1.000000e+00 : f32
    %380 = vector.broadcast %cst_88 : f32 to vector<8x32xf32>
    %381 = arith.addf %380, %379 : vector<8x32xf32>
    %382 = arith.divf %380, %381 : vector<8x32xf32>
    %383 = vector.extract_strided_slice %370 {offsets = [0, 64], sizes = [8, 32], strides = [1, 1]} : vector<8x128xf32> to vector<8x32xf32>
    %384 = math.tanh %383 : vector<8x32xf32>
    %385 = vector.extract_strided_slice %370 {offsets = [0, 96], sizes = [8, 32], strides = [1, 1]} : vector<8x128xf32> to vector<8x32xf32>
    %386 = arith.negf %385 : vector<8x32xf32>
    %387 = math.exp %386 : vector<8x32xf32>
    %cst_89 = arith.constant 1.000000e+00 : f32
    %388 = vector.broadcast %cst_89 : f32 to vector<8x32xf32>
    %389 = arith.addf %388, %387 : vector<8x32xf32>
    %390 = arith.divf %388, %389 : vector<8x32xf32>
    %391 = arith.mulf %382, %333 : vector<8x32xf32>
    %392 = arith.mulf %376, %384 : vector<8x32xf32>
    %393 = arith.addf %391, %392 : vector<8x32xf32>
    %394 = math.tanh %393 : vector<8x32xf32>
    %395 = arith.mulf %390, %394 : vector<8x32xf32>
    %396 = vector.extract_strided_slice %369 {offsets = [0, 128], sizes = [8, 128], strides = [1, 1]} : vector<8x256xf32> to vector<8x128xf32>
    %397 = vector.extract_strided_slice %396 {offsets = [0, 0], sizes = [8, 32], strides = [1, 1]} : vector<8x128xf32> to vector<8x32xf32>
    %398 = arith.negf %397 : vector<8x32xf32>
    %399 = math.exp %398 : vector<8x32xf32>
    %cst_90 = arith.constant 1.000000e+00 : f32
    %400 = vector.broadcast %cst_90 : f32 to vector<8x32xf32>
    %401 = arith.addf %400, %399 : vector<8x32xf32>
    %402 = arith.divf %400, %401 : vector<8x32xf32>
    %403 = vector.extract_strided_slice %396 {offsets = [0, 32], sizes = [8, 32], strides = [1, 1]} : vector<8x128xf32> to vector<8x32xf32>
    %404 = arith.negf %403 : vector<8x32xf32>
    %405 = math.exp %404 : vector<8x32xf32>
    %cst_91 = arith.constant 1.000000e+00 : f32
    %406 = vector.broadcast %cst_91 : f32 to vector<8x32xf32>
    %407 = arith.addf %406, %405 : vector<8x32xf32>
    %408 = arith.divf %406, %407 : vector<8x32xf32>
    %409 = vector.extract_strided_slice %396 {offsets = [0, 64], sizes = [8, 32], strides = [1, 1]} : vector<8x128xf32> to vector<8x32xf32>
    %410 = math.tanh %409 : vector<8x32xf32>
    %411 = vector.extract_strided_slice %396 {offsets = [0, 96], sizes = [8, 32], strides = [1, 1]} : vector<8x128xf32> to vector<8x32xf32>
    %412 = arith.negf %411 : vector<8x32xf32>
    %413 = math.exp %412 : vector<8x32xf32>
    %cst_92 = arith.constant 1.000000e+00 : f32
    %414 = vector.broadcast %cst_92 : f32 to vector<8x32xf32>
    %415 = arith.addf %414, %413 : vector<8x32xf32>
    %416 = arith.divf %414, %415 : vector<8x32xf32>
    %417 = arith.mulf %408, %359 : vector<8x32xf32>
    %418 = arith.mulf %402, %410 : vector<8x32xf32>
    %419 = arith.addf %417, %418 : vector<8x32xf32>
    %420 = math.tanh %419 : vector<8x32xf32>
    %421 = arith.mulf %416, %420 : vector<8x32xf32>
    %c0_93 = arith.constant 0 : index
    %c384 = arith.constant 384 : index
    %422 = vector.load %arg17[%c0_93, %c384] : memref<8x512xf32, #tpu.memory_space<vmem>>, vector<8x32xf32>
    tpu.vector_store %arg17[%c0_93, %c384], %395 {strides = array<i32>} : memref<8x512xf32, #tpu.memory_space<vmem>>, vector<8x32xf32>,
    %c0_94 = arith.constant 0 : index
    %c96 = arith.constant 96 : index
    %423 = vector.load %arg17[%c0_94, %c96] : memref<8x512xf32, #tpu.memory_space<vmem>>, vector<8x32xf32>
    tpu.vector_store %arg17[%c0_94, %c96], %421 {strides = array<i32>} : memref<8x512xf32, #tpu.memory_space<vmem>>, vector<8x32xf32>,
    %424 = tpu.concatenate %395, %421 in 1 : vector<8x32xf32>, vector<8x32xf32> -> vector<8x64xf32>
    %c7 = arith.constant 7 : index
    %c0_95 = arith.constant 0 : index
    %c0_96 = arith.constant 0 : index
    %425 = vector.load %arg0[%c7, %c0_95, %c0_96] : memref<8x8x256xf32, #tpu.memory_space<vmem>>, vector<1x8x256xf32>
    %426 = vector.shape_cast %425 : vector<1x8x256xf32> to vector<8x256xf32>
    %c0_97 = arith.constant 0 : index
    %c0_98 = arith.constant 0 : index
    %427 = vector.load %arg1[%c0_97, %c0_98] : memref<64x256xf32, #tpu.memory_space<vmem>>, vector<64x256xf32>
    %cst_99 = arith.constant dense<0.000000e+00> : vector<8x256xf32>
    %428 = tpu.matmul %424, %427, %cst_99 {dimension_numbers = #tpu.dot_dimension_numbers<[1], [0], [0], [1], [0, 0, 1, 1], [], []>} : vector<8x64xf32>, vector<64x256xf32>, vector<8x256xf32> -> vector<8x256xf32>
    %429 = arith.addf %426, %428 : vector<8x256xf32>
    %430 = vector.extract_strided_slice %429 {offsets = [0, 0], sizes = [8, 128], strides = [1, 1]} : vector<8x256xf32> to vector<8x128xf32>
    %431 = vector.extract_strided_slice %430 {offsets = [0, 0], sizes = [8, 32], strides = [1, 1]} : vector<8x128xf32> to vector<8x32xf32>
    %432 = arith.negf %431 : vector<8x32xf32>
    %433 = math.exp %432 : vector<8x32xf32>
    %cst_100 = arith.constant 1.000000e+00 : f32
    %434 = vector.broadcast %cst_100 : f32 to vector<8x32xf32>
    %435 = arith.addf %434, %433 : vector<8x32xf32>
    %436 = arith.divf %434, %435 : vector<8x32xf32>
    %437 = vector.extract_strided_slice %430 {offsets = [0, 32], sizes = [8, 32], strides = [1, 1]} : vector<8x128xf32> to vector<8x32xf32>
    %438 = arith.negf %437 : vector<8x32xf32>
    %439 = math.exp %438 : vector<8x32xf32>
    %cst_101 = arith.constant 1.000000e+00 : f32
    %440 = vector.broadcast %cst_101 : f32 to vector<8x32xf32>
    %441 = arith.addf %440, %439 : vector<8x32xf32>
    %442 = arith.divf %440, %441 : vector<8x32xf32>
    %443 = vector.extract_strided_slice %430 {offsets = [0, 64], sizes = [8, 32], strides = [1, 1]} : vector<8x128xf32> to vector<8x32xf32>
    %444 = math.tanh %443 : vector<8x32xf32>
    %445 = vector.extract_strided_slice %430 {offsets = [0, 96], sizes = [8, 32], strides = [1, 1]} : vector<8x128xf32> to vector<8x32xf32>
    %446 = arith.negf %445 : vector<8x32xf32>
    %447 = math.exp %446 : vector<8x32xf32>
    %cst_102 = arith.constant 1.000000e+00 : f32
    %448 = vector.broadcast %cst_102 : f32 to vector<8x32xf32>
    %449 = arith.addf %448, %447 : vector<8x32xf32>
    %450 = arith.divf %448, %449 : vector<8x32xf32>
    %451 = arith.mulf %442, %393 : vector<8x32xf32>
    %452 = arith.mulf %436, %444 : vector<8x32xf32>
    %453 = arith.addf %451, %452 : vector<8x32xf32>
    %454 = math.tanh %453 : vector<8x32xf32>
    %455 = arith.mulf %450, %454 : vector<8x32xf32>
    %456 = vector.extract_strided_slice %429 {offsets = [0, 128], sizes = [8, 128], strides = [1, 1]} : vector<8x256xf32> to vector<8x128xf32>
    %457 = vector.extract_strided_slice %456 {offsets = [0, 0], sizes = [8, 32], strides = [1, 1]} : vector<8x128xf32> to vector<8x32xf32>
    %458 = arith.negf %457 : vector<8x32xf32>
    %459 = math.exp %458 : vector<8x32xf32>
    %cst_103 = arith.constant 1.000000e+00 : f32
    %460 = vector.broadcast %cst_103 : f32 to vector<8x32xf32>
    %461 = arith.addf %460, %459 : vector<8x32xf32>
    %462 = arith.divf %460, %461 : vector<8x32xf32>
    %463 = vector.extract_strided_slice %456 {offsets = [0, 32], sizes = [8, 32], strides = [1, 1]} : vector<8x128xf32> to vector<8x32xf32>
    %464 = arith.negf %463 : vector<8x32xf32>
    %465 = math.exp %464 : vector<8x32xf32>
    %cst_104 = arith.constant 1.000000e+00 : f32
    %466 = vector.broadcast %cst_104 : f32 to vector<8x32xf32>
    %467 = arith.addf %466, %465 : vector<8x32xf32>
    %468 = arith.divf %466, %467 : vector<8x32xf32>
    %469 = vector.extract_strided_slice %456 {offsets = [0, 64], sizes = [8, 32], strides = [1, 1]} : vector<8x128xf32> to vector<8x32xf32>
    %470 = math.tanh %469 : vector<8x32xf32>
    %471 = vector.extract_strided_slice %456 {offsets = [0, 96], sizes = [8, 32], strides = [1, 1]} : vector<8x128xf32> to vector<8x32xf32>
    %472 = arith.negf %471 : vector<8x32xf32>
    %473 = math.exp %472 : vector<8x32xf32>
    %cst_105 = arith.constant 1.000000e+00 : f32
    %474 = vector.broadcast %cst_105 : f32 to vector<8x32xf32>
    %475 = arith.addf %474, %473 : vector<8x32xf32>
    %476 = arith.divf %474, %475 : vector<8x32xf32>
    %477 = arith.mulf %468, %419 : vector<8x32xf32>
    %478 = arith.mulf %462, %470 : vector<8x32xf32>
    %479 = arith.addf %477, %478 : vector<8x32xf32>
    %480 = math.tanh %479 : vector<8x32xf32>
    %481 = arith.mulf %476, %480 : vector<8x32xf32>
    %c0_106 = arith.constant 0 : index
    %c448 = arith.constant 448 : index
    %482 = vector.load %arg17[%c0_106, %c448] : memref<8x512xf32, #tpu.memory_space<vmem>>, vector<8x32xf32>
    tpu.vector_store %arg17[%c0_106, %c448], %455 {strides = array<i32>} : memref<8x512xf32, #tpu.memory_space<vmem>>, vector<8x32xf32>,
    %c0_107 = arith.constant 0 : index
    %c32 = arith.constant 32 : index
    %483 = vector.load %arg17[%c0_107, %c32] : memref<8x512xf32, #tpu.memory_space<vmem>>, vector<8x32xf32>
    tpu.vector_store %arg17[%c0_107, %c32], %481 {strides = array<i32>} : memref<8x512xf32, #tpu.memory_space<vmem>>, vector<8x32xf32>,
    %c0_108 = arith.constant 0 : index
    %c0_109 = arith.constant 0 : index
    %484 = vector.load %arg17[%c0_108, %c0_109] : memref<8x512xf32, #tpu.memory_space<vmem>>, vector<8x512xf32>
    %c0_110 = arith.constant 0 : index
    %c0_111 = arith.constant 0 : index
    %485 = vector.load %arg2[%c0_110, %c0_111] : memref<512x512xf32, #tpu.memory_space<vmem>>, vector<512x512xf32>
    %cst_112 = arith.constant dense<0.000000e+00> : vector<8x512xf32>
    %486 = tpu.matmul %484, %485, %cst_112 {dimension_numbers = #tpu.dot_dimension_numbers<[1], [0], [0], [1], [0, 0, 1, 1], [], []>} : vector<8x512xf32>, vector<512x512xf32>, vector<8x512xf32> -> vector<8x512xf32>
    %c0_113 = arith.constant 0 : index
    %c0_114 = arith.constant 0 : index
    %487 = vector.load %arg18[%c0_113, %c0_114] : memref<8x512xf32, #tpu.memory_space<vmem>>, vector<8x512xf32>
    tpu.vector_store %arg18[%c0_113, %c0_114], %486 {strides = array<i32>} : memref<8x512xf32, #tpu.memory_space<vmem>>, vector<8x512xf32>,
    %c6_115 = arith.constant 6 : index
    %c0_116 = arith.constant 0 : index
    %488 = vector.load %arg15[%c6_115, %c0_116] : memref<8x128xf32, #tpu.memory_space<vmem>>, vector<1x32xf32>
    %489 = vector.extract_strided_slice %455 {offsets = [0, 0], sizes = [1, 32], strides = [1, 1]} : vector<8x32xf32> to vector<1x32xf32>
    %490 = vector.extract_strided_slice %455 {offsets = [1, 0], sizes = [1, 32], strides = [1, 1]} : vector<8x32xf32> to vector<1x32xf32>
    %491 = vector.extract_strided_slice %481 {offsets = [0, 0], sizes = [1, 32], strides = [1, 1]} : vector<8x32xf32> to vector<1x32xf32>
    %492 = vector.extract_strided_slice %481 {offsets = [1, 0], sizes = [1, 32], strides = [1, 1]} : vector<8x32xf32> to vector<1x32xf32>
    %493 = tpu.iota {dimensions = array<i32: 0>} : vector<8x64xi32>
    %cst_117 = arith.constant 0.000000e+00 : f32
    %494 = vector.broadcast %cst_117 : f32 to vector<8x64xf32>
    %495 = tpu.concatenate %489, %490 in 1 : vector<1x32xf32>, vector<1x32xf32> -> vector<1x64xf32>
    %c0_i32 = arith.constant 0 : i32
    %496 = vector.broadcast %c0_i32 : i32 to vector<8x64xi32>
    %497 = arith.cmpi eq, %493, %496 : vector<8x64xi32>
    %498 = vector.shape_cast %495 : vector<1x64xf32> to vector<1x64xf32>
    %499 = vector.broadcast %498 : vector<1x64xf32> to vector<8x64xf32>
    %500 = arith.select %497, %499, %494 : vector<8x64xi1>, vector<8x64xf32>
    %501 = tpu.concatenate %491, %492 in 1 : vector<1x32xf32>, vector<1x32xf32> -> vector<1x64xf32>
    %c1_i32 = arith.constant 1 : i32
    %502 = vector.broadcast %c1_i32 : i32 to vector<8x64xi32>
    %503 = arith.cmpi eq, %493, %502 : vector<8x64xi32>
    %504 = vector.shape_cast %501 : vector<1x64xf32> to vector<1x64xf32>
    %505 = vector.broadcast %504 : vector<1x64xf32> to vector<8x64xf32>
    %506 = arith.select %503, %505, %500 : vector<8x64xi1>, vector<8x64xf32>
    %c0_118 = arith.constant 0 : index
    %c0_119 = arith.constant 0 : index
    %507 = vector.load %arg3[%c0_118, %c0_119] : memref<64x32xf32, #tpu.memory_space<vmem>>, vector<64x32xf32>
    %cst_120 = arith.constant dense<0.000000e+00> : vector<8x32xf32>
    %508 = tpu.matmul %506, %507, %cst_120 {dimension_numbers = #tpu.dot_dimension_numbers<[1], [0], [0], [1], [0, 0, 1, 1], [], []>} : vector<8x64xf32>, vector<64x32xf32>, vector<8x32xf32> -> vector<8x32xf32>
    %509 = vector.broadcast %488 : vector<1x32xf32> to vector<8x32xf32>
    %510 = arith.addf %508, %509 : vector<8x32xf32>
    %cst_121 = arith.constant 0.000000e+00 : f32
    %511 = vector.broadcast %cst_121 : f32 to vector<8x32xf32>
    %512 = arith.maximumf %510, %511 : vector<8x32xf32>
    %c7_122 = arith.constant 7 : index
    %c0_123 = arith.constant 0 : index
    %513 = vector.load %arg15[%c7_122, %c0_123] : memref<8x128xf32, #tpu.memory_space<vmem>>, vector<1x32xf32>
    %514 = vector.extract_strided_slice %453 {offsets = [0, 0], sizes = [1, 32], strides = [1, 1]} : vector<8x32xf32> to vector<1x32xf32>
    %515 = vector.extract_strided_slice %453 {offsets = [1, 0], sizes = [1, 32], strides = [1, 1]} : vector<8x32xf32> to vector<1x32xf32>
    %516 = vector.extract_strided_slice %479 {offsets = [0, 0], sizes = [1, 32], strides = [1, 1]} : vector<8x32xf32> to vector<1x32xf32>
    %517 = vector.extract_strided_slice %479 {offsets = [1, 0], sizes = [1, 32], strides = [1, 1]} : vector<8x32xf32> to vector<1x32xf32>
    %518 = tpu.iota {dimensions = array<i32: 0>} : vector<8x64xi32>
    %cst_124 = arith.constant 0.000000e+00 : f32
    %519 = vector.broadcast %cst_124 : f32 to vector<8x64xf32>
    %520 = tpu.concatenate %514, %515 in 1 : vector<1x32xf32>, vector<1x32xf32> -> vector<1x64xf32>
    %c0_i32_125 = arith.constant 0 : i32
    %521 = vector.broadcast %c0_i32_125 : i32 to vector<8x64xi32>
    %522 = arith.cmpi eq, %518, %521 : vector<8x64xi32>
    %523 = vector.shape_cast %520 : vector<1x64xf32> to vector<1x64xf32>
    %524 = vector.broadcast %523 : vector<1x64xf32> to vector<8x64xf32>
    %525 = arith.select %522, %524, %519 : vector<8x64xi1>, vector<8x64xf32>
    %526 = tpu.concatenate %516, %517 in 1 : vector<1x32xf32>, vector<1x32xf32> -> vector<1x64xf32>
    %c1_i32_126 = arith.constant 1 : i32
    %527 = vector.broadcast %c1_i32_126 : i32 to vector<8x64xi32>
    %528 = arith.cmpi eq, %518, %527 : vector<8x64xi32>
    %529 = vector.shape_cast %526 : vector<1x64xf32> to vector<1x64xf32>
    %530 = vector.broadcast %529 : vector<1x64xf32> to vector<8x64xf32>
    %531 = arith.select %528, %530, %525 : vector<8x64xi1>, vector<8x64xf32>
    %c0_127 = arith.constant 0 : index
    %c0_128 = arith.constant 0 : index
    %532 = vector.load %arg4[%c0_127, %c0_128] : memref<64x32xf32, #tpu.memory_space<vmem>>, vector<64x32xf32>
    %cst_129 = arith.constant dense<0.000000e+00> : vector<8x32xf32>
    %533 = tpu.matmul %531, %532, %cst_129 {dimension_numbers = #tpu.dot_dimension_numbers<[1], [0], [0], [1], [0, 0, 1, 1], [], []>} : vector<8x64xf32>, vector<64x32xf32>, vector<8x32xf32> -> vector<8x32xf32>
    %534 = vector.broadcast %513 : vector<1x32xf32> to vector<8x32xf32>
    %535 = arith.addf %533, %534 : vector<8x32xf32>
    %cst_130 = arith.constant 0.000000e+00 : f32
    %536 = vector.broadcast %cst_130 : f32 to vector<8x32xf32>
    %537 = arith.maximumf %535, %536 : vector<8x32xf32>
    %c0_131 = arith.constant 0 : index
    %c0_132 = arith.constant 0 : index
    %538 = vector.load %arg6[%c0_131, %c0_132] : memref<8x64xf32, #tpu.memory_space<vmem>>, vector<8x64xf32>
    %539 = tpu.concatenate %512, %537, %538 in 1 : vector<8x32xf32>, vector<8x32xf32>, vector<8x64xf32> -> vector<8x128xf32>
    %c0_133 = arith.constant 0 : index
    %c0_134 = arith.constant 0 : index
    %540 = vector.load %arg19[%c0_133, %c0_134] : memref<8x128xf32, #tpu.memory_space<vmem>>, vector<8x128xf32>
    tpu.vector_store %arg19[%c0_133, %c0_134], %539 {strides = array<i32>} : memref<8x128xf32, #tpu.memory_space<vmem>>, vector<8x128xf32>,
    %cst_135 = arith.constant 0.000000e+00 : f32
    %541 = vector.broadcast %cst_135 : f32 to vector<8x1xf32>
    %c0_136 = arith.constant 0 : index
    %c0_137 = arith.constant 0 : index
    %542 = vector.load %arg20[%c0_136, %c0_137] : memref<8x1xf32, #tpu.memory_space<vmem>>, vector<8x1xf32>
    tpu.vector_store %arg20[%c0_136, %c0_137], %541 {strides = array<i32>} : memref<8x1xf32, #tpu.memory_space<vmem>>, vector<8x1xf32>,
    %c0_i32_138 = arith.constant 0 : i32
    %c6_i32 = arith.constant 6 : i32
    %543 = arith.addi %c0_i32_138, %c6_i32 : i32
    %c1_i32_139 = arith.constant 1 : i32
    scf.for %arg21 = %c0_i32_138 to %543 step %c1_i32_139  : i32 {
      %c1_i32_147 = arith.constant 1 : i32
      %552 = arith.muli %arg21, %c1_i32_147 : i32
      %c0_i32_148 = arith.constant 0 : i32
      %553 = arith.addi %c0_i32_148, %552 : i32
      %c0_149 = arith.constant 0 : index
      %c0_150 = arith.constant 0 : index
      %554 = vector.load %arg19[%c0_149, %c0_150] : memref<8x128xf32, #tpu.memory_space<vmem>>, vector<8x32xf32>
      %c0_151 = arith.constant 0 : index
      %c32_152 = arith.constant 32 : index
      %555 = vector.load %arg19[%c0_151, %c32_152] : memref<8x128xf32, #tpu.memory_space<vmem>>, vector<8x32xf32>
      %c0_153 = arith.constant 0 : index
      %c64_154 = arith.constant 64 : index
      %556 = vector.load %arg19[%c0_153, %c64_154] : memref<8x128xf32, #tpu.memory_space<vmem>>, vector<8x64xf32>
      %557 = tpu.concatenate %556, %554 in 1 : vector<8x64xf32>, vector<8x32xf32> -> vector<8x96xf32>
      %c0_155 = arith.constant 0 : index
      %c0_156 = arith.constant 0 : index
      %558 = vector.load %arg8[%c0_155, %c0_156] : memref<96x128xf32, #tpu.memory_space<vmem>>, vector<96x128xf32>
      %cst_157 = arith.constant dense<0.000000e+00> : vector<8x128xf32>
      %559 = tpu.matmul %557, %558, %cst_157 {dimension_numbers = #tpu.dot_dimension_numbers<[1], [0], [0], [1], [0, 0, 1, 1], [], []>} : vector<8x96xf32>, vector<96x128xf32>, vector<8x128xf32> -> vector<8x128xf32>
      %560 = arith.index_cast %553 : i32 to index
      %c0_158 = arith.constant 0 : index
      %c0_159 = arith.constant 0 : index
      %561 = vector.load %arg7[%560, %c0_158, %c0_159] : memref<6x8x128xf32, #tpu.memory_space<vmem>>, vector<1x8x128xf32>
      %562 = vector.shape_cast %561 : vector<1x8x128xf32> to vector<8x128xf32>
      %563 = arith.addf %559, %562 : vector<8x128xf32>
      %564 = vector.extract_strided_slice %563 {offsets = [0, 0], sizes = [8, 32], strides = [1, 1]} : vector<8x128xf32> to vector<8x32xf32>
      %565 = arith.negf %564 : vector<8x32xf32>
      %566 = math.exp %565 : vector<8x32xf32>
      %cst_160 = arith.constant 1.000000e+00 : f32
      %567 = vector.broadcast %cst_160 : f32 to vector<8x32xf32>
      %568 = arith.addf %567, %566 : vector<8x32xf32>
      %569 = arith.divf %567, %568 : vector<8x32xf32>
      %570 = vector.extract_strided_slice %563 {offsets = [0, 32], sizes = [8, 32], strides = [1, 1]} : vector<8x128xf32> to vector<8x32xf32>
      %571 = arith.negf %570 : vector<8x32xf32>
      %572 = math.exp %571 : vector<8x32xf32>
      %cst_161 = arith.constant 1.000000e+00 : f32
      %573 = vector.broadcast %cst_161 : f32 to vector<8x32xf32>
      %574 = arith.addf %573, %572 : vector<8x32xf32>
      %575 = arith.divf %573, %574 : vector<8x32xf32>
      %576 = vector.extract_strided_slice %563 {offsets = [0, 64], sizes = [8, 32], strides = [1, 1]} : vector<8x128xf32> to vector<8x32xf32>
      %577 = math.tanh %576 : vector<8x32xf32>
      %578 = vector.extract_strided_slice %563 {offsets = [0, 96], sizes = [8, 32], strides = [1, 1]} : vector<8x128xf32> to vector<8x32xf32>
      %579 = arith.negf %578 : vector<8x32xf32>
      %580 = math.exp %579 : vector<8x32xf32>
      %cst_162 = arith.constant 1.000000e+00 : f32
      %581 = vector.broadcast %cst_162 : f32 to vector<8x32xf32>
      %582 = arith.addf %581, %580 : vector<8x32xf32>
      %583 = arith.divf %581, %582 : vector<8x32xf32>
      %584 = arith.mulf %575, %555 : vector<8x32xf32>
      %585 = arith.mulf %569, %577 : vector<8x32xf32>
      %586 = arith.addf %584, %585 : vector<8x32xf32>
      %587 = math.tanh %586 : vector<8x32xf32>
      %588 = arith.mulf %583, %587 : vector<8x32xf32>
      %589 = tpu.concatenate %588, %586 in 1 : vector<8x32xf32>, vector<8x32xf32> -> vector<8x64xf32>
      %c0_163 = arith.constant 0 : index
      %c0_164 = arith.constant 0 : index
      %590 = vector.load %arg9[%c0_163, %c0_164] : memref<64x64xf32, #tpu.memory_space<vmem>>, vector<64x64xf32>
      %cst_165 = arith.constant dense<0.000000e+00> : vector<8x64xf32>
      %591 = tpu.matmul %589, %590, %cst_165 {dimension_numbers = #tpu.dot_dimension_numbers<[1], [0], [0], [1], [0, 0, 1, 1], [], []>} : vector<8x64xf32>, vector<64x64xf32>, vector<8x64xf32> -> vector<8x64xf32>
      %592 = tpu.concatenate %591, %591, %591, %591, %591, %591, %591, %591 in 1 : vector<8x64xf32>, vector<8x64xf32>, vector<8x64xf32>, vector<8x64xf32>, vector<8x64xf32>, vector<8x64xf32>, vector<8x64xf32>, vector<8x64xf32> -> vector<8x512xf32>
      %c0_166 = arith.constant 0 : index
      %c0_167 = arith.constant 0 : index
      %593 = vector.load %arg18[%c0_166, %c0_167] : memref<8x512xf32, #tpu.memory_space<vmem>>, vector<8x512xf32>
      %594 = arith.addf %593, %592 : vector<8x512xf32>
      %595 = math.tanh %594 : vector<8x512xf32>
      %c0_168 = arith.constant 0 : index
      %c0_169 = arith.constant 0 : index
      %596 = vector.load %arg10[%c0_168, %c0_169] : memref<512x8xf32, #tpu.memory_space<vmem>>, vector<512x8xf32>
      %cst_170 = arith.constant dense<0.000000e+00> : vector<8x8xf32>
      %597 = tpu.matmul %595, %596, %cst_170 {dimension_numbers = #tpu.dot_dimension_numbers<[1], [0], [0], [1], [0, 0, 1, 1], [], []>} : vector<8x512xf32>, vector<512x8xf32>, vector<8x8xf32> -> vector<8x8xf32>
      %c0_171 = arith.constant 0 : index
      %c0_172 = arith.constant 0 : index
      %598 = vector.load %arg5[%c0_171, %c0_172] : memref<8x8xf32, #tpu.memory_space<vmem>>, vector<8x8xf32>
      %cst_173 = arith.constant 0.000000e+00 : f32
      %599 = vector.broadcast %cst_173 : f32 to vector<8x8xf32>
      %600 = arith.cmpf oeq, %598, %599 : vector<8x8xf32>
      %cst_174 = arith.constant -1.000000e+30 : f32
      %601 = vector.broadcast %cst_174 : f32 to vector<8x8xf32>
      %602 = arith.select %600, %601, %597 : vector<8x8xi1>, vector<8x8xf32>
      %cst_175 = arith.constant dense<0xFF800000> : vector<8xf32>
      %603 = vector.multi_reduction <maximumf>, %602, %cst_175 [1] : vector<8x8xf32> to vector<8xf32>
      %cst_176 = arith.constant 0xFF800000 : f32
      %604 = vector.broadcast %cst_176 : f32 to vector<8xf32>
      %605 = arith.maximumf %604, %603 : vector<8xf32>
      %606 = vector.shape_cast %605 : vector<8xf32> to vector<8x1xf32>
      %607 = vector.broadcast %606 : vector<8x1xf32> to vector<8x8xf32>
      %608 = arith.subf %602, %607 : vector<8x8xf32>
      %609 = math.exp %608 : vector<8x8xf32>
      %cst_177 = arith.constant dense<0.000000e+00> : vector<8xf32>
      %610 = vector.multi_reduction <add>, %609, %cst_177 [1] : vector<8x8xf32> to vector<8xf32>
      %611 = vector.shape_cast %610 : vector<8xf32> to vector<8x1xf32>
      %612 = vector.broadcast %611 : vector<8x1xf32> to vector<8x8xf32>
      %613 = arith.divf %609, %612 : vector<8x8xf32>
      %cst_178 = arith.constant 0.000000e+00 : f32
      %614 = vector.broadcast %cst_178 : f32 to vector<8x64xf32>
      %615 = vector.extract_strided_slice %613 {offsets = [0, 0], sizes = [8, 1], strides = [1, 1]} : vector<8x8xf32> to vector<8x1xf32>
      %c0_179 = arith.constant 0 : index
      %c0_180 = arith.constant 0 : index
      %616 = vector.load %arg17[%c0_179, %c0_180] : memref<8x512xf32, #tpu.memory_space<vmem>>, vector<8x64xf32>
      %617 = vector.broadcast %615 : vector<8x1xf32> to vector<8x64xf32>
      %618 = arith.mulf %617, %616 : vector<8x64xf32>
      %619 = arith.addf %614, %618 : vector<8x64xf32>
      %620 = vector.extract_strided_slice %613 {offsets = [0, 1], sizes = [8, 1], strides = [1, 1]} : vector<8x8xf32> to vector<8x1xf32>
      %c0_181 = arith.constant 0 : index
      %c64_182 = arith.constant 64 : index
      %621 = vector.load %arg17[%c0_181, %c64_182] : memref<8x512xf32, #tpu.memory_space<vmem>>, vector<8x64xf32>
      %622 = vector.broadcast %620 : vector<8x1xf32> to vector<8x64xf32>
      %623 = arith.mulf %622, %621 : vector<8x64xf32>
      %624 = arith.addf %619, %623 : vector<8x64xf32>
      %625 = vector.extract_strided_slice %613 {offsets = [0, 2], sizes = [8, 1], strides = [1, 1]} : vector<8x8xf32> to vector<8x1xf32>
      %c0_183 = arith.constant 0 : index
      %c128_184 = arith.constant 128 : index
      %626 = vector.load %arg17[%c0_183, %c128_184] : memref<8x512xf32, #tpu.memory_space<vmem>>, vector<8x64xf32>
      %627 = vector.broadcast %625 : vector<8x1xf32> to vector<8x64xf32>
      %628 = arith.mulf %627, %626 : vector<8x64xf32>
      %629 = arith.addf %624, %628 : vector<8x64xf32>
      %630 = vector.extract_strided_slice %613 {offsets = [0, 3], sizes = [8, 1], strides = [1, 1]} : vector<8x8xf32> to vector<8x1xf32>
      %c0_185 = arith.constant 0 : index
      %c192_186 = arith.constant 192 : index
      %631 = vector.load %arg17[%c0_185, %c192_186] : memref<8x512xf32, #tpu.memory_space<vmem>>, vector<8x64xf32>
      %632 = vector.broadcast %630 : vector<8x1xf32> to vector<8x64xf32>
      %633 = arith.mulf %632, %631 : vector<8x64xf32>
      %634 = arith.addf %629, %633 : vector<8x64xf32>
      %635 = vector.extract_strided_slice %613 {offsets = [0, 4], sizes = [8, 1], strides = [1, 1]} : vector<8x8xf32> to vector<8x1xf32>
      %c0_187 = arith.constant 0 : index
      %c256_188 = arith.constant 256 : index
      %636 = vector.load %arg17[%c0_187, %c256_188] : memref<8x512xf32, #tpu.memory_space<vmem>>, vector<8x64xf32>
      %637 = vector.broadcast %635 : vector<8x1xf32> to vector<8x64xf32>
      %638 = arith.mulf %637, %636 : vector<8x64xf32>
      %639 = arith.addf %634, %638 : vector<8x64xf32>
      %640 = vector.extract_strided_slice %613 {offsets = [0, 5], sizes = [8, 1], strides = [1, 1]} : vector<8x8xf32> to vector<8x1xf32>
      %c0_189 = arith.constant 0 : index
      %c320_190 = arith.constant 320 : index
      %641 = vector.load %arg17[%c0_189, %c320_190] : memref<8x512xf32, #tpu.memory_space<vmem>>, vector<8x64xf32>
      %642 = vector.broadcast %640 : vector<8x1xf32> to vector<8x64xf32>
      %643 = arith.mulf %642, %641 : vector<8x64xf32>
      %644 = arith.addf %639, %643 : vector<8x64xf32>
      %645 = vector.extract_strided_slice %613 {offsets = [0, 6], sizes = [8, 1], strides = [1, 1]} : vector<8x8xf32> to vector<8x1xf32>
      %c0_191 = arith.constant 0 : index
      %c384_192 = arith.constant 384 : index
      %646 = vector.load %arg17[%c0_191, %c384_192] : memref<8x512xf32, #tpu.memory_space<vmem>>, vector<8x64xf32>
      %647 = vector.broadcast %645 : vector<8x1xf32> to vector<8x64xf32>
      %648 = arith.mulf %647, %646 : vector<8x64xf32>
      %649 = arith.addf %644, %648 : vector<8x64xf32>
      %650 = vector.extract_strided_slice %613 {offsets = [0, 7], sizes = [8, 1], strides = [1, 1]} : vector<8x8xf32> to vector<8x1xf32>
      %c0_193 = arith.constant 0 : index
      %c448_194 = arith.constant 448 : index
      %651 = vector.load %arg17[%c0_193, %c448_194] : memref<8x512xf32, #tpu.memory_space<vmem>>, vector<8x64xf32>
      %652 = vector.broadcast %650 : vector<8x1xf32> to vector<8x64xf32>
      %653 = arith.mulf %652, %651 : vector<8x64xf32>
      %654 = arith.addf %649, %653 : vector<8x64xf32>
      %655 = arith.index_cast %553 : i32 to index
      %c0_195 = arith.constant 0 : index
      %c0_196 = arith.constant 0 : index
      %656 = vector.load %arg14[%655, %c0_195, %c0_196] : memref<6x8x10xf32, #tpu.memory_space<vmem>>, vector<1x8x10xf32>
      %657 = vector.shape_cast %656 : vector<1x8x10xf32> to vector<8x10xf32>
      %658 = vector.extract_strided_slice %657 {offsets = [0, 0], sizes = [8, 1], strides = [1, 1]} : vector<8x10xf32> to vector<8x1xf32>
      %659 = vector.extract_strided_slice %657 {offsets = [0, 1], sizes = [8, 1], strides = [1, 1]} : vector<8x10xf32> to vector<8x1xf32>
      %660 = vector.extract_strided_slice %657 {offsets = [0, 2], sizes = [8, 8], strides = [1, 1]} : vector<8x10xf32> to vector<8x8xf32>
      %c0_197 = arith.constant 0 : index
      %c0_198 = arith.constant 0 : index
      %661 = vector.load %arg15[%c0_197, %c0_198] : memref<8x128xf32, #tpu.memory_space<vmem>>, vector<1x64xf32>
      %662 = vector.broadcast %661 : vector<1x64xf32> to vector<8x64xf32>
      %663 = arith.mulf %654, %662 : vector<8x64xf32>
      %cst_199 = arith.constant dense<0.000000e+00> : vector<8xf32>
      %664 = vector.multi_reduction <add>, %663, %cst_199 [1] : vector<8x64xf32> to vector<8xf32>
      %665 = vector.shape_cast %664 : vector<8xf32> to vector<8x1xf32>
      %c1_200 = arith.constant 1 : index
      %c0_201 = arith.constant 0 : index
      %666 = vector.load %arg15[%c1_200, %c0_201] : memref<8x128xf32, #tpu.memory_space<vmem>>, vector<1x64xf32>
      %667 = vector.broadcast %666 : vector<1x64xf32> to vector<8x64xf32>
      %668 = arith.mulf %589, %667 : vector<8x64xf32>
      %cst_202 = arith.constant dense<0.000000e+00> : vector<8xf32>
      %669 = vector.multi_reduction <add>, %668, %cst_202 [1] : vector<8x64xf32> to vector<8xf32>
      %670 = vector.shape_cast %669 : vector<8xf32> to vector<8x1xf32>
      %671 = arith.addf %665, %670 : vector<8x1xf32>
      %c2_203 = arith.constant 2 : index
      %c0_204 = arith.constant 0 : index
      %672 = vector.load %arg15[%c2_203, %c0_204] : memref<8x128xf32, #tpu.memory_space<vmem>>, vector<1x64xf32>
      %673 = vector.broadcast %672 : vector<1x64xf32> to vector<8x64xf32>
      %674 = arith.mulf %556, %673 : vector<8x64xf32>
      %cst_205 = arith.constant dense<0.000000e+00> : vector<8xf32>
      %675 = vector.multi_reduction <add>, %674, %cst_205 [1] : vector<8x64xf32> to vector<8xf32>
      %676 = vector.shape_cast %675 : vector<8xf32> to vector<8x1xf32>
      %677 = arith.addf %671, %676 : vector<8x1xf32>
      %678 = arith.addf %677, %658 : vector<8x1xf32>
      %c3_206 = arith.constant 3 : index
      %c0_207 = arith.constant 0 : index
      %679 = vector.load %arg15[%c3_206, %c0_207] : memref<8x128xf32, #tpu.memory_space<vmem>>, vector<1x1xf32>
      %680 = vector.broadcast %679 : vector<1x1xf32> to vector<8x1xf32>
      %681 = arith.addf %678, %680 : vector<8x1xf32>
      %682 = arith.negf %681 : vector<8x1xf32>
      %683 = math.exp %682 : vector<8x1xf32>
      %cst_208 = arith.constant 1.000000e+00 : f32
      %684 = vector.broadcast %cst_208 : f32 to vector<8x1xf32>
      %685 = arith.addf %684, %683 : vector<8x1xf32>
      %686 = arith.divf %684, %685 : vector<8x1xf32>
      %687 = tpu.concatenate %588, %654 in 1 : vector<8x32xf32>, vector<8x64xf32> -> vector<8x96xf32>
      %c0_209 = arith.constant 0 : index
      %c0_210 = arith.constant 0 : index
      %688 = vector.load %arg11[%c0_209, %c0_210] : memref<96x32xf32, #tpu.memory_space<vmem>>, vector<96x32xf32>
      %cst_211 = arith.constant dense<0.000000e+00> : vector<8x32xf32>
      %689 = tpu.matmul %687, %688, %cst_211 {dimension_numbers = #tpu.dot_dimension_numbers<[1], [0], [0], [1], [0, 0, 1, 1], [], []>} : vector<8x96xf32>, vector<96x32xf32>, vector<8x32xf32> -> vector<8x32xf32>
      %c4_212 = arith.constant 4 : index
      %c0_213 = arith.constant 0 : index
      %690 = vector.load %arg15[%c4_212, %c0_213] : memref<8x128xf32, #tpu.memory_space<vmem>>, vector<1x32xf32>
      %691 = vector.broadcast %690 : vector<1x32xf32> to vector<8x32xf32>
      %692 = arith.addf %689, %691 : vector<8x32xf32>
      %cst_214 = arith.constant 0.000000e+00 : f32
      %693 = vector.broadcast %cst_214 : f32 to vector<8x32xf32>
      %694 = arith.maximumf %692, %693 : vector<8x32xf32>
      %c0_215 = arith.constant 0 : index
      %c0_216 = arith.constant 0 : index
      %695 = vector.load %arg12[%c0_215, %c0_216] : memref<32x128xf32, #tpu.memory_space<vmem>>, vector<32x128xf32>
      %cst_217 = arith.constant dense<0.000000e+00> : vector<8x128xf32>
      %696 = tpu.matmul %694, %695, %cst_217 {dimension_numbers = #tpu.dot_dimension_numbers<[1], [0], [0], [1], [0, 0, 1, 1], [], []>} : vector<8x32xf32>, vector<32x128xf32>, vector<8x128xf32> -> vector<8x128xf32>
      %c5_218 = arith.constant 5 : index
      %c0_219 = arith.constant 0 : index
      %697 = vector.load %arg15[%c5_218, %c0_219] : memref<8x128xf32, #tpu.memory_space<vmem>>, vector<1x128xf32>
      %698 = vector.broadcast %697 : vector<1x128xf32> to vector<8x128xf32>
      %699 = arith.addf %696, %698 : vector<8x128xf32>
      %cst_220 = arith.constant dense<0xFF800000> : vector<8xf32>
      %700 = vector.multi_reduction <maximumf>, %699, %cst_220 [1] : vector<8x128xf32> to vector<8xf32>
      %701 = vector.shape_cast %700 : vector<8xf32> to vector<8x1xf32>
      %702 = vector.broadcast %701 : vector<8x1xf32> to vector<8x128xf32>
      %703 = arith.subf %699, %702 : vector<8x128xf32>
      %704 = math.exp %703 : vector<8x128xf32>
      %cst_221 = arith.constant dense<0.000000e+00> : vector<8xf32>
      %705 = vector.multi_reduction <add>, %704, %cst_221 [1] : vector<8x128xf32> to vector<8xf32>
      %706 = vector.shape_cast %705 : vector<8xf32> to vector<8x1xf32>
      %707 = arith.index_cast %553 : i32 to index
      %c0_222 = arith.constant 0 : index
      %c0_223 = arith.constant 0 : index
      %708 = vector.load %arg13[%707, %c0_222, %c0_223] : memref<6x8x128xf32, #tpu.memory_space<vmem>>, vector<1x8x128xf32>
      %709 = vector.shape_cast %708 : vector<1x8x128xf32> to vector<8x128xf32>
      %710 = arith.mulf %699, %709 : vector<8x128xf32>
      %cst_224 = arith.constant dense<0.000000e+00> : vector<8xf32>
      %711 = vector.multi_reduction <add>, %710, %cst_224 [1] : vector<8x128xf32> to vector<8xf32>
      %712 = vector.shape_cast %711 : vector<8xf32> to vector<8x1xf32>
      %713 = arith.subf %712, %701 : vector<8x1xf32>
      %714 = math.exp %713 : vector<8x1xf32>
      %715 = arith.mulf %686, %714 : vector<8x1xf32>
      %716 = arith.divf %715, %706 : vector<8x1xf32>
      %cst_225 = arith.constant 1.000000e+00 : f32
      %717 = vector.broadcast %cst_225 : f32 to vector<8x1xf32>
      %718 = arith.subf %717, %686 : vector<8x1xf32>
      %719 = arith.mulf %613, %660 : vector<8x8xf32>
      %cst_226 = arith.constant dense<0.000000e+00> : vector<8xf32>
      %720 = vector.multi_reduction <add>, %719, %cst_226 [1] : vector<8x8xf32> to vector<8xf32>
      %721 = vector.shape_cast %720 : vector<8xf32> to vector<8x1xf32>
      %722 = arith.mulf %718, %721 : vector<8x1xf32>
      %723 = arith.addf %716, %722 : vector<8x1xf32>
      %c0_227 = arith.constant 0 : index
      %c0_228 = arith.constant 0 : index
      %724 = vector.load %arg20[%c0_227, %c0_228] : memref<8x1xf32, #tpu.memory_space<vmem>>, vector<8x1xf32>
      %cst_229 = arith.constant 9.99999996E-13 : f32
      %725 = vector.broadcast %cst_229 : f32 to vector<8x1xf32>
      %726 = arith.addf %723, %725 : vector<8x1xf32>
      %727 = math.log %726 : vector<8x1xf32>
      %cst_230 = arith.constant 0.000000e+00 : f32
      %728 = vector.broadcast %cst_230 : f32 to vector<8x1xf32>
      %729 = arith.subf %728, %727 : vector<8x1xf32>
      %730 = arith.mulf %729, %659 : vector<8x1xf32>
      %731 = arith.addf %724, %730 : vector<8x1xf32>
      %c0_231 = arith.constant 0 : index
      %c0_232 = arith.constant 0 : index
      %732 = vector.load %arg20[%c0_231, %c0_232] : memref<8x1xf32, #tpu.memory_space<vmem>>, vector<8x1xf32>
      tpu.vector_store %arg20[%c0_231, %c0_232], %731 {strides = array<i32>} : memref<8x1xf32, #tpu.memory_space<vmem>>, vector<8x1xf32>,
      %733 = tpu.concatenate %588, %586, %654 in 1 : vector<8x32xf32>, vector<8x32xf32>, vector<8x64xf32> -> vector<8x128xf32>
      %c0_233 = arith.constant 0 : index
      %c0_234 = arith.constant 0 : index
      %734 = vector.load %arg19[%c0_233, %c0_234] : memref<8x128xf32, #tpu.memory_space<vmem>>, vector<8x128xf32>
      tpu.vector_store %arg19[%c0_233, %c0_234], %733 {strides = array<i32>} : memref<8x128xf32, #tpu.memory_space<vmem>>, vector<8x128xf32>,
    }
    %c6_i32_140 = arith.constant 6 : i32
    %c0_141 = arith.constant 0 : index
    %c0_142 = arith.constant 0 : index
    %544 = vector.load %arg20[%c0_141, %c0_142] : memref<8x1xf32, #tpu.memory_space<vmem>>, vector<8x1xf32>
    %cst_143 = arith.constant dense<0.000000e+00> : vector<1xf32>
    %545 = vector.multi_reduction <add>, %544, %cst_143 [0] : vector<8x1xf32> to vector<1xf32>
    %546 = vector.shape_cast %545 : vector<1xf32> to vector<1x1xf32>
    %cst_144 = arith.constant 5.000000e-01 : f32
    %547 = vector.broadcast %cst_144 : f32 to vector<1x1xf32>
    %548 = arith.mulf %546, %547 : vector<1x1xf32>
    %549 = vector.shape_cast %548 : vector<1x1xf32> to vector<1x1xf32>
    %550 = vector.broadcast %549 : vector<1x1xf32> to vector<1x128xf32>
    %c0_145 = arith.constant 0 : index
    %c0_146 = arith.constant 0 : index
    %551 = vector.load %arg16[%c0_145, %c0_146] : memref<1x128xf32, #tpu.memory_space<vmem>>, vector<1x128xf32>
    tpu.vector_store %arg16[%c0_145, %c0_146], %550 {strides = array<i32>} : memref<1x128xf32, #tpu.memory_space<vmem>>, vector<1x128xf32>,
    return
  }
}

</mosaic_0001>

<bundles_post_ra>
// kernel: pointer_generator_forward.1
= control target key start
LH: loop header
LB: loop body
LE: loop exit
PB: predicated region body
PF: predicated region fallthrough
CT: control target
= control target key end

     0   :  { %s5758_s0 = inlined_call_operand.vmem [shape: f32[8,8,256], index: 0, kind: input, shape index: {}]   ;;  %s5759_s1 = inlined_call_operand.vmem [shape: f32[64,256], index: 1, kind: input, shape index: {}]   ;;  %s5760_s2 = inlined_call_operand.vmem [shape: f32[512,512], index: 2, kind: input, shape index: {}]   ;;  %s5761_s3 = inlined_call_operand.vmem [shape: f32[64,32], index: 3, kind: input, shape index: {}]   ;;  %s5762_s4 = inlined_call_operand.vmem [shape: f32[64,32], index: 4, kind: input, shape index: {}]   ;;  %s5763_s5 = inlined_call_operand.vmem [shape: f32[8,8], index: 5, kind: input, shape index: {}]   ;;  %s5764_s6 = inlined_call_operand.vmem [shape: f32[8,64], index: 6, kind: input, shape index: {}]   ;;  %s5765_s7 = inlined_call_operand.vmem [shape: f32[6,8,128], index: 7, kind: input, shape index: {}]   ;;  %s5766_s8 = inlined_call_operand.vmem [shape: f32[96,128], index: 8, kind: input, shape index: {}]   ;;  %s5767_s9 = inlined_call_operand.vmem [shape: f32[64,64], index: 9, kind: input, shape index: {}]   ;;  %s5768_s10 = inlined_call_operand.vmem [shape: f32[512,8], index: 10, kind: input, shape index: {}]   ;;  %s5769_s11 = inlined_call_operand.vmem [shape: f32[96,32], index: 11, kind: input, shape index: {}]   ;;  %s5770_s12 = inlined_call_operand.vmem [shape: f32[32,128], index: 12, kind: input, shape index: {}]   ;;  %s5771_s13 = inlined_call_operand.vmem [shape: f32[6,8,128], index: 13, kind: input, shape index: {}]   ;;  %s5772_s14 = inlined_call_operand.vmem [shape: f32[6,8,10], index: 14, kind: input, shape index: {}]   ;;  %s5773_s15 = inlined_call_operand.vmem [shape: f32[8,128], index: 15, kind: input, shape index: {}]   ;;  %s5774_s16 = inlined_call_operand.hbm [shape: f32[1,128], index: 16, kind: output, shape index: {}]  }
   0x1   :  { %5776 = sst [smem:[#allocation9_spill]] %s5758_s0 }
   0x2   :  { %21 = vsyncpa [#allocation7], 0  ;;  %v57_v0 = vld [vmem:[%s5759_s1 + $0x8] sm:$0xff]  ;;  %v59_v1 = vld [vmem:[%s5759_s1 + $0x18] sm:$0xff]  ;;  %vm2086_vm0 = vcmask 7168   ;;  %v3985_v6 = vmov 0.0  }
   0x3   :  { %v4099_v2 = vpack.c.bf16 %v59_v1, %v57_v0  ;;  %v56_v3 = vld [vmem:[%s5759_s1] sm:$0xff]  ;;  %v58_v4 = vld [vmem:[%s5759_s1 + $0x10] sm:$0xff]  ;;  %v61_v5 = vld [vmem:[%s5759_s1 + $0x28] sm:$0xff]  ;;  %140 = vmatprep.mubr.f32.mxu0 %v3985_v6  ;;  %2087 = vst.msk [vmem:[#allocation5] sm:$0xff] %vm2086_vm0, %v3985_v6  ;;  %296 = vmatprep.mubr.f32.mxu1 %v3985_v6  ;;  %s5777_s25 = sld [smem:[#allocation9_spill]]  ;;  %s3986_s28 = smov 64  }
   0x4   :  { %v4114_v7 = vpack.c.bf16 %v58_v4, %v56_v3  ;;  %v63_v8 = vld [vmem:[%s5759_s1 + $0x38] sm:$0xff]  ;;  %v60_v9 = vld [vmem:[%s5759_s1 + $0x20] sm:$0xff]  ;;  %v62_v10 = vld [vmem:[%s5759_s1 + $0x30] sm:$0xff]  ;;  %s3987_s29 = smov 32   ;;  %vm203_vm1 = vcmask 1048320   ;;  %vm201_vm2 = vcmask 261120  }
   0x5   :  { %3223 = vmatprep.subr.bf16.mxu0 %v4099_v2  ;;  %v4126_v11 = vpack.c.bf16 %v63_v8, %v61_v5  ;;  %v65_v12 = vld [vmem:[%s5759_s1 + $0x48] sm:$0xff]  ;;  %v67_v13 = vld [vmem:[%s5759_s1 + $0x58] sm:$0xff]  ;;  %3239 = vmatprep.subr.bf16.mxu1 %v4099_v2  ;;  %v4136_v14 = vpack.c.bf16 %v62_v10, %v60_v9  ;;  %v64_v16 = vld [vmem:[%s5759_s1 + $0x40] sm:$0xff]  ;;  %vm72_vm3 = vcmask 523264   ;;  %vm363_vm4 = vcmask 523520   ;;  %s5316_s18 = smov 0  }
   0x6   :  { %3225 = vmatpush1.bf16.msra.mxu0 %v4114_v7  ;;  %3241 = vmatpush1.bf16.msra.mxu1 %v4114_v7  ;;  %v4140_v15 = vpack.c.bf16 %v67_v13, %v65_v12  ;;  %v66_v17 = vld [vmem:[%s5759_s1 + $0x50] sm:$0xff]  ;;  %v69_v18 = vld [vmem:[%s5759_s1 + $0x68] sm:$0xff]  ;;  %v71_v19 = vld [vmem:[%s5759_s1 + $0x78] sm:$0xff]  ;;  %vm357_vm5 = vcmask 785920   ;;  %vm3990_vm6 = vmmov 0  }
   0x7   :  { %3227 = vmatprep.subr.bf16.mxu0 %v4126_v11  ;;  %3243 = vmatprep.subr.bf16.mxu1 %v4126_v11  ;;  %v4156_v20 = vpack.c.bf16 %v66_v17, %v64_v16  ;;  %v4160_v21 = vpack.c.bf16 %v71_v19, %v69_v18  ;;  %v68_v22 = vld [vmem:[%s5759_s1 + $0x60] sm:$0xff]  ;;  %v70_v23 = vld [vmem:[%s5759_s1 + $0x70] sm:$0xff] }
   0x8   :  { %v4170_v24 = vpack.c.bf16 %v70_v23, %v68_v22 }
   0x9   :  { %v54_v25 = vld [vmem:[%s5777_s25] sm:$0xff]  ;;  %v55_v27 = vld [vmem:[%s5777_s25 + $0x8] sm:$0xff]  ;;  %v2920_v60 = vld [vmem:[%s5777_s25 + $0x10] sm:$0xff] }
   0xa   :  { %3229 = vmatpush1.bf16.msra.mxu0 %v4136_v14  ;;  %3245 = vmatpush1.bf16.msra.mxu1 %v4136_v14  ;;  %v2921_v61 = vld [vmem:[%s5777_s25 + $0x18] sm:$0xff] }
   0xb   :  { %3231 = vmatprep.subr.bf16.mxu0 %v4140_v15  ;;  %3247 = vmatprep.subr.bf16.mxu1 %v4140_v15 }
   0xe   :  { %3233 = vmatpush1.bf16.msra.mxu0 %v4156_v20  ;;  %3249 = vmatpush1.bf16.msra.mxu1 %v4156_v20 }
   0xf   :  { %3235 = vmatprep.subr.bf16.mxu0 %v4160_v21  ;;  %3251 = vmatprep.subr.bf16.mxu1 %v4160_v21 }
  0x12   :  { %3237 = vmatpush1.bf16.msra.mxu0 %v4170_v24  ;;  %3253 = vmatpush1.bf16.msra.mxu1 %v4170_v24 }
  0x13   :  { %3255 = vmatprep.subr.bf16.mxu0 %v4099_v2  ;;  %3271 = vmatprep.subr.bf16.mxu1 %v4099_v2 }
  0x15   :  { %141 = vmatmul.mubr.f32.vlgmr.msra.gmra.mrb[0].mxu0 %v3985_v6 }
  0x16   :  { %3257 = vmatpush1.bf16.msra.mxu0 %v4114_v7  ;;  %455 = vmatprep.mubr.f32.mxu0 %v3985_v6 }
  0x17   :  { %3259 = vmatprep.subr.bf16.mxu0 %v4126_v11 }
  0x1a   :  { %3261 = vmatpush1.bf16.msra.mxu0 %v4136_v14 }
  0x1b   :  { %3263 = vmatprep.subr.bf16.mxu0 %v4140_v15 }
  0x1e   :  { %3265 = vmatpush1.bf16.msra.mxu0 %v4156_v20 }
  0x1f   :  { %3267 = vmatprep.subr.bf16.mxu0 %v4160_v21 }
  0x22   :  { %3269 = vmatpush1.bf16.msra.mxu0 %v4170_v24 }
  0x23   :  { %3287 = vmatprep.subr.bf16.mxu0 %v4099_v2 }
  0xe8   :  { %v142_v26 = vpop.f32.mrb[0].mxu0 }
  0xe9   :  { %v147_v28 = vadd.f32 %v142_v26, %v54_v25  ;;  %v144_v29 = vpop.f32.mrb[1].mxu0 }
  0xea   :  { %v148_v30 = vadd.f32 %v144_v29, %v55_v27 }
  0xeb   :  { %3783 = vtanh.f32 %v147_v28  ;;  %v2918_v33 = vmul.f32 -1.442695, %v147_v28 }
  0xec   :  { %3785 = vtanh.f32 %v148_v30  ;;  %v2919_v34 = vmul.f32 -1.442695, %v148_v30 }
  0xed   :  { %3787 = vpow2.f32 %v2918_v33 }
  0xee   :  { %3789 = vpow2.f32 %v2919_v34 }
  0xf5   :  { %v3784_v31 = vpop.eup %3783 }
  0xf6   :  { %158 = vrot.lane.b32.xlu0 %v3784_v31, %s3986_s28  ;;  %v3786_v32 = vpop.eup %3785 }
  0xf7   :  { %v3788_v35 = vpop.eup %3787 }
  0xf8   :  { %v152_v36 = vadd.f32 1.0, %v3788_v35  ;;  %v3790_v37 = vpop.eup %3789 }
  0xf9   :  { %v176_v38 = vadd.f32 1.0, %v3790_v37 }
  0xfa   :  { %182 = vrot.lane.b32.xlu0 %v3786_v32, %s3986_s28  ;;  %3791 = vrcp.f32 %v152_v36 }
  0xfb   :  { %3793 = vrcp.f32 %v176_v38 }
 0x104   :  { %v3792_v39 = vpop.eup %3791 }
 0x105   :  { %v3794_v42 = vpop.eup %3793  ;;  %v156_v45 = vmul.f32 0.0, %v3792_v39 }
 0x106   :  { %v180_v48 = vmul.f32 0.0, %v3794_v42 }
 0x168   :  { %v159_v40 = vpop.permute.xlu0 %158 }
 0x169   :  { %v161_v41 = vmul.f32 %v3792_v39, %v159_v40  ;;  %v2925_v40 = vld [vmem:[%s5777_s25 + $0x20] sm:$0xff] }
 0x16b   :  { %163 = vrot.lane.b32.xlu1 %v161_v41, %s3987_s29  ;;  %v2926_v41 = vld [vmem:[%s5777_s25 + $0x28] sm:$0xff] }
 0x16c   :  { %v183_v43 = vpop.permute.xlu0 %182 }
 0x16d   :  { %v185_v44 = vmul.f32 %v3794_v42, %v183_v43 }
 0x16f   :  { %187 = vrot.lane.b32.xlu1 %v185_v44, %s3987_s29 }
 0x1dd   :  { %v164_v46 = vpop.permute.xlu1 %163 }
 0x1de   :  { %v4199_v47 = vadd.f32 %v164_v46, %v156_v45 }
 0x1e0   :  { %3795 = vtanh.f32 %v4199_v47 }
 0x1e1   :  { %v188_v49 = vpop.permute.xlu1 %187 }
 0x1e2   :  { %v190_v50 = vadd.f32 %v188_v49, %v180_v48 }
 0x1e4   :  { %3797 = vtanh.f32 %v190_v50 }
 0x1ea   :  { %v3796_v51 = vpop.eup %3795 }
 0x1eb   :  { %169 = vrot.lane.b32.xlu0 %v3796_v51, %s3986_s28 }
 0x1ee   :  { %v3798_v52 = vpop.eup %3797 }
 0x1ef   :  { %193 = vrot.lane.b32.xlu1 %v3798_v52, %s3986_s28 }
 0x25d   :  { %v170_v53 = vpop.permute.xlu0 %169 }
 0x25e   :  { %v172_v54 = vmul.f32 %v3792_v39, %v170_v53 }
 0x260   :  { %198 = vrot.lane.b32.xlu0 %v172_v54, %s3987_s29 }
 0x261   :  { %v194_v55 = vpop.permute.xlu1 %193 }
 0x262   :  { %v196_v56 = vmul.f32 %v3794_v42, %v194_v55 }
 0x264   :  { %204 = vst.msk [vmem:[#allocation2 + $0x18] sm:$0xff] %vm203_vm1, %v196_v56  ;;  %206 = vrot.lane.b32.xlu1 %v196_v56, %s3986_s28 }
 0x2d2   :  { %v199_v57 = vpop.permute.xlu0 %198 }
 0x2d3   :  { %202 = vst.msk [vmem:[#allocation2] sm:$0xff] %vm201_vm2, %v199_v57 }
 0x2d6   :  { %v207_v58 = vpop.permute.xlu1 %206 }
 0x2d7   :  { %v209_v59 = vsel %vm201_vm2, %v199_v57, %v207_v58 }
 0x2d8   :  { %2922 = vmatmul.mubr.msk.f32.vlgmr.msra.gmra.mrb[0].mxu1 %vm72_vm3, %v209_v59 }
 0x2d9   :  { %3273 = vmatpush1.bf16.msra.mxu1 %v4114_v7  ;;  %609 = vmatprep.mubr.f32.mxu1 %v3985_v6 }
 0x2da   :  { %3275 = vmatprep.subr.bf16.mxu1 %v4126_v11 }
 0x2dd   :  { %3277 = vmatpush1.bf16.msra.mxu1 %v4136_v14 }
 0x2de   :  { %3279 = vmatprep.subr.bf16.mxu1 %v4140_v15 }
 0x2e1   :  { %3281 = vmatpush1.bf16.msra.mxu1 %v4156_v20 }
 0x2e2   :  { %3283 = vmatprep.subr.bf16.mxu1 %v4160_v21 }
 0x2e5   :  { %3285 = vmatpush1.bf16.msra.mxu1 %v4170_v24 }
 0x2e6   :  { %3303 = vmatprep.subr.bf16.mxu1 %v4099_v2 }
 0x3ab   :  { %v298_v62 = vpop.f32.mrb[0].mxu1 }
 0x3ac   :  { %v303_v63 = vadd.f32 %v2920_v60, %v298_v62  ;;  %v300_v0 = vpop.f32.mrb[1].mxu1 }
 0x3ad   :  { %v304_v1 = vadd.f32 %v2921_v61, %v300_v0 }
 0x3ae   :  { %3799 = vtanh.f32 %v303_v63  ;;  %v2923_v5 = vmul.f32 -1.442695, %v303_v63 }
 0x3af   :  { %3801 = vtanh.f32 %v304_v1  ;;  %v2924_v8 = vmul.f32 -1.442695, %v304_v1 }
 0x3b0   :  { %3803 = vpow2.f32 %v2923_v5 }
 0x3b1   :  { %3805 = vpow2.f32 %v2924_v8 }
 0x3b8   :  { %v3800_v3 = vpop.eup %3799 }
 0x3b9   :  { %v3802_v4 = vpop.eup %3801  ;;  %314 = vrot.lane.b32.xlu0 %v3800_v3, %s3986_s28 }
 0x3ba   :  { %338 = vrot.lane.b32.xlu1 %v3802_v4, %s3986_s28  ;;  %v3804_v9 = vpop.eup %3803 }
 0x3bb   :  { %v3806_v10 = vpop.eup %3805  ;;  %v308_v12 = vadd.f32 1.0, %v3804_v9 }
 0x3bc   :  { %v332_v13 = vadd.f32 1.0, %v3806_v10 }
 0x3bd   :  { %3807 = vrcp.f32 %v308_v12 }
 0x3be   :  { %3809 = vrcp.f32 %v332_v13 }
 0x3c7   :  { %v3808_v16 = vpop.eup %3807 }
 0x3c8   :  { %v3810_v18 = vpop.eup %3809  ;;  %v312_v25 = vmul.f32 %v3808_v16, %v4199_v47 }
 0x3c9   :  { %v336_v27 = vmul.f32 %v3810_v18, %v190_v50 }
 0x42b   :  { %v315_v17 = vpop.permute.xlu0 %314 }
 0x42c   :  { %v317_v19 = vmul.f32 %v3808_v16, %v315_v17  ;;  %v339_v22 = vpop.permute.xlu1 %338  ;;  %v2931_v17 = vld [vmem:[%s5777_s25 + $0x38] sm:$0xff] }
 0x42d   :  { %v341_v23 = vmul.f32 %v3810_v18, %v339_v22 }
 0x42e   :  { %319 = vrot.lane.b32.xlu0 %v317_v19, %s3987_s29 }
 0x42f   :  { %343 = vrot.lane.b32.xlu1 %v341_v23, %s3987_s29 }
 0x4a0   :  { %v320_v26 = vpop.permute.xlu0 %319 }
 0x4a1   :  { %v322_v28 = vadd.f32 %v320_v26, %v312_v25  ;;  %v344_v29 = vpop.permute.xlu1 %343 }
 0x4a2   :  { %v346_v30 = vadd.f32 %v344_v29, %v336_v27 }
 0x4a3   :  { %3811 = vtanh.f32 %v322_v28 }
 0x4a4   :  { %3813 = vtanh.f32 %v346_v30 }
 0x4ad   :  { %v3812_v31 = vpop.eup %3811 }
 0x4ae   :  { %v3814_v32 = vpop.eup %3813  ;;  %325 = vrot.lane.b32.xlu0 %v3812_v31, %s3986_s28 }
 0x4af   :  { %349 = vrot.lane.b32.xlu1 %v3814_v32, %s3986_s28 }
 0x520   :  { %v326_v33 = vpop.permute.xlu0 %325 }
 0x521   :  { %v4232_v34 = vmul.f32 %v3808_v16, %v326_v33  ;;  %v350_v35 = vpop.permute.xlu1 %349  ;;  %v2930_v16 = vld [vmem:[%s5777_s25 + $0x30] sm:$0xff] }
 0x522   :  { %v352_v36 = vmul.f32 %v3810_v18, %v350_v35 }
 0x523   :  { %365 = vrot.lane.b32.xlu1 %v4232_v34, %s3987_s29 }
 0x524   :  { %360 = vrot.lane.b32.xlu0 %v352_v36, %s3986_s28 }
 0x595   :  { %v366_v37 = vpop.permute.xlu1 %365 }
 0x596   :  { %v361_v38 = vpop.permute.xlu0 %360 }
 0x597   :  { %364 = vst.msk [vmem:[#allocation2 + $0x18] sm:$0xff] %vm363_vm4, %v361_v38  ;;  %v368_v39 = vsel %vm201_vm2, %v366_v37, %v361_v38 }
 0x598   :  { %2927 = vmatmul.mubr.msk.f32.vlgmr.msra.gmra.mrb[2].mxu0 %vm72_vm3, %v368_v39 }
 0x599   :  { %3289 = vmatpush1.bf16.msra.mxu0 %v4114_v7  ;;  %766 = vmatprep.mubr.f32.mxu0 %v3985_v6 }
 0x59a   :  { %3291 = vmatprep.subr.bf16.mxu0 %v4126_v11 }
 0x59d   :  { %3293 = vmatpush1.bf16.msra.mxu0 %v4136_v14 }
 0x59e   :  { %3295 = vmatprep.subr.bf16.mxu0 %v4140_v15 }
 0x5a1   :  { %3297 = vmatpush1.bf16.msra.mxu0 %v4156_v20 }
 0x5a2   :  { %3299 = vmatprep.subr.bf16.mxu0 %v4160_v21 }
 0x5a5   :  { %3301 = vmatpush1.bf16.msra.mxu0 %v4170_v24 }
 0x5a6   :  { %3319 = vmatprep.subr.bf16.mxu0 %v4099_v2 }
 0x66b   :  { %v457_v42 = vpop.f32.mrb[2].mxu0 }
 0x66c   :  { %v462_v43 = vadd.f32 %v2925_v40, %v457_v42  ;;  %v459_v44 = vpop.f32.mrb[3].mxu0 }
 0x66d   :  { %v463_v45 = vadd.f32 %v2926_v41, %v459_v44 }
 0x66e   :  { %3815 = vtanh.f32 %v462_v43  ;;  %v2928_v2 = vmul.f32 -1.442695, %v462_v43 }
 0x66f   :  { %3817 = vtanh.f32 %v463_v45  ;;  %v2929_v48 = vmul.f32 -1.442695, %v463_v45 }
 0x670   :  { %3819 = vpow2.f32 %v2928_v2 }
 0x671   :  { %3821 = vpow2.f32 %v2929_v48 }
 0x678   :  { %v3816_v46 = vpop.eup %3815 }
 0x679   :  { %v3818_v47 = vpop.eup %3817  ;;  %473 = vrot.lane.b32.xlu0 %v3816_v46, %s3986_s28 }
 0x67a   :  { %497 = vrot.lane.b32.xlu1 %v3818_v47, %s3986_s28  ;;  %v3820_v49 = vpop.eup %3819 }
 0x67b   :  { %v3822_v50 = vpop.eup %3821  ;;  %v467_v51 = vadd.f32 1.0, %v3820_v49 }
 0x67c   :  { %v491_v52 = vadd.f32 1.0, %v3822_v50 }
 0x67d   :  { %3823 = vrcp.f32 %v467_v51 }
 0x67e   :  { %3825 = vrcp.f32 %v491_v52 }
 0x687   :  { %v3824_v53 = vpop.eup %3823 }
 0x688   :  { %v3826_v55 = vpop.eup %3825  ;;  %v471_v59 = vmul.f32 %v3824_v53, %v322_v28 }
 0x689   :  { %v495_v61 = vmul.f32 %v3826_v55, %v346_v30 }
 0x6eb   :  { %v474_v54 = vpop.permute.xlu0 %473 }
 0x6ec   :  { %v476_v56 = vmul.f32 %v3824_v53, %v474_v54  ;;  %v498_v57 = vpop.permute.xlu1 %497  ;;  %v2935_v54 = vld [vmem:[%s5777_s25 + $0x40] sm:$0xff] }
 0x6ed   :  { %v500_v58 = vmul.f32 %v3826_v55, %v498_v57 }
 0x6ee   :  { %478 = vrot.lane.b32.xlu0 %v476_v56, %s3987_s29 }
 0x6ef   :  { %502 = vrot.lane.b32.xlu1 %v500_v58, %s3987_s29 }
 0x760   :  { %v479_v60 = vpop.permute.xlu0 %478 }
 0x761   :  { %v481_v62 = vadd.f32 %v479_v60, %v471_v59  ;;  %v503_v63 = vpop.permute.xlu1 %502 }
 0x762   :  { %v505_v0 = vadd.f32 %v503_v63, %v495_v61 }
 0x763   :  { %3827 = vtanh.f32 %v481_v62 }
 0x764   :  { %3829 = vtanh.f32 %v505_v0 }
 0x76d   :  { %v3828_v1 = vpop.eup %3827 }
 0x76e   :  { %v3830_v3 = vpop.eup %3829  ;;  %484 = vrot.lane.b32.xlu0 %v3828_v1, %s3986_s28 }
 0x76f   :  { %508 = vrot.lane.b32.xlu1 %v3830_v3, %s3986_s28 }
 0x7e0   :  { %v485_v4 = vpop.permute.xlu0 %484 }
 0x7e1   :  { %v487_v5 = vmul.f32 %v3824_v53, %v485_v4  ;;  %v509_v8 = vpop.permute.xlu1 %508 }
 0x7e2   :  { %v511_v9 = vmul.f32 %v3826_v55, %v509_v8 }
 0x7e3   :  { %513 = vrot.lane.b32.xlu0 %v487_v5, %s3987_s29 }
 0x7e4   :  { %517 = vst.msk [vmem:[#allocation2 + $0x10] sm:$0xff] %vm203_vm1, %v511_v9  ;;  %519 = vrot.lane.b32.xlu1 %v511_v9, %s3986_s28 }
 0x855   :  { %v514_v10 = vpop.permute.xlu0 %513 }
 0x856   :  { %516 = vst.msk [vmem:[#allocation2 + $0x8] sm:$0xff] %vm201_vm2, %v514_v10  ;;  %v520_v12 = vpop.permute.xlu1 %519 }
 0x857   :  { %v522_v13 = vsel %vm201_vm2, %v514_v10, %v520_v12 }
 0x858   :  { %2932 = vmatmul.mubr.msk.f32.vlgmr.msra.gmra.mrb[2].mxu1 %vm72_vm3, %v522_v13 }
 0x859   :  { %3305 = vmatpush1.bf16.msra.mxu1 %v4114_v7  ;;  %920 = vmatprep.mubr.f32.mxu1 %v3985_v6 }
 0x85a   :  { %3307 = vmatprep.subr.bf16.mxu1 %v4126_v11 }
 0x85d   :  { %3309 = vmatpush1.bf16.msra.mxu1 %v4136_v14 }
 0x85e   :  { %3311 = vmatprep.subr.bf16.mxu1 %v4140_v15 }
 0x861   :  { %3313 = vmatpush1.bf16.msra.mxu1 %v4156_v20 }
 0x862   :  { %3315 = vmatprep.subr.bf16.mxu1 %v4160_v21 }
 0x865   :  { %3317 = vmatpush1.bf16.msra.mxu1 %v4170_v24 }
 0x92b   :  { %v611_v18 = vpop.f32.mrb[2].mxu1 }
 0x92c   :  { %v616_v19 = vadd.f32 %v2930_v16, %v611_v18  ;;  %v613_v22 = vpop.f32.mrb[3].mxu1 }
 0x92d   :  { %v617_v23 = vadd.f32 %v2931_v17, %v613_v22 }
 0x92e   :  { %3831 = vtanh.f32 %v616_v19  ;;  %v2933_v27 = vmul.f32 -1.442695, %v616_v19 }
 0x92f   :  { %3833 = vtanh.f32 %v617_v23  ;;  %v2934_v28 = vmul.f32 -1.442695, %v617_v23 }
 0x930   :  { %3835 = vpow2.f32 %v2933_v27  ;;  %v2940_v27 = vld [vmem:[%s5777_s25 + $0x50] sm:$0xff] }
 0x931   :  { %3837 = vpow2.f32 %v2934_v28  ;;  %v2941_v28 = vld [vmem:[%s5777_s25 + $0x58] sm:$0xff] }
 0x938   :  { %v3832_v25 = vpop.eup %3831 }
 0x939   :  { %v3834_v26 = vpop.eup %3833  ;;  %627 = vrot.lane.b32.xlu0 %v3832_v25, %s3986_s28 }
 0x93a   :  { %651 = vrot.lane.b32.xlu1 %v3834_v26, %s3986_s28  ;;  %v3836_v29 = vpop.eup %3835 }
 0x93b   :  { %v3838_v30 = vpop.eup %3837  ;;  %v621_v31 = vadd.f32 1.0, %v3836_v29 }
 0x93c   :  { %v645_v32 = vadd.f32 1.0, %v3838_v30 }
 0x93d   :  { %3839 = vrcp.f32 %v621_v31 }
 0x93e   :  { %3841 = vrcp.f32 %v645_v32 }
 0x947   :  { %v3840_v33 = vpop.eup %3839 }
 0x948   :  { %v3842_v36 = vpop.eup %3841  ;;  %v625_v40 = vmul.f32 %v3840_v33, %v481_v62 }
 0x949   :  { %v649_v42 = vmul.f32 %v3842_v36, %v505_v0 }
 0x9ab   :  { %v628_v35 = vpop.permute.xlu0 %627 }
 0x9ac   :  { %v630_v37 = vmul.f32 %v3840_v33, %v628_v35  ;;  %v652_v38 = vpop.permute.xlu1 %651 }
 0x9ad   :  { %v654_v39 = vmul.f32 %v3842_v36, %v652_v38 }
 0x9ae   :  { %632 = vrot.lane.b32.xlu0 %v630_v37, %s3987_s29 }
 0x9af   :  { %656 = vrot.lane.b32.xlu1 %v654_v39, %s3987_s29 }
 0xa20   :  { %v633_v41 = vpop.permute.xlu0 %632 }
 0xa21   :  { %v635_v43 = vadd.f32 %v633_v41, %v625_v40  ;;  %v657_v44 = vpop.permute.xlu1 %656 }
 0xa22   :  { %v659_v45 = vadd.f32 %v657_v44, %v649_v42 }
 0xa23   :  { %3843 = vtanh.f32 %v635_v43 }
 0xa24   :  { %3845 = vtanh.f32 %v659_v45 }
 0xa2d   :  { %v3844_v46 = vpop.eup %3843 }
 0xa2e   :  { %v3846_v47 = vpop.eup %3845  ;;  %638 = vrot.lane.b32.xlu0 %v3844_v46, %s3986_s28 }
 0xa2f   :  { %662 = vrot.lane.b32.xlu1 %v3846_v47, %s3986_s28 }
 0xaa0   :  { %v639_v2 = vpop.permute.xlu0 %638 }
 0xaa1   :  { %v4287_v48 = vmul.f32 %v3840_v33, %v639_v2  ;;  %v663_v49 = vpop.permute.xlu1 %662 }
 0xaa2   :  { %v665_v50 = vmul.f32 %v3842_v36, %v663_v49 }
 0xaa3   :  { %676 = vrot.lane.b32.xlu1 %v4287_v48, %s3987_s29 }
 0xaa4   :  { %672 = vrot.lane.b32.xlu0 %v665_v50, %s3986_s28 }
 0xb15   :  { %v677_v51 = vpop.permute.xlu1 %676 }
 0xb16   :  { %v673_v52 = vpop.permute.xlu0 %672 }
 0xb17   :  { %675 = vst.msk [vmem:[#allocation2 + $0x10] sm:$0xff] %vm363_vm4, %v673_v52  ;;  %v679_v53 = vsel %vm201_vm2, %v677_v51, %v673_v52 }
 0xb18   :  { %2937 = vmatmul.mubr.msk.f32.vlgmr.msra.gmra.mrb[4].mxu0 %vm72_vm3, %v679_v53 }
 0xb19   :  { %3321 = vmatpush1.bf16.msra.mxu0 %v4114_v7  ;;  %1077 = vmatprep.mubr.f32.mxu0 %v3985_v6  ;;  %v2936_v7 = vld [vmem:[%s5777_s25 + $0x48] sm:$0xff] }
 0xb1a   :  { %3323 = vmatprep.subr.bf16.mxu0 %v4126_v11 }
 0xb1d   :  { %3325 = vmatpush1.bf16.msra.mxu0 %v4136_v14 }
 0xb1e   :  { %3327 = vmatprep.subr.bf16.mxu0 %v4140_v15 }
 0xb21   :  { %3329 = vmatpush1.bf16.msra.mxu0 %v4156_v20 }
 0xb22   :  { %3331 = vmatprep.subr.bf16.mxu0 %v4160_v21 }
 0xb25   :  { %3333 = vmatpush1.bf16.msra.mxu0 %v4170_v24 }
 0xbeb   :  { %v768_v55 = vpop.f32.mrb[4].mxu0 }
 0xbec   :  { %v773_v11 = vadd.f32 %v2935_v54, %v768_v55  ;;  %v770_v56 = vpop.f32.mrb[5].mxu0 }
 0xbed   :  { %v774_v14 = vadd.f32 %v2936_v7, %v770_v56 }
 0xbee   :  { %3847 = vtanh.f32 %v773_v11  ;;  %v2938_v21 = vmul.f32 -1.442695, %v773_v11 }
 0xbef   :  { %3849 = vtanh.f32 %v774_v14  ;;  %v2939_v24 = vmul.f32 -1.442695, %v774_v14 }
 0xbf0   :  { %3851 = vpow2.f32 %v2938_v21 }
 0xbf1   :  { %3853 = vpow2.f32 %v2939_v24  ;;  %v2945_v24 = vld [vmem:[%s5777_s25 + $0x60] sm:$0xff] }
 0xbf8   :  { %v3848_v15 = vpop.eup %3847 }
 0xbf9   :  { %v3850_v20 = vpop.eup %3849  ;;  %784 = vrot.lane.b32.xlu0 %v3848_v15, %s3986_s28 }
 0xbfa   :  { %808 = vrot.lane.b32.xlu1 %v3850_v20, %s3986_s28  ;;  %v3852_v57 = vpop.eup %3851 }
 0xbfb   :  { %v3854_v58 = vpop.eup %3853  ;;  %v778_v59 = vadd.f32 1.0, %v3852_v57  ;;  %v2946_v57 = vld [vmem:[%s5777_s25 + $0x68] sm:$0xff] }
 0xbfc   :  { %v802_v60 = vadd.f32 1.0, %v3854_v58 }
 0xbfd   :  { %3855 = vrcp.f32 %v778_v59 }
 0xbfe   :  { %3857 = vrcp.f32 %v802_v60 }
 0xc07   :  { %v3856_v61 = vpop.eup %3855 }
 0xc08   :  { %v3858_v63 = vpop.eup %3857  ;;  %v782_v4 = vmul.f32 %v3856_v61, %v635_v43 }
 0xc09   :  { %v806_v8 = vmul.f32 %v3858_v63, %v659_v45 }
 0xc6b   :  { %v785_v62 = vpop.permute.xlu0 %784 }
 0xc6c   :  { %v787_v0 = vmul.f32 %v3856_v61, %v785_v62  ;;  %v809_v1 = vpop.permute.xlu1 %808 }
 0xc6d   :  { %v811_v3 = vmul.f32 %v3858_v63, %v809_v1 }
 0xc6e   :  { %789 = vrot.lane.b32.xlu0 %v787_v0, %s3987_s29 }
 0xc6f   :  { %813 = vrot.lane.b32.xlu1 %v811_v3, %s3987_s29 }
 0xce0   :  { %v790_v5 = vpop.permute.xlu0 %789 }
 0xce1   :  { %v792_v9 = vadd.f32 %v790_v5, %v782_v4  ;;  %v814_v10 = vpop.permute.xlu1 %813 }
 0xce2   :  { %v816_v12 = vadd.f32 %v814_v10, %v806_v8 }
 0xce3   :  { %3859 = vtanh.f32 %v792_v9 }
 0xce4   :  { %3861 = vtanh.f32 %v816_v12 }
 0xced   :  { %v3860_v13 = vpop.eup %3859 }
 0xcee   :  { %v3862_v16 = vpop.eup %3861  ;;  %795 = vrot.lane.b32.xlu0 %v3860_v13, %s3986_s28 }
 0xcef   :  { %819 = vrot.lane.b32.xlu1 %v3862_v16, %s3986_s28 }
 0xd60   :  { %v796_v17 = vpop.permute.xlu0 %795 }
 0xd61   :  { %v798_v18 = vmul.f32 %v3856_v61, %v796_v17  ;;  %v820_v19 = vpop.permute.xlu1 %819 }
 0xd62   :  { %v4315_v22 = vmul.f32 %v3858_v63, %v820_v19 }
 0xd63   :  { %824 = vrot.lane.b32.xlu0 %v798_v18, %s3987_s29 }
 0xd64   :  { %830 = vrot.lane.b32.xlu1 %v4315_v22, %s3986_s28 }
 0xdd5   :  { %v825_v23 = vpop.permute.xlu0 %824 }
 0xdd6   :  { %827 = vst.msk [vmem:[#allocation2 + $0x10] sm:$0xff] %vm201_vm2, %v825_v23  ;;  %v831_v25 = vpop.permute.xlu1 %830 }
 0xdd7   :  { %v833_v26 = vsel %vm201_vm2, %v825_v23, %v831_v25 }
 0xdd8   :  { %2942 = vmatmul.mubr.msk.f32.vlgmr.msra.gmra.mrb[4].mxu1 %vm72_vm3, %v833_v26 }
 0xdd9   :  { %1231 = vmatprep.mubr.f32.mxu1 %v3985_v6 }
 0xeab   :  { %v922_v29 = vpop.f32.mrb[4].mxu1 }
 0xeac   :  { %v927_v30 = vadd.f32 %v2940_v27, %v922_v29  ;;  %v924_v31 = vpop.f32.mrb[5].mxu1  ;;  %v1151_v29 = vld [vmem:[%s5759_s1 + $0x18] sm:$0xff] }
 0xead   :  { %v928_v32 = vadd.f32 %v2941_v28, %v924_v31  ;;  %v1149_v28 = vld [vmem:[%s5759_s1 + $0x8] sm:$0xff] }
 0xeae   :  { %3863 = vtanh.f32 %v927_v30  ;;  %v2943_v36 = vmul.f32 -1.442695, %v927_v30  ;;  %v1148_v30 = vld [vmem:[%s5759_s1] sm:$0xff]  ;;  %v3334_v31 = vpack.c.bf16 %v1151_v29, %v1149_v28 }
 0xeaf   :  { %3865 = vtanh.f32 %v928_v32  ;;  %v2944_v37 = vmul.f32 -1.442695, %v928_v32  ;;  %v1150_v32 = vld [vmem:[%s5759_s1 + $0x10] sm:$0xff] }
 0xeb0   :  { %3867 = vpow2.f32 %v2943_v36  ;;  %v3336_v36 = vpack.c.bf16 %v1150_v32, %v1148_v30  ;;  %3335 = vmatprep.subr.bf16.mxu1 %v3334_v31  ;;  %v1305_v32 = vld [vmem:[%s5760_s2 + $0x18] sm:$0xff] }
 0xeb1   :  { %3869 = vpow2.f32 %v2944_v37 }
 0xeb2   :  { %3337 = vmatpush1.bf16.msra.mxu1 %v3336_v36  ;;  %v1306_v36 = vld [vmem:[%s5760_s2 + $0x20] sm:$0xff] }
 0xeb8   :  { %v3864_v33 = vpop.eup %3863 }
 0xeb9   :  { %v3866_v35 = vpop.eup %3865  ;;  %938 = vrot.lane.b32.xlu0 %v3864_v33, %s3986_s28  ;;  %v1153_v33 = vld [vmem:[%s5759_s1 + $0x28] sm:$0xff] }
 0xeba   :  { %962 = vrot.lane.b32.xlu1 %v3866_v35, %s3986_s28  ;;  %v3868_v38 = vpop.eup %3867  ;;  %v1155_v35 = vld [vmem:[%s5759_s1 + $0x38] sm:$0xff] }
 0xebb   :  { %v3870_v39 = vpop.eup %3869  ;;  %v932_v40 = vadd.f32 1.0, %v3868_v38  ;;  %v3338_v37 = vpack.c.bf16 %v1155_v35, %v1153_v33  ;;  %v1152_v38 = vld [vmem:[%s5759_s1 + $0x20] sm:$0xff] }
 0xebc   :  { %v956_v41 = vadd.f32 1.0, %v3870_v39  ;;  %v1154_v39 = vld [vmem:[%s5759_s1 + $0x30] sm:$0xff]  ;;  %v1302_v35 = vld [vmem:[%s5760_s2] sm:$0xff] }
 0xebd   :  { %3871 = vrcp.f32 %v932_v40  ;;  %v1157_v40 = vld [vmem:[%s5759_s1 + $0x48] sm:$0xff]  ;;  %3339 = vmatprep.subr.bf16.mxu1 %v3338_v37 }
 0xebe   :  { %3873 = vrcp.f32 %v956_v41  ;;  %v1159_v41 = vld [vmem:[%s5759_s1 + $0x58] sm:$0xff] }
 0xec7   :  { %v3872_v42 = vpop.eup %3871 }
 0xec8   :  { %v3874_v44 = vpop.eup %3873  ;;  %v936_v2 = vmul.f32 %v3872_v42, %v792_v9 }
 0xec9   :  { %v960_v50 = vmul.f32 %v3874_v44, %v816_v12 }
 0xf2b   :  { %v939_v43 = vpop.permute.xlu0 %938 }
 0xf2c   :  { %v941_v45 = vmul.f32 %v3872_v42, %v939_v43  ;;  %v963_v46 = vpop.permute.xlu1 %962  ;;  %v3342_v43 = vpack.c.bf16 %v1159_v41, %v1157_v40  ;;  %v1308_v40 = vld [vmem:[%s5760_s2 + $0x30] sm:$0xff]  ;;  %v1311_v41 = vld [vmem:[%s5760_s2 + $0x48] sm:$0xff] }
 0xf2d   :  { %v965_v47 = vmul.f32 %v3874_v44, %v963_v46  ;;  %v1161_v46 = vld [vmem:[%s5759_s1 + $0x68] sm:$0xff] }
 0xf2e   :  { %943 = vrot.lane.b32.xlu0 %v941_v45, %s3987_s29  ;;  %v1158_v45 = vld [vmem:[%s5759_s1 + $0x50] sm:$0xff] }
 0xf2f   :  { %967 = vrot.lane.b32.xlu1 %v965_v47, %s3987_s29  ;;  %v1163_v47 = vld [vmem:[%s5759_s1 + $0x78] sm:$0xff] }
 0xfa0   :  { %v944_v49 = vpop.permute.xlu0 %943 }
 0xfa1   :  { %v946_v51 = vadd.f32 %v944_v49, %v936_v2  ;;  %v968_v52 = vpop.permute.xlu1 %967 }
 0xfa2   :  { %v970_v53 = vadd.f32 %v968_v52, %v960_v50  ;;  %v3346_v50 = vpack.c.bf16 %v1163_v47, %v1161_v46  ;;  %v1162_v52 = vld [vmem:[%s5759_s1 + $0x70] sm:$0xff] }
 0xfa3   :  { %3875 = vtanh.f32 %v946_v51 }
 0xfa4   :  { %3877 = vtanh.f32 %v970_v53 }
 0xfad   :  { %v3876_v54 = vpop.eup %3875 }
 0xfae   :  { %v3878_v7 = vpop.eup %3877  ;;  %949 = vrot.lane.b32.xlu0 %v3876_v54, %s3986_s28 }
 0xfaf   :  { %973 = vrot.lane.b32.xlu1 %v3878_v7, %s3986_s28 }
0x1020   :  { %v950_v55 = vpop.permute.xlu0 %949 }
0x1021   :  { %v4336_v11 = vmul.f32 %v3872_v42, %v950_v55  ;;  %v974_v56 = vpop.permute.xlu1 %973  ;;  %v3340_v42 = vpack.c.bf16 %v1154_v39, %v1152_v38  ;;  %v3352_v38 = vpack.c.bf16 %v1306_v36, %v1302_v35  ;;  %v1304_v39 = vld [vmem:[%s5760_s2 + $0x10] sm:$0xff] }
0x1022   :  { %v976_v14 = vmul.f32 %v3874_v44, %v974_v56  ;;  %v1156_v44 = vld [vmem:[%s5759_s1 + $0x40] sm:$0xff] }
0x1023   :  { %987 = vrot.lane.b32.xlu1 %v4336_v11, %s3987_s29  ;;  %3341 = vmatpush1.bf16.msra.mxu1 %v3340_v42  ;;  %v3344_v2 = vpack.c.bf16 %v1158_v45, %v1156_v44  ;;  %v3480_v42 = vpack.c.bf16 %v1308_v40, %v1304_v39  ;;  %v1313_v44 = vld [vmem:[%s5760_s2 + $0x58] sm:$0xff]  ;;  %v1344_v39 = vld [vmem:[%s5760_s2 + $0x150] sm:$0xff] }
0x1024   :  { %983 = vrot.lane.b32.xlu0 %v976_v14, %s3986_s28  ;;  %3343 = vmatprep.subr.bf16.mxu1 %v3342_v43  ;;  %v1315_v43 = vld [vmem:[%s5760_s2 + $0x68] sm:$0xff]  ;;  %v1317_v45 = vld [vmem:[%s5760_s2 + $0x78] sm:$0xff] }
0x1025   :  { %v3354_v46 = vpack.c.bf16 %v1315_v43, %v1311_v41  ;;  %v3482_v47 = vpack.c.bf16 %v1317_v45, %v1313_v44  ;;  %v1348_v41 = vld [vmem:[%s5760_s2 + $0x170] sm:$0xff]  ;;  %v1355_v43 = vld [vmem:[%s5760_s2 + $0x1a8] sm:$0xff]  ;;  %v1353_v44 = vld [vmem:[%s5760_s2 + $0x198] sm:$0xff] }
0x1026   :  { %v1357_v45 = vld [vmem:[%s5760_s2 + $0x1b8] sm:$0xff] }
0x1027   :  { %3345 = vmatpush1.bf16.msra.mxu1 %v3344_v2  ;;  %v1314_v2 = vld [vmem:[%s5760_s2 + $0x60] sm:$0xff] }
0x1028   :  { %3347 = vmatprep.subr.bf16.mxu1 %v3346_v50 }
0x1095   :  { %v988_v15 = vpop.permute.xlu1 %987 }
0x1096   :  { %v4341_v20 = vpop.permute.xlu0 %983 }
0x1097   :  { %v990_v21 = vsel %vm201_vm2, %v988_v15, %v4341_v20 }
0x1098   :  { %2947 = vmatmul.mubr.msk.f32.vlgmr.msra.gmra.mrb[6].mxu0 %vm72_vm3, %v990_v21 }
0x116b   :  { %v1079_v58 = vpop.f32.mrb[6].mxu0 }
0x116c   :  { %v1084_v59 = vadd.f32 %v2945_v24, %v1079_v58  ;;  %v1081_v60 = vpop.f32.mrb[7].mxu0 }
0x116d   :  { %v1085_v61 = vadd.f32 %v2946_v57, %v1081_v60  ;;  %v2951_v57 = vld [vmem:[%s5777_s25 + $0x78] sm:$0xff] }
0x116e   :  { %3879 = vtanh.f32 %v1084_v59  ;;  %v2948_v0 = vmul.f32 -1.442695, %v1084_v59  ;;  %v2950_v59 = vld [vmem:[%s5777_s25 + $0x70] sm:$0xff]  ;;  %s3988_s25 = smov 96  }
0x116f   :  { %3881 = vtanh.f32 %v1085_v61  ;;  %v2949_v1 = vmul.f32 -1.442695, %v1085_v61 }
0x1170   :  { %3883 = vpow2.f32 %v2948_v0 }
0x1171   :  { %3885 = vpow2.f32 %v2949_v1 }
0x1178   :  { %v3880_v62 = vpop.eup %3879 }
0x1179   :  { %v3882_v63 = vpop.eup %3881  ;;  %1095 = vrot.lane.b32.xlu0 %v3880_v62, %s3986_s28 }
0x117a   :  { %1119 = vrot.lane.b32.xlu1 %v3882_v63, %s3986_s28  ;;  %v3884_v3 = vpop.eup %3883 }
0x117b   :  { %v3886_v4 = vpop.eup %3885  ;;  %v1089_v5 = vadd.f32 1.0, %v3884_v3 }
0x117c   :  { %v1113_v8 = vadd.f32 1.0, %v3886_v4 }
0x117d   :  { %3887 = vrcp.f32 %v1089_v5 }
0x117e   :  { %3889 = vrcp.f32 %v1113_v8 }
0x1187   :  { %v3888_v9 = vpop.eup %3887 }
0x1188   :  { %v3890_v12 = vpop.eup %3889  ;;  %v1093_v18 = vmul.f32 %v3888_v9, %v946_v51  ;;  %v1160_v51 = vld [vmem:[%s5759_s1 + $0x60] sm:$0xff] }
0x1189   :  { %v1117_v23 = vmul.f32 %v3890_v12, %v970_v53  ;;  %v3348_v54 = vpack.c.bf16 %v1162_v52, %v1160_v51  ;;  %v1316_v51 = vld [vmem:[%s5760_s2 + $0x70] sm:$0xff]  ;;  %v1319_v52 = vld [vmem:[%s5760_s2 + $0x88] sm:$0xff] }
0x118b   :  { %3349 = vmatpush1.bf16.msra.mxu1 %v3348_v54 }
0x11eb   :  { %v1096_v10 = vpop.permute.xlu0 %1095 }
0x11ec   :  { %v1098_v13 = vmul.f32 %v3888_v9, %v1096_v10  ;;  %v1120_v16 = vpop.permute.xlu1 %1119 }
0x11ed   :  { %v1122_v17 = vmul.f32 %v3890_v12, %v1120_v16 }
0x11ee   :  { %1100 = vrot.lane.b32.xlu0 %v1098_v13, %s3987_s29 }
0x11ef   :  { %1124 = vrot.lane.b32.xlu1 %v1122_v17, %s3987_s29 }
0x1260   :  { %v1101_v19 = vpop.permute.xlu0 %1100 }
0x1261   :  { %v4356_v25 = vadd.f32 %v1101_v19, %v1093_v18  ;;  %v1125_v26 = vpop.permute.xlu1 %1124 }
0x1262   :  { %v4358_v27 = vadd.f32 %v1125_v26, %v1117_v23 }
0x1263   :  { %3891 = vtanh.f32 %v4356_v25 }
0x1264   :  { %3893 = vtanh.f32 %v4358_v27 }
0x126d   :  { %v3892_v49 = vpop.eup %3891 }
0x126e   :  { %v3894_v53 = vpop.eup %3893  ;;  %1106 = vrot.lane.b32.xlu0 %v3892_v49, %s3986_s28  ;;  %v1312_v49 = vld [vmem:[%s5760_s2 + $0x50] sm:$0xff] }
0x126f   :  { %1130 = vrot.lane.b32.xlu1 %v3894_v53, %s3986_s28  ;;  %v1323_v53 = vld [vmem:[%s5760_s2 + $0xa8] sm:$0xff]  ;;  %v3484_v54 = vpack.c.bf16 %v1316_v51, %v1312_v49  ;;  %v1354_v49 = vld [vmem:[%s5760_s2 + $0x1a0] sm:$0xff]  ;;  %v3502_v51 = vpack.c.bf16 %v1357_v45, %v1353_v44 }
0x1270   :  { %v1391_v44 = vld [vmem:[%s5760_s2 + $0x2c8] sm:$0xff] }
0x1271   :  { %v1395_v45 = vld [vmem:[%s5760_s2 + $0x2e8] sm:$0xff] }
0x12e0   :  { %v1107_v7 = vpop.permute.xlu0 %1106 }
0x12e1   :  { %v1109_v55 = vmul.f32 %v3888_v9, %v1107_v7  ;;  %v1131_v56 = vpop.permute.xlu1 %1130  ;;  %v3358_v7 = vpack.c.bf16 %v1323_v53, %v1319_v52  ;;  %v1356_v52 = vld [vmem:[%s5760_s2 + $0x1b0] sm:$0xff]  ;;  %v1359_v53 = vld [vmem:[%s5760_s2 + $0x1c8] sm:$0xff] }
0x12e2   :  { %v4412_v14 = vmul.f32 %v3890_v12, %v1131_v56  ;;  %v1325_v56 = vld [vmem:[%s5760_s2 + $0xb8] sm:$0xff] }
0x12e3   :  { %1135 = vrot.lane.b32.xlu0 %v1109_v55, %s3987_s29  ;;  %v1321_v55 = vld [vmem:[%s5760_s2 + $0x98] sm:$0xff] }
0x12e4   :  { %1141 = vrot.lane.b32.xlu1 %v4412_v14, %s3986_s28 }
0x1355   :  { %v1136_v15 = vpop.permute.xlu0 %1135 }
0x1356   :  { %1138 = vst.msk [vmem:[#allocation2 + $0x18] sm:$0xff] %vm201_vm2, %v1136_v15  ;;  %v1142_v21 = vpop.permute.xlu1 %1141 }
0x1357   :  { %v1144_v24 = vsel %vm201_vm2, %v1136_v15, %v1142_v21  ;;  %v1318_v15 = vld [vmem:[%s5760_s2 + $0x80] sm:$0xff]  ;;  %v3486_v21 = vpack.c.bf16 %v1325_v56, %v1321_v55  ;;  %v1365_v55 = vld [vmem:[%s5760_s2 + $0x1f8] sm:$0xff] }
0x1358   :  { %2952 = vmatmul.mubr.msk.f32.vlgmr.msra.gmra.mrb[6].mxu1 %vm72_vm3, %v1144_v24  ;;  %v1322_v24 = vld [vmem:[%s5760_s2 + $0xa0] sm:$0xff] }
0x142b   :  { %v1233_v58 = vpop.f32.mrb[6].mxu1 }
0x142c   :  { %v1235_v60 = vpop.f32.mrb[7].mxu1  ;;  %v1238_v62 = vadd.f32 %v2950_v59, %v1233_v58  ;;  %v1324_v58 = vld [vmem:[%s5760_s2 + $0xb0] sm:$0xff]  ;;  %v3360_v59 = vpack.c.bf16 %v1322_v24, %v1318_v15  ;;  %v1358_v24 = vld [vmem:[%s5760_s2 + $0x1c0] sm:$0xff] }
0x142d   :  { %v1239_v61 = vadd.f32 %v2951_v57, %v1235_v60  ;;  %v1320_v57 = vld [vmem:[%s5760_s2 + $0x90] sm:$0xff]  ;;  %v1327_v60 = vld [vmem:[%s5760_s2 + $0xc8] sm:$0xff] }
0x142e   :  { %v2953_v3 = vmul.f32 -1.442695, %v1238_v62 }
0x142f   :  { %3895 = vtanh.f32 %v1239_v61  ;;  %v2954_v1 = vmul.f32 -1.442695, %v1239_v61  ;;  %v1331_v61 = vld [vmem:[%s5760_s2 + $0xe8] sm:$0xff] }
0x1430   :  { %3897 = vtanh.f32 %v1238_v62  ;;  %v1329_v62 = vld [vmem:[%s5760_s2 + $0xd8] sm:$0xff] }
0x1431   :  { %3899 = vpow2.f32 %v2954_v1  ;;  %v1333_v1 = vld [vmem:[%s5760_s2 + $0xf8] sm:$0xff] }
0x1432   :  { %3901 = vpow2.f32 %v2953_v3  ;;  %v1326_v3 = vld [vmem:[%s5760_s2 + $0xc0] sm:$0xff] }
0x1439   :  { %v3896_v63 = vpop.eup %3895 }
0x143a   :  { %1273 = vrot.lane.b32.xlu0 %v3896_v63, %s3986_s28  ;;  %v3898_v0 = vpop.eup %3897  ;;  %v3488_v63 = vpack.c.bf16 %v1324_v58, %v1320_v57  ;;  %v1362_v57 = vld [vmem:[%s5760_s2 + $0x1e0] sm:$0xff]  ;;  %v1360_v58 = vld [vmem:[%s5760_s2 + $0x1d0] sm:$0xff] }
0x143b   :  { %v3900_v4 = vpop.eup %3899 }
0x143c   :  { %v1267_v5 = vadd.f32 1.0, %v3900_v4  ;;  %v3902_v8 = vpop.eup %3901  ;;  %v1330_v4 = vld [vmem:[%s5760_s2 + $0xe0] sm:$0xff] }
0x143d   :  { %v1243_v9 = vadd.f32 1.0, %v3902_v8  ;;  %v1328_v8 = vld [vmem:[%s5760_s2 + $0xd0] sm:$0xff] }
0x143e   :  { %1249 = vrot.lane.b32.xlu0 %v3898_v0, %s3986_s28  ;;  %3903 = vrcp.f32 %v1267_v5  ;;  %v3362_v0 = vpack.c.bf16 %v1331_v61, %v1327_v60  ;;  %v3490_v5 = vpack.c.bf16 %v1333_v1, %v1329_v62  ;;  %v1364_v60 = vld [vmem:[%s5760_s2 + $0x1f0] sm:$0xff]  ;;  %v1367_v61 = vld [vmem:[%s5760_s2 + $0x208] sm:$0xff]  ;;  %v3380_v1 = vpack.c.bf16 %v1362_v57, %v1358_v24 }
0x143f   :  { %3905 = vrcp.f32 %v1243_v9  ;;  %v1332_v9 = vld [vmem:[%s5760_s2 + $0xf0] sm:$0xff]  ;;  %v1371_v62 = vld [vmem:[%s5760_s2 + $0x228] sm:$0xff] }
0x1448   :  { %v4428_v10 = vpop.eup %3903 }
0x1449   :  { %v4432_v16 = vpop.eup %3905  ;;  %v1271_v19 = vmul.f32 %v4428_v10, %v4358_v27 }
0x144a   :  { %v1247_v29 = vmul.f32 %v4432_v16, %v4356_v25 }
0x14ac   :  { %v1274_v12 = vpop.permute.xlu0 %1273 }
0x14ad   :  { %v1276_v13 = vmul.f32 %v4428_v10, %v1274_v12  ;;  %v1335_v12 = vld [vmem:[%s5760_s2 + $0x108] sm:$0xff] }
0x14af   :  { %1278 = vrot.lane.b32.xlu1 %v1276_v13, %s3987_s29  ;;  %v1339_v13 = vld [vmem:[%s5760_s2 + $0x128] sm:$0xff] }
0x14b0   :  { %v1250_v17 = vpop.permute.xlu0 %1249 }
0x14b1   :  { %v1252_v18 = vmul.f32 %v4432_v16, %v1250_v17  ;;  %v1337_v17 = vld [vmem:[%s5760_s2 + $0x118] sm:$0xff] }
0x14b3   :  { %1254 = vrot.lane.b32.xlu1 %v1252_v18, %s3987_s29  ;;  %v1341_v18 = vld [vmem:[%s5760_s2 + $0x138] sm:$0xff] }
0x14b7   :  { %667 = vrot.lane.b32.xlu1 %v4287_v48, %s3988_s25 }
0x1521   :  { %v1279_v23 = vpop.permute.xlu1 %1278 }
0x1522   :  { %v4440_v26 = vadd.f32 %v1279_v23, %v1271_v19  ;;  %v3364_v19 = vpack.c.bf16 %v1330_v4, %v1326_v3  ;;  %v3492_v23 = vpack.c.bf16 %v1332_v9, %v1328_v8  ;;  %v3508_v3 = vpack.c.bf16 %v1364_v60, %v1360_v58  ;;  %v1370_v8 = vld [vmem:[%s5760_s2 + $0x220] sm:$0xff]  ;;  %v1368_v9 = vld [vmem:[%s5760_s2 + $0x210] sm:$0xff] }
0x1523   :  { %v3382_v4 = vpack.c.bf16 %v1371_v62, %v1367_v61  ;;  %v1398_v58 = vld [vmem:[%s5760_s2 + $0x300] sm:$0xff]  ;;  %v1400_v60 = vld [vmem:[%s5760_s2 + $0x310] sm:$0xff] }
0x1524   :  { %3907 = vtanh.f32 %v4440_v26  ;;  %v1404_v62 = vld [vmem:[%s5760_s2 + $0x330] sm:$0xff] }
0x1525   :  { %v1255_v28 = vpop.permute.xlu1 %1254 }
0x1526   :  { %v4445_v30 = vadd.f32 %v1255_v28, %v1247_v29  ;;  %v3366_v28 = vpack.c.bf16 %v1339_v13, %v1335_v12  ;;  %v1334_v29 = vld [vmem:[%s5760_s2 + $0x100] sm:$0xff]  ;;  %v1372_v13 = vld [vmem:[%s5760_s2 + $0x230] sm:$0xff] }
0x1528   :  { %3909 = vtanh.f32 %v4445_v30 }
0x1529   :  { %v668_v31 = vpop.permute.xlu1 %667 }
0x152a   :  { %670 = vst.msk [vmem:[#allocation2 + $0x8] sm:$0xff] %vm357_vm5, %v668_v31  ;;  %v1338_v31 = vld [vmem:[%s5760_s2 + $0x120] sm:$0xff] }
0x152b   :  { %828 = vst.msk [vmem:[#allocation2 + $0x8] sm:$0xff] %vm203_vm1, %v4315_v22  ;;  %v1303_v22 = vld [vmem:[%s5760_s2 + $0x8] sm:$0xff] }
0x152c   :  { %986 = vst.msk [vmem:[#allocation2 + $0x8] sm:$0xff] %vm363_vm4, %v4341_v20  ;;  %v1307_v20 = vld [vmem:[%s5760_s2 + $0x28] sm:$0xff] }
0x152d   :  { %v3350_v33 = vpack.c.bf16 %v1307_v20, %v1303_v22  ;;  %v1343_v22 = vld [vmem:[%s5760_s2 + $0x148] sm:$0xff] }
0x152e   :  { %v3908_v48 = vpop.eup %3907  ;;  %v1347_v20 = vld [vmem:[%s5760_s2 + $0x168] sm:$0xff] }
0x152f   :  { %1284 = vrot.lane.b32.xlu0 %v3908_v48, %s3986_s28  ;;  %3351 = vmatprep.subr.bf16.mxu0 %v3350_v33  ;;  %v1336_v48 = vld [vmem:[%s5760_s2 + $0x110] sm:$0xff]  ;;  %v1349_v33 = vld [vmem:[%s5760_s2 + $0x178] sm:$0xff]  ;;  %v3370_v36 = vpack.c.bf16 %v1347_v20, %v1343_v22 }
0x1530   :  { %3353 = vmatpush1.bf16.msra.mxu0 %v3352_v38  ;;  %v1346_v38 = vld [vmem:[%s5760_s2 + $0x160] sm:$0xff]  ;;  %v1380_v20 = vld [vmem:[%s5760_s2 + $0x270] sm:$0xff] }
0x1531   :  { %3355 = vmatprep.subr.bf16.mxu0 %v3354_v46 }
0x1532   :  { %v3910_v27 = vpop.eup %3909 }
0x1533   :  { %354 = vrot.lane.b32.xlu0 %v4232_v34, %s3988_s25  ;;  %v1299_v25 = vld [vmem:[#allocation2 + $0x8] sm:$0xff]  ;;  %v1309_v34 = vld [vmem:[%s5760_s2 + $0x38] sm:$0xff] }
0x1534   :  { %1622 = vmatprep.mubr.f32.mxu0 %v1299_v25  ;;  %1764 = vmatprep.mubr.f32.mxu1 %v1299_v25  ;;  %v3478_v37 = vpack.c.bf16 %v1309_v34, %v1305_v32  ;;  %v3494_v25 = vpack.c.bf16 %v1341_v18, %v1337_v17  ;;  %v1345_v32 = vld [vmem:[%s5760_s2 + $0x158] sm:$0xff]  ;;  %v3368_v34 = vpack.c.bf16 %v1338_v31, %v1334_v29  ;;  %v1375_v17 = vld [vmem:[%s5760_s2 + $0x248] sm:$0xff] }
0x1535   :  { %v3498_v40 = vpack.c.bf16 %v1349_v33, %v1345_v32  ;;  %v1379_v18 = vld [vmem:[%s5760_s2 + $0x268] sm:$0xff]  ;;  %v3512_v29 = vpack.c.bf16 %v1372_v13, %v1368_v9  ;;  %v1406_v9 = vld [vmem:[%s5760_s2 + $0x340] sm:$0xff]  ;;  %v1408_v13 = vld [vmem:[%s5760_s2 + $0x350] sm:$0xff] }
0x1536   :  { %3479 = vmatprep.subr.bf16.mxu1 %v3478_v37  ;;  %v1342_v37 = vld [vmem:[%s5760_s2 + $0x140] sm:$0xff]  ;;  %v3386_v31 = vpack.c.bf16 %v1379_v18, %v1375_v17  ;;  %v1383_v32 = vld [vmem:[%s5760_s2 + $0x288] sm:$0xff]  ;;  %v1412_v18 = vld [vmem:[%s5760_s2 + $0x370] sm:$0xff] }
0x1537   :  { %1260 = vrot.lane.b32.xlu0 %v3910_v27, %s3986_s28  ;;  %3481 = vmatpush1.bf16.msra.mxu1 %v3480_v42  ;;  %v1340_v27 = vld [vmem:[%s5760_s2 + $0x130] sm:$0xff]  ;;  %v1351_v42 = vld [vmem:[%s5760_s2 + $0x188] sm:$0xff]  ;;  %v3372_v46 = vpack.c.bf16 %v1346_v38, %v1342_v37 }
0x1538   :  { %3483 = vmatprep.subr.bf16.mxu1 %v3482_v47  ;;  %v3496_v35 = vpack.c.bf16 %v1340_v27, %v1336_v48  ;;  %v3500_v47 = vpack.c.bf16 %v1348_v41, %v1344_v39  ;;  %v1374_v48 = vld [vmem:[%s5760_s2 + $0x240] sm:$0xff]  ;;  %v1376_v27 = vld [vmem:[%s5760_s2 + $0x250] sm:$0xff]  ;;  %v1387_v33 = vld [vmem:[%s5760_s2 + $0x2a8] sm:$0xff] }
0x1539   :  { %v3516_v37 = vpack.c.bf16 %v1380_v20, %v1376_v27  ;;  %v3390_v38 = vpack.c.bf16 %v1387_v33, %v1383_v32  ;;  %v1382_v39 = vld [vmem:[%s5760_s2 + $0x280] sm:$0xff]  ;;  %v1384_v41 = vld [vmem:[%s5760_s2 + $0x290] sm:$0xff] }
0x153a   :  { %v1418_v20 = vld [vmem:[%s5760_s2 + $0x3a0] sm:$0xff]  ;;  %v1416_v32 = vld [vmem:[%s5760_s2 + $0x390] sm:$0xff] }
0x153b   :  { %978 = vrot.lane.b32.xlu0 %v4336_v11, %s3988_s25  ;;  %v1310_v11 = vld [vmem:[%s5760_s2 + $0x40] sm:$0xff]  ;;  %3485 = vmatpush1.bf16.msra.mxu1 %v3484_v54  ;;  %v1363_v54 = vld [vmem:[%s5760_s2 + $0x1e8] sm:$0xff] }
0x153c   :  { %v3356_v50 = vpack.c.bf16 %v1314_v2, %v1310_v11  ;;  %3487 = vmatprep.subr.bf16.mxu1 %v3486_v21  ;;  %v3374_v11 = vpack.c.bf16 %v1355_v43, %v1351_v42  ;;  %v1350_v2 = vld [vmem:[%s5760_s2 + $0x180] sm:$0xff]  ;;  %v3378_v21 = vpack.c.bf16 %v1363_v54, %v1359_v53  ;;  %v1388_v43 = vld [vmem:[%s5760_s2 + $0x2b0] sm:$0xff] }
0x153d   :  { %v3376_v56 = vpack.c.bf16 %v1354_v49, %v1350_v2  ;;  %v3520_v2 = vpack.c.bf16 %v1388_v43, %v1384_v41  ;;  %v3394_v49 = vpack.c.bf16 %v1395_v45, %v1391_v44  ;;  %v1396_v54 = vld [vmem:[%s5760_s2 + $0x2f0] sm:$0xff]  ;;  %v1422_v41 = vld [vmem:[%s5760_s2 + $0x3c0] sm:$0xff] }
0x153e   :  { %3357 = vmatpush1.bf16.msra.mxu0 %v3356_v50  ;;  %v1352_v50 = vld [vmem:[%s5760_s2 + $0x190] sm:$0xff] }
0x153f   :  { %1977 = vrot.lane.b32.xlu0 %v4440_v26, %s3988_s25  ;;  %3359 = vmatprep.subr.bf16.mxu0 %v3358_v7  ;;  %v1361_v7 = vld [vmem:[%s5760_s2 + $0x1d8] sm:$0xff]  ;;  %v3504_v15 = vpack.c.bf16 %v1356_v52, %v1352_v50  ;;  %v1390_v50 = vld [vmem:[%s5760_s2 + $0x2c0] sm:$0xff]  ;;  %v1392_v52 = vld [vmem:[%s5760_s2 + $0x2d0] sm:$0xff] }
0x1540   :  { %3489 = vmatpush1.bf16.msra.mxu1 %v3488_v63  ;;  %v1369_v63 = vld [vmem:[%s5760_s2 + $0x218] sm:$0xff]  ;;  %v3524_v24 = vpack.c.bf16 %v1396_v54, %v1392_v52  ;;  %v1424_v45 = vld [vmem:[%s5760_s2 + $0x3d0] sm:$0xff] }
0x1541   :  { %3491 = vmatprep.subr.bf16.mxu1 %v3490_v5  ;;  %v1366_v5 = vld [vmem:[%s5760_s2 + $0x200] sm:$0xff] }
0x1542   :  { %3361 = vmatpush1.bf16.msra.mxu0 %v3360_v59  ;;  %v3506_v59 = vpack.c.bf16 %v1365_v55, %v1361_v7  ;;  %v1399_v7 = vld [vmem:[%s5760_s2 + $0x308] sm:$0xff] }
0x1543   :  { %3363 = vmatprep.subr.bf16.mxu0 %v3362_v0  ;;  %v1373_v0 = vld [vmem:[%s5760_s2 + $0x238] sm:$0xff]  ;;  %v1403_v55 = vld [vmem:[%s5760_s2 + $0x328] sm:$0xff] }
0x1544   :  { %3493 = vmatpush1.bf16.msra.mxu1 %v3492_v23  ;;  %v3510_v12 = vpack.c.bf16 %v1373_v0, %v1369_v63  ;;  %v1381_v23 = vld [vmem:[%s5760_s2 + $0x278] sm:$0xff]  ;;  %v3398_v57 = vpack.c.bf16 %v1403_v55, %v1399_v7  ;;  %v1407_v63 = vld [vmem:[%s5760_s2 + $0x348] sm:$0xff] }
0x1545   :  { %3495 = vmatprep.subr.bf16.mxu1 %v3494_v25  ;;  %v1378_v25 = vld [vmem:[%s5760_s2 + $0x260] sm:$0xff]  ;;  %v1411_v0 = vld [vmem:[%s5760_s2 + $0x368] sm:$0xff] }
0x1546   :  { %3365 = vmatpush1.bf16.msra.mxu0 %v3364_v19  ;;  %v1377_v19 = vld [vmem:[%s5760_s2 + $0x258] sm:$0xff] }
0x1547   :  { %3367 = vmatprep.subr.bf16.mxu0 %v3366_v28  ;;  %v3384_v28 = vpack.c.bf16 %v1370_v8, %v1366_v5  ;;  %v3514_v22 = vpack.c.bf16 %v1381_v23, %v1377_v19  ;;  %v3528_v5 = vpack.c.bf16 %v1404_v62, %v1400_v60  ;;  %v3402_v8 = vpack.c.bf16 %v1411_v0, %v1407_v63  ;;  %v1415_v19 = vld [vmem:[%s5760_s2 + $0x388] sm:$0xff]  ;;  %v1445_v62 = vld [vmem:[%s5760_s2 + $0x478] sm:$0xff] }
0x1548   :  { %3497 = vmatpush1.bf16.msra.mxu1 %v3496_v35  ;;  %v1389_v35 = vld [vmem:[%s5760_s2 + $0x2b8] sm:$0xff]  ;;  %v1419_v23 = vld [vmem:[%s5760_s2 + $0x3a8] sm:$0xff] }
0x1549   :  { %3499 = vmatprep.subr.bf16.mxu1 %v3498_v40  ;;  %v1386_v40 = vld [vmem:[%s5760_s2 + $0x2a0] sm:$0xff]  ;;  %v1443_v60 = vld [vmem:[%s5760_s2 + $0x468] sm:$0xff] }
0x154a   :  { %3369 = vmatpush1.bf16.msra.mxu0 %v3368_v34  ;;  %v1385_v34 = vld [vmem:[%s5760_s2 + $0x298] sm:$0xff] }
0x154b   :  { %3371 = vmatprep.subr.bf16.mxu0 %v3370_v36  ;;  %v3388_v36 = vpack.c.bf16 %v1378_v25, %v1374_v48  ;;  %v3518_v42 = vpack.c.bf16 %v1389_v35, %v1385_v34  ;;  %v3532_v48 = vpack.c.bf16 %v1412_v18, %v1408_v13  ;;  %v3406_v25 = vpack.c.bf16 %v1419_v23, %v1415_v19  ;;  %v1420_v34 = vld [vmem:[%s5760_s2 + $0x3b0] sm:$0xff]  ;;  %v1451_v13 = vld [vmem:[%s5760_s2 + $0x4a8] sm:$0xff]  ;;  %v1449_v19 = vld [vmem:[%s5760_s2 + $0x498] sm:$0xff] }
0x154c   :  { %3501 = vmatpush1.bf16.msra.mxu1 %v3500_v47  ;;  %v1397_v47 = vld [vmem:[%s5760_s2 + $0x2f8] sm:$0xff]  ;;  %v3536_v35 = vpack.c.bf16 %v1420_v34, %v1416_v32  ;;  %v1455_v32 = vld [vmem:[%s5760_s2 + $0x4c8] sm:$0xff] }
0x154d   :  { %3503 = vmatprep.subr.bf16.mxu1 %v3502_v51  ;;  %v1394_v51 = vld [vmem:[%s5760_s2 + $0x2e0] sm:$0xff]  ;;  %v1453_v23 = vld [vmem:[%s5760_s2 + $0x4b8] sm:$0xff] }
0x154e   :  { %3373 = vmatpush1.bf16.msra.mxu0 %v3372_v46  ;;  %v1393_v46 = vld [vmem:[%s5760_s2 + $0x2d8] sm:$0xff] }
0x154f   :  { %3375 = vmatprep.subr.bf16.mxu0 %v3374_v11  ;;  %v3392_v11 = vpack.c.bf16 %v1386_v40, %v1382_v39  ;;  %v3522_v53 = vpack.c.bf16 %v1397_v47, %v1393_v46  ;;  %v1429_v40 = vld [vmem:[%s5760_s2 + $0x3f8] sm:$0xff]  ;;  %v1428_v46 = vld [vmem:[%s5760_s2 + $0x3f0] sm:$0xff]  ;;  %v1431_v47 = vld [vmem:[%s5760_s2 + $0x408] sm:$0xff] }
0x1550   :  { %3505 = vmatpush1.bf16.msra.mxu1 %v3504_v15  ;;  %v1405_v15 = vld [vmem:[%s5760_s2 + $0x338] sm:$0xff] }
0x1551   :  { %3507 = vmatprep.subr.bf16.mxu1 %v3506_v59  ;;  %v1402_v59 = vld [vmem:[%s5760_s2 + $0x320] sm:$0xff]  ;;  %v1457_v34 = vld [vmem:[%s5760_s2 + $0x4d8] sm:$0xff] }
0x1552   :  { %3377 = vmatpush1.bf16.msra.mxu0 %v3376_v56  ;;  %v1401_v56 = vld [vmem:[%s5760_s2 + $0x318] sm:$0xff] }
0x1553   :  { %3379 = vmatprep.subr.bf16.mxu0 %v3378_v21  ;;  %v3396_v21 = vpack.c.bf16 %v1394_v51, %v1390_v50  ;;  %v3526_v61 = vpack.c.bf16 %v1405_v15, %v1401_v56  ;;  %v1437_v50 = vld [vmem:[%s5760_s2 + $0x438] sm:$0xff] }
0x1554   :  { %3509 = vmatpush1.bf16.msra.mxu1 %v3508_v3  ;;  %v1413_v3 = vld [vmem:[%s5760_s2 + $0x378] sm:$0xff] }
0x1555   :  { %3511 = vmatprep.subr.bf16.mxu1 %v3510_v12  ;;  %v1410_v12 = vld [vmem:[%s5760_s2 + $0x360] sm:$0xff] }
0x1556   :  { %3381 = vmatpush1.bf16.msra.mxu0 %v3380_v1  ;;  %v1409_v1 = vld [vmem:[%s5760_s2 + $0x358] sm:$0xff] }
0x1557   :  { %3383 = vmatprep.subr.bf16.mxu0 %v3382_v4  ;;  %v3400_v4 = vpack.c.bf16 %v1402_v59, %v1398_v58  ;;  %v3530_v17 = vpack.c.bf16 %v1413_v3, %v1409_v1  ;;  %v1436_v58 = vld [vmem:[%s5760_s2 + $0x430] sm:$0xff]  ;;  %v1439_v59 = vld [vmem:[%s5760_s2 + $0x448] sm:$0xff]  ;;  %v1438_v1 = vld [vmem:[%s5760_s2 + $0x440] sm:$0xff] }
0x1558   :  { %3513 = vmatpush1.bf16.msra.mxu1 %v3512_v29  ;;  %v1421_v29 = vld [vmem:[%s5760_s2 + $0x3b8] sm:$0xff]  ;;  %v1442_v3 = vld [vmem:[%s5760_s2 + $0x460] sm:$0xff] }
0x1559   :  { %3515 = vmatprep.subr.bf16.mxu1 %v3514_v22  ;;  %v1414_v22 = vld [vmem:[%s5760_s2 + $0x380] sm:$0xff] }
0x155a   :  { %3385 = vmatpush1.bf16.msra.mxu0 %v3384_v28  ;;  %v1417_v28 = vld [vmem:[%s5760_s2 + $0x398] sm:$0xff]  ;;  %v3408_v33 = vpack.c.bf16 %v1418_v20, %v1414_v22  ;;  %v1448_v22 = vld [vmem:[%s5760_s2 + $0x490] sm:$0xff] }
0x155b   :  { %3387 = vmatprep.subr.bf16.mxu0 %v3386_v31  ;;  %v3404_v31 = vpack.c.bf16 %v1410_v12, %v1406_v9  ;;  %v3534_v27 = vpack.c.bf16 %v1421_v29, %v1417_v28  ;;  %v1444_v9 = vld [vmem:[%s5760_s2 + $0x470] sm:$0xff]  ;;  %v1447_v12 = vld [vmem:[%s5760_s2 + $0x488] sm:$0xff]  ;;  %v3420_v28 = vpack.c.bf16 %v1442_v3, %v1438_v1 }
0x155c   :  { %3517 = vmatpush1.bf16.msra.mxu1 %v3516_v37  ;;  %v1427_v37 = vld [vmem:[%s5760_s2 + $0x3e8] sm:$0xff]  ;;  %v1452_v20 = vld [vmem:[%s5760_s2 + $0x4b0] sm:$0xff] }
0x155d   :  { %3519 = vmatprep.subr.bf16.mxu1 %v3518_v42  ;;  %v1426_v42 = vld [vmem:[%s5760_s2 + $0x3e0] sm:$0xff] }
0x155e   :  { %3389 = vmatpush1.bf16.msra.mxu0 %v3388_v36  ;;  %v1423_v36 = vld [vmem:[%s5760_s2 + $0x3c8] sm:$0xff]  ;;  %v3412_v44 = vpack.c.bf16 %v1426_v42, %v1422_v41 }
0x155f   :  { %3391 = vmatprep.subr.bf16.mxu0 %v3390_v38  ;;  %v1425_v38 = vld [vmem:[%s5760_s2 + $0x3d8] sm:$0xff]  ;;  %v3410_v39 = vpack.c.bf16 %v1427_v37, %v1423_v36  ;;  %v3552_v37 = vpack.c.bf16 %v1452_v20, %v1448_v22  ;;  %v1488_v22 = vld [vmem:[%s5760_s2 + $0x5d0] sm:$0xff] }
0x1560   :  { %3521 = vmatpush1.bf16.msra.mxu1 %v3520_v2  ;;  %v3538_v43 = vpack.c.bf16 %v1429_v40, %v1425_v38  ;;  %v1435_v2 = vld [vmem:[%s5760_s2 + $0x428] sm:$0xff]  ;;  %v1454_v38 = vld [vmem:[%s5760_s2 + $0x4c0] sm:$0xff]  ;;  %v1456_v40 = vld [vmem:[%s5760_s2 + $0x4d0] sm:$0xff] }
0x1561   :  { %3523 = vmatprep.subr.bf16.mxu1 %v3522_v53  ;;  %v3414_v51 = vpack.c.bf16 %v1435_v2, %v1431_v47  ;;  %v1465_v47 = vld [vmem:[%s5760_s2 + $0x518] sm:$0xff]  ;;  %v1492_v20 = vld [vmem:[%s5760_s2 + $0x5f0] sm:$0xff] }
0x1562   :  { %3393 = vmatpush1.bf16.msra.mxu0 %v3392_v11  ;;  %v3540_v11 = vpack.c.bf16 %v1428_v46, %v1424_v45  ;;  %v1467_v45 = vld [vmem:[%s5760_s2 + $0x528] sm:$0xff] }
0x1563   :  { %3395 = vmatprep.subr.bf16.mxu0 %v3394_v49  ;;  %v1433_v49 = vld [vmem:[%s5760_s2 + $0x418] sm:$0xff] }
0x1564   :  { %3525 = vmatpush1.bf16.msra.mxu1 %v3524_v24  ;;  %v3542_v52 = vpack.c.bf16 %v1437_v50, %v1433_v49  ;;  %v1434_v24 = vld [vmem:[%s5760_s2 + $0x420] sm:$0xff] }
0x1565   :  { %3527 = vmatprep.subr.bf16.mxu1 %v3526_v61  ;;  %v1441_v61 = vld [vmem:[%s5760_s2 + $0x458] sm:$0xff]  ;;  %v1462_v50 = vld [vmem:[%s5760_s2 + $0x500] sm:$0xff] }
0x1566   :  { %3397 = vmatpush1.bf16.msra.mxu0 %v3396_v21 }
0x1567   :  { %3399 = vmatprep.subr.bf16.mxu0 %v3398_v57  ;;  %v1432_v57 = vld [vmem:[%s5760_s2 + $0x410] sm:$0xff] }
0x1568   :  { %3529 = vmatpush1.bf16.msra.mxu1 %v3528_v5  ;;  %v3544_v0 = vpack.c.bf16 %v1436_v58, %v1432_v57  ;;  %v3418_v5 = vpack.c.bf16 %v1443_v60, %v1439_v59  ;;  %v1472_v59 = vld [vmem:[%s5760_s2 + $0x550] sm:$0xff] }
0x1569   :  { %3531 = vmatprep.subr.bf16.mxu1 %v3530_v17  ;;  %v1476_v60 = vld [vmem:[%s5760_s2 + $0x570] sm:$0xff] }
0x156a   :  { %3401 = vmatpush1.bf16.msra.mxu0 %v3400_v4  ;;  %v1440_v4 = vld [vmem:[%s5760_s2 + $0x450] sm:$0xff]  ;;  %v3564_v3 = vpack.c.bf16 %v1476_v60, %v1472_v59  ;;  %v1519_v60 = vld [vmem:[%s5760_s2 + $0x6c8] sm:$0xff] }
0x156b   :  { %3403 = vmatprep.subr.bf16.mxu0 %v3402_v8  ;;  %v3546_v8 = vpack.c.bf16 %v1445_v62, %v1441_v61  ;;  %v3548_v29 = vpack.c.bf16 %v1444_v9, %v1440_v4  ;;  %v1479_v61 = vld [vmem:[%s5760_s2 + $0x588] sm:$0xff]  ;;  %v1478_v4 = vld [vmem:[%s5760_s2 + $0x580] sm:$0xff]  ;;  %v1516_v59 = vld [vmem:[%s5760_s2 + $0x6b0] sm:$0xff] }
0x156c   :  { %3533 = vmatpush1.bf16.msra.mxu1 %v3532_v48  ;;  %v1450_v48 = vld [vmem:[%s5760_s2 + $0x4a0] sm:$0xff]  ;;  %v1483_v62 = vld [vmem:[%s5760_s2 + $0x5a8] sm:$0xff] }
0x156d   :  { %3535 = vmatprep.subr.bf16.mxu1 %v3534_v27  ;;  %v3550_v27 = vpack.c.bf16 %v1453_v23, %v1449_v19  ;;  %v1489_v19 = vld [vmem:[%s5760_s2 + $0x5d8] sm:$0xff] }
0x156e   :  { %3405 = vmatpush1.bf16.msra.mxu0 %v3404_v31  ;;  %v1446_v31 = vld [vmem:[%s5760_s2 + $0x480] sm:$0xff]  ;;  %v1493_v23 = vld [vmem:[%s5760_s2 + $0x5f8] sm:$0xff] }
0x156f   :  { %3407 = vmatprep.subr.bf16.mxu0 %v3406_v25  ;;  %v3422_v25 = vpack.c.bf16 %v1451_v13, %v1447_v12  ;;  %v3424_v36 = vpack.c.bf16 %v1450_v48, %v1446_v31  ;;  %v1480_v12 = vld [vmem:[%s5760_s2 + $0x590] sm:$0xff]  ;;  %v1486_v31 = vld [vmem:[%s5760_s2 + $0x5c0] sm:$0xff] }
0x1570   :  { %3537 = vmatpush1.bf16.msra.mxu1 %v3536_v35  ;;  %v1461_v35 = vld [vmem:[%s5760_s2 + $0x4f8] sm:$0xff]  ;;  %v1484_v13 = vld [vmem:[%s5760_s2 + $0x5b0] sm:$0xff]  ;;  %v1490_v48 = vld [vmem:[%s5760_s2 + $0x5e0] sm:$0xff] }
0x1571   :  { %3539 = vmatprep.subr.bf16.mxu1 %v3538_v43  ;;  %v3554_v42 = vpack.c.bf16 %v1461_v35, %v1457_v34  ;;  %v1460_v43 = vld [vmem:[%s5760_s2 + $0x4f0] sm:$0xff]  ;;  %v1497_v34 = vld [vmem:[%s5760_s2 + $0x618] sm:$0xff] }
0x1572   :  { %3409 = vmatpush1.bf16.msra.mxu0 %v3408_v33  ;;  %v1459_v33 = vld [vmem:[%s5760_s2 + $0x4e8] sm:$0xff]  ;;  %v3556_v49 = vpack.c.bf16 %v1460_v43, %v1456_v40  ;;  %v1501_v35 = vld [vmem:[%s5760_s2 + $0x638] sm:$0xff]  ;;  %v1500_v43 = vld [vmem:[%s5760_s2 + $0x630] sm:$0xff] }
0x1573   :  { %3411 = vmatprep.subr.bf16.mxu0 %v3410_v39  ;;  %v1458_v39 = vld [vmem:[%s5760_s2 + $0x4e0] sm:$0xff]  ;;  %v3426_v41 = vpack.c.bf16 %v1459_v33, %v1455_v32  ;;  %v1495_v32 = vld [vmem:[%s5760_s2 + $0x608] sm:$0xff] }
0x1574   :  { %3541 = vmatpush1.bf16.msra.mxu1 %v3540_v11  ;;  %v1469_v11 = vld [vmem:[%s5760_s2 + $0x538] sm:$0xff]  ;;  %v3428_v2 = vpack.c.bf16 %v1458_v39, %v1454_v38  ;;  %v1499_v33 = vld [vmem:[%s5760_s2 + $0x628] sm:$0xff]  ;;  %v1494_v38 = vld [vmem:[%s5760_s2 + $0x600] sm:$0xff] }
0x1575   :  { %3543 = vmatprep.subr.bf16.mxu1 %v3542_v52  ;;  %v1498_v39 = vld [vmem:[%s5760_s2 + $0x620] sm:$0xff]  ;;  %v3446_v40 = vpack.c.bf16 %v1499_v33, %v1495_v32  ;;  %v1539_v32 = vld [vmem:[%s5760_s2 + $0x768] sm:$0xff]  ;;  %v1537_v33 = vld [vmem:[%s5760_s2 + $0x758] sm:$0xff] }
0x1576   :  { %3413 = vmatpush1.bf16.msra.mxu0 %v3412_v44  ;;  %v1463_v44 = vld [vmem:[%s5760_s2 + $0x508] sm:$0xff] }
0x1577   :  { %3415 = vmatprep.subr.bf16.mxu0 %v3414_v51  ;;  %v1466_v51 = vld [vmem:[%s5760_s2 + $0x520] sm:$0xff]  ;;  %v3430_v52 = vpack.c.bf16 %v1467_v45, %v1463_v44  ;;  %v1503_v44 = vld [vmem:[%s5760_s2 + $0x648] sm:$0xff] }
0x1578   :  { %v1507_v45 = vld [vmem:[%s5760_s2 + $0x668] sm:$0xff] }
0x15a1   :  { %v1285_v53 = vpop.permute.xlu0 %1284 }
0x15a2   :  { %v1287_v54 = vmul.f32 %v4428_v10, %v1285_v53  ;;  %v3558_v53 = vpack.c.bf16 %v1469_v11, %v1465_v47  ;;  %v1509_v47 = vld [vmem:[%s5760_s2 + $0x678] sm:$0xff]  ;;  %v3448_v11 = vpack.c.bf16 %v1498_v39, %v1494_v38  ;;  %v1538_v38 = vld [vmem:[%s5760_s2 + $0x760] sm:$0xff] }
0x15a4   :  { %1294 = vrot.lane.b32.xlu1 %v1287_v54, %s3986_s28  ;;  %v1866_v10 = vrot.slane %v1287_v54, 1 }
0x15a5   :  { %v355_v7 = vpop.permute.xlu0 %354 }
0x15a6   :  { %358 = vst.msk [vmem:[#allocation2] sm:$0xff] %vm357_vm5, %v355_v7  ;;  %v1468_v7 = vld [vmem:[%s5760_s2 + $0x530] sm:$0xff] }
0x15a7   :  { %1139 = vst.msk [vmem:[#allocation2] sm:$0xff] %vm203_vm1, %v4412_v14 }
0x15a9   :  { %v1261_v55 = vpop.permute.xlu0 %1260 }
0x15aa   :  { %v1263_v56 = vmul.f32 %v4432_v16, %v1261_v55  ;;  %v1430_v16 = vld [vmem:[%s5760_s2 + $0x400] sm:$0xff]  ;;  %v1471_v55 = vld [vmem:[%s5760_s2 + $0x548] sm:$0xff] }
0x15ab   :  { %v3416_v63 = vpack.c.bf16 %v1434_v24, %v1430_v16  ;;  %v1470_v16 = vld [vmem:[%s5760_s2 + $0x540] sm:$0xff] }
0x15ac   :  { %1289 = vrot.lane.b32.xlu1 %v1263_v56, %s3988_s25  ;;  %v1852_v15 = vrot.slane %v1263_v56, 1  ;;  %v1474_v24 = vld [vmem:[%s5760_s2 + $0x560] sm:$0xff] }
0x15ad   :  { %v979_v21 = vpop.permute.xlu0 %978  ;;  %v3436_v1 = vpack.c.bf16 %v1474_v24, %v1470_v16  ;;  %v1514_v16 = vld [vmem:[%s5760_s2 + $0x6a0] sm:$0xff] }
0x15ae   :  { %981 = vst.msk [vmem:[#allocation2 + $0x10] sm:$0xff] %vm357_vm5, %v979_v21  ;;  %1853 = vrot.lane.b32.xlu0 %v1852_v15, %s3986_s28  ;;  %v1473_v15 = vld [vmem:[%s5760_s2 + $0x558] sm:$0xff] }
0x15af   :  { %v1477_v21 = vld [vmem:[%s5760_s2 + $0x578] sm:$0xff] }
0x15b0   :  { %1965 = vrot.lane.b32.xlu1 %v4445_v30, %s3988_s25  ;;  %v3562_v58 = vpack.c.bf16 %v1477_v21, %v1473_v15  ;;  %v1517_v15 = vld [vmem:[%s5760_s2 + $0x6b8] sm:$0xff] }
0x15b2   :  { %1867 = vrot.lane.b32.xlu0 %v1866_v10, %s3986_s28  ;;  %v3432_v10 = vpack.c.bf16 %v1466_v51, %v1462_v50  ;;  %v1506_v50 = vld [vmem:[%s5760_s2 + $0x660] sm:$0xff]  ;;  %v3450_v51 = vpack.c.bf16 %v1507_v45, %v1503_v44  ;;  %v1547_v44 = vld [vmem:[%s5760_s2 + $0x7a8] sm:$0xff]  ;;  %v1545_v45 = vld [vmem:[%s5760_s2 + $0x798] sm:$0xff] }
0x15b4   :  { %1849 = vrot.lane.b32.xlu1 %v1263_v56, %s3987_s29  ;;  %v1475_v56 = vld [vmem:[%s5760_s2 + $0x568] sm:$0xff] }
0x15b5   :  { %v3434_v57 = vpack.c.bf16 %v1475_v56, %v1471_v55  ;;  %v1515_v55 = vld [vmem:[%s5760_s2 + $0x6a8] sm:$0xff]  ;;  %v1513_v56 = vld [vmem:[%s5760_s2 + $0x698] sm:$0xff] }
0x15b8   :  { %1863 = vrot.lane.b32.xlu1 %v1287_v54, %s3987_s29  ;;  %v1464_v54 = vld [vmem:[%s5760_s2 + $0x510] sm:$0xff] }
0x1616   :  { %v1295_v14 = vpop.permute.xlu1 %1294 }
0x1617   :  { %1297 = vst.msk [vmem:[#allocation2] sm:$0xff] %vm363_vm4, %v1295_v14  ;;  %v3560_v14 = vpack.c.bf16 %v1468_v7, %v1464_v54  ;;  %v1508_v54 = vld [vmem:[%s5760_s2 + $0x670] sm:$0xff]  ;;  %v1511_v7 = vld [vmem:[%s5760_s2 + $0x688] sm:$0xff] }
0x1618   :  { %v3454_v24 = vpack.c.bf16 %v1515_v55, %v1511_v7  ;;  %v1555_v7 = vld [vmem:[%s5760_s2 + $0x7e8] sm:$0xff]  ;;  %v1553_v55 = vld [vmem:[%s5760_s2 + $0x7d8] sm:$0xff] }
0x161e   :  { %v1290_v17 = vpop.permute.xlu1 %1289  ;;  %v1298_v18 = vld [vmem:[#allocation2] sm:$0xff] }
0x161f   :  { %1292 = vst.msk [vmem:[#allocation2 + $0x18] sm:$0xff] %vm357_vm5, %v1290_v17  ;;  %1623 = vmatmul.mubr.f32.vlgmr.msra.gmra.mrb[8].mxu0 %v1298_v18  ;;  %1765 = vmatmul.mubr.f32.vlgmr.msra.gmra.mrb[8].mxu1 %v1298_v18  ;;  %v1487_v17 = vld [vmem:[%s5760_s2 + $0x5c8] sm:$0xff] }
0x1620   :  { %3417 = vmatpush1.bf16.msra.mxu0 %v3416_v63  ;;  %3545 = vmatpush1.bf16.msra.mxu1 %v3544_v0  ;;  %v1481_v63 = vld [vmem:[%s5760_s2 + $0x598] sm:$0xff]  ;;  %v1491_v18 = vld [vmem:[%s5760_s2 + $0x5e8] sm:$0xff] }
0x1621   :  { %3419 = vmatprep.subr.bf16.mxu0 %v3418_v5  ;;  %3547 = vmatprep.subr.bf16.mxu1 %v3546_v8  ;;  %v1485_v0 = vld [vmem:[%s5760_s2 + $0x5b8] sm:$0xff]  ;;  %v1482_v5 = vld [vmem:[%s5760_s2 + $0x5a0] sm:$0xff]  ;;  %v3438_v8 = vpack.c.bf16 %v1483_v62, %v1479_v61  ;;  %v1523_v61 = vld [vmem:[%s5760_s2 + $0x6e8] sm:$0xff] }
0x1622   :  { %v3566_v9 = vpack.c.bf16 %v1485_v0, %v1481_v63  ;;  %v1521_v62 = vld [vmem:[%s5760_s2 + $0x6d8] sm:$0xff] }
0x1623   :  { %v1525_v63 = vld [vmem:[%s5760_s2 + $0x6f8] sm:$0xff] }
0x1624   :  { %3421 = vmatpush1.bf16.msra.mxu0 %v3420_v28  ;;  %3549 = vmatpush1.bf16.msra.mxu1 %v3548_v29  ;;  %v3440_v28 = vpack.c.bf16 %v1482_v5, %v1478_v4  ;;  %v3568_v29 = vpack.c.bf16 %v1484_v13, %v1480_v12  ;;  %v1522_v4 = vld [vmem:[%s5760_s2 + $0x6e0] sm:$0xff]  ;;  %v3458_v5 = vpack.c.bf16 %v1523_v61, %v1519_v60  ;;  %v1524_v12 = vld [vmem:[%s5760_s2 + $0x6f0] sm:$0xff]  ;;  %v1527_v13 = vld [vmem:[%s5760_s2 + $0x708] sm:$0xff] }
0x1625   :  { %3423 = vmatprep.subr.bf16.mxu0 %v3422_v25  ;;  %3551 = vmatprep.subr.bf16.mxu1 %v3550_v27  ;;  %v3442_v25 = vpack.c.bf16 %v1491_v18, %v1487_v17  ;;  %v3570_v27 = vpack.c.bf16 %v1493_v23, %v1489_v19  ;;  %v1531_v17 = vld [vmem:[%s5760_s2 + $0x728] sm:$0xff]  ;;  %v1529_v18 = vld [vmem:[%s5760_s2 + $0x718] sm:$0xff] }
0x1626   :  { %v1301_v46 = vld [vmem:[#allocation2 + $0x18] sm:$0xff] }
0x1627   :  { %1693 = vmatprep.mubr.f32.mxu0 %v1301_v46  ;;  %1835 = vmatprep.mubr.f32.mxu1 %v1301_v46  ;;  %v1505_v46 = vld [vmem:[%s5760_s2 + $0x658] sm:$0xff] }
0x1628   :  { %3425 = vmatpush1.bf16.msra.mxu0 %v3424_v36  ;;  %3553 = vmatpush1.bf16.msra.mxu1 %v3552_v37  ;;  %v3444_v36 = vpack.c.bf16 %v1490_v48, %v1486_v31  ;;  %v3572_v37 = vpack.c.bf16 %v1492_v20, %v1488_v22  ;;  %v1533_v19 = vld [vmem:[%s5760_s2 + $0x738] sm:$0xff]  ;;  %v1530_v31 = vld [vmem:[%s5760_s2 + $0x720] sm:$0xff]  ;;  %v3462_v48 = vpack.c.bf16 %v1531_v17, %v1527_v13  ;;  %v1532_v22 = vld [vmem:[%s5760_s2 + $0x730] sm:$0xff] }
0x1629   :  { %3427 = vmatprep.subr.bf16.mxu0 %v3426_v41  ;;  %3555 = vmatprep.subr.bf16.mxu1 %v3554_v42  ;;  %v3574_v41 = vpack.c.bf16 %v1501_v35, %v1497_v34  ;;  %v1496_v42 = vld [vmem:[%s5760_s2 + $0x610] sm:$0xff]  ;;  %v1535_v20 = vld [vmem:[%s5760_s2 + $0x748] sm:$0xff]  ;;  %v1541_v34 = vld [vmem:[%s5760_s2 + $0x778] sm:$0xff] }
0x162a   :  { %v3466_v39 = vpack.c.bf16 %v1539_v32, %v1535_v20  ;;  %v1880_v13 = vld [vmem:[%s5761_s3 + $0x18] sm:$0xff]  ;;  %v1990_v17 = vld [vmem:[%s5762_s4 + $0x10] sm:$0xff]  ;;  %v1993_v20 = vld [vmem:[%s5762_s4 + $0x28] sm:$0xff]  ;;  %v1968_v32 = vrot.slane %v4445_v30, 1 }
0x162b   :  { %v1884_v30 = vld [vmem:[%s5761_s3 + $0x38] sm:$0xff] }
0x162c   :  { %3429 = vmatpush1.bf16.msra.mxu0 %v3428_v2  ;;  %3557 = vmatpush1.bf16.msra.mxu1 %v3556_v49  ;;  %v3576_v2 = vpack.c.bf16 %v1500_v43, %v1496_v42  ;;  %v1502_v49 = vld [vmem:[%s5760_s2 + $0x640] sm:$0xff]  ;;  %v1540_v42 = vld [vmem:[%s5760_s2 + $0x770] sm:$0xff]  ;;  %v1543_v43 = vld [vmem:[%s5760_s2 + $0x788] sm:$0xff] }
0x162d   :  { %3431 = vmatprep.subr.bf16.mxu0 %v3430_v52  ;;  %3559 = vmatprep.subr.bf16.mxu1 %v3558_v53  ;;  %v3578_v52 = vpack.c.bf16 %v1509_v47, %v1505_v46  ;;  %v1504_v53 = vld [vmem:[%s5760_s2 + $0x650] sm:$0xff]  ;;  %v3452_v21 = vpack.c.bf16 %v1506_v50, %v1502_v49  ;;  %v1549_v46 = vld [vmem:[%s5760_s2 + $0x7b8] sm:$0xff]  ;;  %v1546_v49 = vld [vmem:[%s5760_s2 + $0x7a0] sm:$0xff]  ;;  %v3470_v50 = vpack.c.bf16 %v1547_v44, %v1543_v43 }
0x1630   :  { %3433 = vmatpush1.bf16.msra.mxu0 %v3432_v10  ;;  %3561 = vmatpush1.bf16.msra.mxu1 %v3560_v14  ;;  %v3580_v10 = vpack.c.bf16 %v1508_v54, %v1504_v53  ;;  %v1510_v14 = vld [vmem:[%s5760_s2 + $0x680] sm:$0xff]  ;;  %v1548_v53 = vld [vmem:[%s5760_s2 + $0x7b0] sm:$0xff]  ;;  %v1551_v54 = vld [vmem:[%s5760_s2 + $0x7c8] sm:$0xff] }
0x1631   :  { %3435 = vmatprep.subr.bf16.mxu0 %v3434_v57  ;;  %3563 = vmatprep.subr.bf16.mxu1 %v3562_v58  ;;  %v3582_v57 = vpack.c.bf16 %v1517_v15, %v1513_v56  ;;  %v1512_v58 = vld [vmem:[%s5760_s2 + $0x690] sm:$0xff]  ;;  %v3456_v0 = vpack.c.bf16 %v1514_v16, %v1510_v14  ;;  %v1557_v56 = vld [vmem:[%s5760_s2 + $0x7f8] sm:$0xff]  ;;  %v3474_v14 = vpack.c.bf16 %v1555_v7, %v1551_v54 }
0x1632   :  { %v3602_v16 = vpack.c.bf16 %v1557_v56, %v1553_v55 }
0x1634   :  { %3437 = vmatpush1.bf16.msra.mxu0 %v3436_v1  ;;  %3565 = vmatpush1.bf16.msra.mxu1 %v3564_v3  ;;  %v3584_v1 = vpack.c.bf16 %v1516_v59, %v1512_v58  ;;  %v1518_v3 = vld [vmem:[%s5760_s2 + $0x6c0] sm:$0xff]  ;;  %v1556_v58 = vld [vmem:[%s5760_s2 + $0x7f0] sm:$0xff]  ;;  %v1966_v59 = vpop.permute.xlu1 %1965 }
0x1635   :  { %3439 = vmatprep.subr.bf16.mxu0 %v3438_v8  ;;  %3567 = vmatprep.subr.bf16.mxu1 %v3566_v9  ;;  %v3586_v8 = vpack.c.bf16 %v1525_v63, %v1521_v62  ;;  %v1520_v9 = vld [vmem:[%s5760_s2 + $0x6d0] sm:$0xff]  ;;  %v3460_v23 = vpack.c.bf16 %v1522_v4, %v1518_v3  ;;  %v1877_v62 = vld [vmem:[%s5761_s3] sm:$0xff]  ;;  %v1878_v63 = vld [vmem:[%s5761_s3 + $0x8] sm:$0xff]  ;;  %v1978_v3 = vpop.permute.xlu0 %1977 }
0x1636   :  { %v3607_v4 = vpack.c.bf16 %v1878_v63, %v1877_v62 }
0x1638   :  { %3441 = vmatpush1.bf16.msra.mxu0 %v3440_v28  ;;  %3569 = vmatpush1.bf16.msra.mxu1 %v3568_v29  ;;  %v3588_v28 = vpack.c.bf16 %v1524_v12, %v1520_v9  ;;  %v1526_v29 = vld [vmem:[%s5760_s2 + $0x700] sm:$0xff]  ;;  %v1847_v9 = vlaneseq  ;;  %v3989_v12 = vmov 0.0|0.0  }
0x1639   :  { %3443 = vmatprep.subr.bf16.mxu0 %v3442_v25  ;;  %3571 = vmatprep.subr.bf16.mxu1 %v3570_v27  ;;  %v3590_v25 = vpack.c.bf16 %v1533_v19, %v1529_v18  ;;  %v1528_v27 = vld [vmem:[%s5760_s2 + $0x710] sm:$0xff]  ;;  %v3464_v35 = vpack.c.bf16 %v1530_v31, %v1526_v29  ;;  %v1991_v18 = vld [vmem:[%s5762_s4 + $0x18] sm:$0xff]  ;;  %v1850_v19 = vpop.permute.xlu1 %1849 }
0x163a   :  { %v3622_v31 = vpack.c.bf16 %v1991_v18, %v1990_v17 }
0x163c   :  { %3445 = vmatpush1.bf16.msra.mxu0 %v3444_v36  ;;  %3573 = vmatpush1.bf16.msra.mxu1 %v3572_v37  ;;  %v3592_v36 = vpack.c.bf16 %v1532_v22, %v1528_v27  ;;  %v1534_v37 = vld [vmem:[%s5760_s2 + $0x740] sm:$0xff]  ;;  %v1882_v27 = vld [vmem:[%s5761_s3 + $0x28] sm:$0xff] }
0x163d   :  { %3447 = vmatprep.subr.bf16.mxu0 %v3446_v40  ;;  %3575 = vmatprep.subr.bf16.mxu1 %v3574_v41  ;;  %v3594_v40 = vpack.c.bf16 %v1541_v34, %v1537_v33  ;;  %v1536_v41 = vld [vmem:[%s5760_s2 + $0x750] sm:$0xff]  ;;  %v3468_v47 = vpack.c.bf16 %v1538_v38, %v1534_v37  ;;  %v1992_v22 = vld [vmem:[%s5762_s4 + $0x20] sm:$0xff]  ;;  %v1970_v33 = vsel %vm201_vm2, %v1966_v59, %v1968_v32  ;;  %v1864_v34 = vpop.permute.xlu1 %1863 }
0x163e   :  { %v1883_v37 = vld [vmem:[%s5761_s3 + $0x30] sm:$0xff] }
0x1640   :  { %3449 = vmatpush1.bf16.msra.mxu0 %v3448_v11  ;;  %3577 = vmatpush1.bf16.msra.mxu1 %v3576_v2  ;;  %v3596_v11 = vpack.c.bf16 %v1540_v42, %v1536_v41  ;;  %v1542_v2 = vld [vmem:[%s5760_s2 + $0x780] sm:$0xff]  ;;  %v1980_v42 = vrot.slane %v4440_v26, 1 }
0x1641   :  { %3451 = vmatprep.subr.bf16.mxu0 %v3450_v51  ;;  %3579 = vmatprep.subr.bf16.mxu1 %v3578_v52  ;;  %v3598_v51 = vpack.c.bf16 %v1549_v46, %v1545_v45  ;;  %v1544_v52 = vld [vmem:[%s5760_s2 + $0x790] sm:$0xff]  ;;  %v3472_v15 = vpack.c.bf16 %v1546_v49, %v1542_v2  ;;  %v3616_v45 = vpack.c.bf16 %v1884_v30, %v1883_v37 }
0x1644   :  { %3453 = vmatpush1.bf16.msra.mxu0 %v3452_v21  ;;  %3581 = vmatpush1.bf16.msra.mxu1 %v3580_v10  ;;  %v3600_v21 = vpack.c.bf16 %v1548_v53, %v1544_v52  ;;  %v1550_v10 = vld [vmem:[%s5760_s2 + $0x7c0] sm:$0xff] }
0x1645   :  { %3455 = vmatprep.subr.bf16.mxu0 %v3454_v24  ;;  %3583 = vmatprep.subr.bf16.mxu1 %v3582_v57  ;;  %v1554_v24 = vld [vmem:[%s5760_s2 + $0x7e0] sm:$0xff]  ;;  %v1552_v57 = vld [vmem:[%s5760_s2 + $0x7d0] sm:$0xff] }
0x1646   :  { %v3476_v60 = vpack.c.bf16 %v1554_v24, %v1550_v10  ;;  %v3604_v61 = vpack.c.bf16 %v1556_v58, %v1552_v57  ;;  %v2074_v53 = vld [vmem:[%s5764_s6] sm:$0xff] }
0x1647   :  { %2080 = vrot.lane.b32.xlu0 %v2074_v53, %s3986_s28  ;;  %v2955_v58 = vld [vmem:[%s5773_s15 + $0x6] ss:$0 sm:$0xff] }
0x1648   :  { %3457 = vmatpush1.bf16.msra.mxu0 %v3456_v0  ;;  %3585 = vmatpush1.bf16.msra.mxu1 %v3584_v1  ;;  %v1988_v0 = vld [vmem:[%s5762_s4] sm:$0xff]  ;;  %v1989_v1 = vld [vmem:[%s5762_s4 + $0x8] sm:$0xff] }
0x1649   :  { %3459 = vmatprep.subr.bf16.mxu0 %v3458_v5  ;;  %3587 = vmatprep.subr.bf16.mxu1 %v3586_v8  ;;  %v3619_v5 = vpack.c.bf16 %v1989_v1, %v1988_v0  ;;  %v1879_v8 = vld [vmem:[%s5761_s3 + $0x10] sm:$0xff] }
0x164a   :  { %v3610_v29 = vpack.c.bf16 %v1880_v13, %v1879_v8 }
0x164c   :  { %3461 = vmatpush1.bf16.msra.mxu0 %v3460_v23  ;;  %3589 = vmatpush1.bf16.msra.mxu1 %v3588_v28  ;;  %v1300_v23 = vld [vmem:[#allocation2 + $0x10] sm:$0xff]  ;;  %v1854_v28 = vpop.permute.xlu0 %1853 }
0x164d   :  { %3463 = vmatprep.subr.bf16.mxu0 %v3462_v48  ;;  %3591 = vmatprep.subr.bf16.mxu1 %v3590_v25  ;;  %v1881_v48 = vld [vmem:[%s5761_s3 + $0x20] sm:$0xff]  ;;  %v1848_v25 = vshrl.u32 %v1847_v9, 7  ;;  %v1856_v41 = vsel %vm201_vm2, %v1850_v19, %v1854_v28 }
0x164f   :  { %v1860_v38 = vsub.s32 0, %v1848_v25  ;;  %vm1857_vm7 = vcmp.eq.s32.totalorder %v1848_v25, 0  ;;  %vm1871_vm8 = vcmp.eq.s32.totalorder %v1848_v25, 1 }
0x1650   :  { %3465 = vmatpush1.bf16.msra.mxu0 %v3464_v35  ;;  %3593 = vmatpush1.bf16.msra.mxu1 %v3592_v36  ;;  %v3613_v35 = vpack.c.bf16 %v1882_v27, %v1881_v48  ;;  %v3625_v36 = vpack.c.bf16 %v1993_v20, %v1992_v22 }
0x1651   :  { %3467 = vmatprep.subr.bf16.mxu0 %v3466_v39  ;;  %3595 = vmatprep.subr.bf16.mxu1 %v3594_v40  ;;  %v1995_v39 = vld [vmem:[%s5762_s4 + $0x38] sm:$0xff]  ;;  %v1868_v40 = vpop.permute.xlu0 %1867  ;;  %v1974_v43 = vrot.slane %v1970_v33, %v1860_v38 }
0x1652   :  { %v1870_v44 = vsel %vm201_vm2, %v1864_v34, %v1868_v40 }
0x1653   :  { %v1875_v2 = vrot.slane %v1870_v44, %v1860_v38  ;;  %v1975_v49 = vsel %vm1857_vm7, %v1974_v43, 0.0 }
0x1654   :  { %3469 = vmatpush1.bf16.msra.mxu0 %v3468_v47  ;;  %3597 = vmatpush1.bf16.msra.mxu1 %v3596_v11  ;;  %v1982_v47 = vsel %vm201_vm2, %v1978_v3, %v1980_v42  ;;  %v1861_v11 = vrot.slane %v1856_v41, %v1860_v38 }
0x1655   :  { %3471 = vmatprep.subr.bf16.mxu0 %v3470_v50  ;;  %3599 = vmatprep.subr.bf16.mxu1 %v3598_v51  ;;  %v1986_v50 = vrot.slane %v1982_v47, %v1860_v38 }
0x1656   :  { %v1862_v26 = vsel %vm1857_vm7, %v1861_v11, 0.0 }
0x1657   :  { %v1876_v51 = vsel %vm1871_vm8, %v1875_v2, %v1862_v26  ;;  %v1987_v52 = vsel %vm1871_vm8, %v1986_v50, %v1975_v49 }
0x1658   :  { %3473 = vmatpush1.bf16.msra.mxu0 %v3472_v15  ;;  %3601 = vmatpush1.bf16.msra.mxu1 %v3600_v21  ;;  %v2957_v15 = vld [vmem:[%s5773_s15 + $0x7] ss:$0 sm:$0xff] }
0x1659   :  { %3475 = vmatprep.subr.bf16.mxu0 %v3474_v14  ;;  %3603 = vmatprep.subr.bf16.mxu1 %v3602_v16 }
0x165c   :  { %3477 = vmatpush1.bf16.msra.mxu0 %v3476_v60  ;;  %3605 = vmatpush1.bf16.msra.mxu1 %v3604_v61 }
0x165d   :  { %3606 = vmatprep.subr.bf16.mxu0 %v3989_v12  ;;  %3618 = vmatprep.subr.bf16.mxu1 %v3989_v12 }
0x165f   :  { %1694 = vmatmul.mubr.f32.vlgmr.msra.gmra.mrb[8].mxu0 %v1300_v23  ;;  %1836 = vmatmul.mubr.f32.vlgmr.msra.gmra.mrb[8].mxu1 %v1300_v23 }
0x1660   :  { %3608 = vmatpush3.bf16.msra.mxu0 %v3607_v4  ;;  %3620 = vmatpush3.bf16.msra.mxu1 %v3619_v5 }
0x1661   :  { %3609 = vmatprep.subr.bf16.mxu0 %v3989_v12  ;;  %3621 = vmatprep.subr.bf16.mxu1 %v3989_v12 }
0x1662   :  { %3116 = vmatprep.mubr.msk.f32.mxu0 %vm3990_vm6, %v3985_v6  ;;  %3135 = vmatprep.mubr.msk.f32.mxu1 %vm3990_vm6, %v3985_v6  ;;  %v1994_v6 = vld [vmem:[%s5762_s4 + $0x30] sm:$0xff] }
0x1663   :  { %v3628_v46 = vpack.c.bf16 %v1995_v39, %v1994_v6 }
0x1664   :  { %3611 = vmatpush3.bf16.msra.mxu0 %v3610_v29  ;;  %3623 = vmatpush3.bf16.msra.mxu1 %v3622_v31 }
0x1665   :  { %3612 = vmatprep.subr.bf16.mxu0 %v3989_v12  ;;  %3624 = vmatprep.subr.bf16.mxu1 %v3989_v12 }
0x1668   :  { %3614 = vmatpush3.bf16.msra.mxu0 %v3613_v35  ;;  %3626 = vmatpush3.bf16.msra.mxu1 %v3625_v36 }
0x1669   :  { %3615 = vmatprep.subr.bf16.mxu0 %v3989_v12  ;;  %3627 = vmatprep.subr.bf16.mxu1 %v3989_v12 }
0x166c   :  { %3617 = vmatpush3.bf16.msra.mxu0 %v3616_v45  ;;  %3629 = vmatpush3.bf16.msra.mxu1 %v3628_v46 }
0x166f   :  { %3117 = vmatmul.mubr.msk.f32.vlgmr.msra.gmra.mrb[10].mxu0 %vm72_vm3, %v1876_v51  ;;  %3136 = vmatmul.mubr.msk.f32.vlgmr.msra.gmra.mrb[10].mxu1 %vm72_vm3, %v1987_v52 }
0x16b9   :  { %v2081_v61 = vpop.permute.xlu0 %2080 }
0x1732   :  { %v1695_v54 = vpop.f32.mrb[8].mxu0  ;;  %v1837_v7 = vpop.f32.mrb[8].mxu1 }
0x1733   :  { %1842 = vst [vmem:[#allocation3] sm:$0xff] %v1695_v54  ;;  %1844 = vst [vmem:[#allocation3 + $0x10] sm:$0xff] %v1837_v7  ;;  %v1697_v55 = vpop.f32.mrb[9].mxu0  ;;  %v1839_v56 = vpop.f32.mrb[9].mxu1 }
0x1734   :  { %1843 = vst [vmem:[#allocation3 + $0x8] sm:$0xff] %v1697_v55  ;;  %1845 = vst [vmem:[#allocation3 + $0x18] sm:$0xff] %v1839_v56 }
0x1742   :  { %v1958_v21 = vpop.f32.mrb[10].mxu0  ;;  %v2069_v10 = vpop.f32.mrb[10].mxu1 }
0x1743   :  { %v2070_v14 = vadd.f32 %v2957_v15, %v2069_v10  ;;  %v3118_v16 = vpop.f32.mrb[11].mxu0  ;;  %v3137_v24 = vpop.f32.mrb[11].mxu1  ;;  %v1959_v59 = vadd.f32 %v2955_v58, %v1958_v21 }
0x1745   :  { %v2073_v57 = vmax.f32 %v2070_v14, 0.0  ;;  %v1962_v60 = vmax.f32 %v1959_v59, 0.0 }
0x1747   :  { %2076 = vrot.lane.b32.xlu1 %v2073_v57, %s3987_s29 }
0x17b9   :  { %v2077_v62 = vpop.permute.xlu1 %2076 }
0x17ba   :  { %v2083_v63 = vsel %vm201_vm2, %v1962_v60, %v2077_v62 }
0x17bb   :  { %v2084_v0 = vsel %vm72_vm3, %v2083_v63, %v2081_v61 }
0x17bc   :  { %2085 = vst [vmem:[#allocation4] sm:$0xff] %v2084_v0 }
0x17bd LB: > { %v2099_v3 = vld [vmem:[%s5766_s8] sm:$0xff]  ;;  %v2100_v4 = vld [vmem:[%s5766_s8 + $0x8] sm:$0xff]  ;;  %s3991_s21 = smov 64   ;;  %v3992_v5 = vmov 0.0|0.0   ;;  %v2101_v9 = vld [vmem:[%s5766_s8 + $0x10] sm:$0xff]  ;;  %vm3993_vm9 = vmmov 0   ;;  %s3983_s18 = sphi %s5316_s18, %s2093_s18  }
0x17be   : > { %3630 = vmatprep.subr.bf16.mxu0 %v3992_v5  ;;  %v3631_v8 = vpack.c.bf16 %v2100_v4, %v2099_v3  ;;  %v2102_v12 = vld [vmem:[%s5766_s8 + $0x18] sm:$0xff]  ;;  %v3994_v13 = vmov 0.0   ;;  %3648 = vmatprep.subr.bf16.mxu1 %v3992_v5  ;;  %v2103_v18 = vld [vmem:[%s5766_s8 + $0x20] sm:$0xff]  ;;  %v2104_v19 = vld [vmem:[%s5766_s8 + $0x28] sm:$0xff]  ;;  %vm2114_vm10 = vcmask 785408   ;;  %s5374_s1 = sshll.u32 %s3983_s18, 3 }
0x17bf   : > { %3162 = vmatprep.mubr.msk.f32.mxu0 %vm3993_vm9, %v3994_v13  ;;  %v3634_v17 = vpack.c.bf16 %v2102_v12, %v2101_v9  ;;  %3181 = vmatprep.mubr.msk.f32.mxu1 %vm3993_vm9, %v3994_v13  ;;  %v3637_v23 = vpack.c.bf16 %v2104_v19, %v2103_v18  ;;  %v2105_v28 = vld [vmem:[%s5766_s8 + $0x30] sm:$0xff]  ;;  %v2106_v29 = vld [vmem:[%s5766_s8 + $0x38] sm:$0xff]  ;;  %v2107_v48 = vld [vmem:[%s5766_s8 + $0x40] sm:$0xff]  ;;  %s2112_s26 = scalar_lea.vmem %s5765_s7, %s5374_s1  ;;  %s3995_s27 = smov 32   ;;  %vm2522_vm12 = vcmask 64512  }
0x17c0   : > { %3632 = vmatpush3.bf16.msra.mxu0 %v3631_v8  ;;  %v3640_v31 = vpack.c.bf16 %v2106_v29, %v2105_v28  ;;  %v2108_v25 = vld [vmem:[%s5766_s8 + $0x48] sm:$0xff]  ;;  %v2109_v22 = vld [vmem:[%s5766_s8 + $0x50] sm:$0xff]  ;;  %v2110_v20 = vld [vmem:[%s5766_s8 + $0x58] sm:$0xff]  ;;  %s2603_s24 = scalar_lea.vmem %s5772_s14, %s5374_s1  ;;  %s2840_s23 = scalar_lea.vmem %s5771_s13, %s5374_s1 }
0x17c1   : > { %3633 = vmatprep.subr.bf16.mxu0 %v3992_v5  ;;  %v3643_v27 = vpack.c.bf16 %v2108_v25, %v2107_v48  ;;  %v3646_v32 = vpack.c.bf16 %v2110_v20, %v2109_v22  ;;  %v2113_v34 = vld [vmem:[%s2112_s26] sm:$0xff]  ;;  %v2218_v47 = vld [vmem:[%s5767_s9 + $0x8] sm:$0xff]  ;;  %v2219_v11 = vld [vmem:[%s5767_s9 + $0x10] sm:$0xff]  ;;  %s4004_s26 = smov 126   ;;  %s2093_s18 = sadd.s32 1, %s3983_s18  }
0x17c2   : > { %v2217_v46 = vld [vmem:[%s5767_s9] sm:$0xff]  ;;  %v2220_v49 = vld [vmem:[%s5767_s9 + $0x18] sm:$0xff]  ;;  %v2222_v51 = vld [vmem:[%s5767_s9 + $0x28] sm:$0xff]  ;;  %p2090_p0 = scmp.ge.s32.totalorder %s2093_s18, 6  }
0x17c3   : > { %v5321_v1 = vld [vmem:[#allocation4] sm:$0xff]  ;;  %v3649_v2 = vpack.c.bf16 %v2218_v47, %v2217_v46  ;;  %v3652_v50 = vpack.c.bf16 %v2220_v49, %v2219_v11  ;;  %v2223_v53 = vld [vmem:[%s5767_s9 + $0x30] sm:$0xff]  ;;  %v2224_v54 = vld [vmem:[%s5767_s9 + $0x38] sm:$0xff]  ;;  %s4007_s4 = smov (%p2090_p0), [#allocation6]  }
0x17c4   : > { %2096 = vrot.lane.b32.xlu0 %v5321_v1, %s3991_s21  ;;  %3635 = vmatpush3.bf16.msra.mxu0 %v3634_v17  ;;  %v2221_v26 = vld [vmem:[%s5767_s9 + $0x20] sm:$0xff]  ;;  %v3658_v55 = vpack.c.bf16 %v2224_v54, %v2223_v53  ;;  %v2332_v16 = vld [vmem:[%s5768_s10 + $0x88] sm:$0xff]  ;;  %v2333_v3 = vld [vmem:[%s5768_s10 + $0x90] sm:$0xff]  ;;  %s2899_s0 = sshll.u32 (%p2090_p0), %s4007_s4, 4  ;;  %s2900_s0 = int_to_ptr.vmem [resolvable:$true] %s2899_s0 }
0x17c5   : > { %3636 = vmatprep.subr.bf16.mxu0 %v3992_v5  ;;  %3650 = vmatpush3.bf16.msra.mxu1 %v3649_v2  ;;  %v3655_v52 = vpack.c.bf16 %v2222_v51, %v2221_v26  ;;  %v2331_v14 = vld [vmem:[%s5768_s10 + $0x80] sm:$0xff]  ;;  %v2364_v58 = vld [vmem:[%s5768_s10 + $0x188] sm:$0xff]  ;;  %v2334_v8 = vld [vmem:[%s5768_s10 + $0x98] sm:$0xff]  ;;  %s3953_s18 = scalar_lea.vmem (%p2090_p0), %s2900_s0, 16  ;;  %p3958_p2 = scmp.lt.s32.totalorder (%p2090_p0), %s2900_s0, %s2900_s0 }
0x17c6   : > { %3651 = vmatprep.subr.bf16.mxu1 %v3992_v5  ;;  %v2363_v24 = vld [vmem:[%s5768_s10 + $0x180] sm:$0xff]  ;;  %v3660_v57 = vpack.c.bf16 %v2332_v16, %v2331_v14  ;;  %v2316_v60 = vld [vmem:[%s5768_s10 + $0x8] sm:$0xff]  ;;  %v2365_v9 = vld [vmem:[%s5768_s10 + $0x190] sm:$0xff]  ;;  %v3664_v17 = vpack.c.bf16 %v2334_v8, %v2333_v3  ;;  %p3954_p1 = scmp.ne.s32.totalorder (%p2090_p0), %s2900_s0, %s3953_s18 }
0x17c7   : > { %v2315_v59 = vld [vmem:[%s5768_s10] sm:$0xff]  ;;  %v3692_v61 = vpack.c.bf16 %v2364_v58, %v2363_v24  ;;  %v2348_v0 = vld [vmem:[%s5768_s10 + $0x108] sm:$0xff]  ;;  %v2366_v12 = vld [vmem:[%s5768_s10 + $0x198] sm:$0xff] }
0x17c8   : > { %3638 = vmatpush3.bf16.msra.mxu0 %v3637_v23  ;;  %v3662_v62 = vpack.c.bf16 %v2316_v60, %v2315_v59  ;;  %v2347_v63 = vld [vmem:[%s5768_s10 + $0x100] sm:$0xff]  ;;  %v3696_v18 = vpack.c.bf16 %v2366_v12, %v2365_v9  ;;  %v2317_v19 = vld [vmem:[%s5768_s10 + $0x10] sm:$0xff]  ;;  %v2318_v23 = vld [vmem:[%s5768_s10 + $0x18] sm:$0xff] }
0x17c9   : > { %3639 = vmatprep.subr.bf16.mxu0 %v3992_v5  ;;  %3653 = vmatpush3.bf16.msra.mxu1 %v3652_v50  ;;  %v3694_v4 = vpack.c.bf16 %v2348_v0, %v2347_v63  ;;  %v2349_v28 = vld [vmem:[%s5768_s10 + $0x110] sm:$0xff]  ;;  %v3666_v29 = vpack.c.bf16 %v2318_v23, %v2317_v19  ;;  %v2335_v48 = vld [vmem:[%s5768_s10 + $0xa0] sm:$0xff]  ;;  %v2336_v25 = vld [vmem:[%s5768_s10 + $0xa8] sm:$0xff] }
0x17ca   : > { %3654 = vmatprep.subr.bf16.mxu1 %v3992_v5  ;;  %v3668_v22 = vpack.c.bf16 %v2336_v25, %v2335_v48  ;;  %v2367_v20 = vld [vmem:[%s5768_s10 + $0x1a0] sm:$0xff]  ;;  %v2353_v46 = vld [vmem:[%s5768_s10 + $0x130] sm:$0xff]  ;;  %v2354_v47 = vld [vmem:[%s5768_s10 + $0x138] sm:$0xff] }
0x17cb   : > { %v2339_v11 = vld [vmem:[%s5768_s10 + $0xc0] sm:$0xff]  ;;  %v2340_v2 = vld [vmem:[%s5768_s10 + $0xc8] sm:$0xff]  ;;  %v3706_v51 = vpack.c.bf16 %v2354_v47, %v2353_v46  ;;  %v2341_v16 = vld [vmem:[%s5768_s10 + $0xd0] sm:$0xff] }
0x17cc   : > { %3641 = vmatpush3.bf16.msra.mxu0 %v3640_v31  ;;  %v2350_v31 = vld [vmem:[%s5768_s10 + $0x118] sm:$0xff]  ;;  %v2371_v49 = vld [vmem:[%s5768_s10 + $0x1c0] sm:$0xff]  ;;  %v2372_v50 = vld [vmem:[%s5768_s10 + $0x1c8] sm:$0xff] }
0x17cd   : > { %3642 = vmatprep.subr.bf16.mxu0 %v3992_v5  ;;  %3656 = vmatpush3.bf16.msra.mxu1 %v3655_v52  ;;  %v3676_v52 = vpack.c.bf16 %v2340_v2, %v2339_v11  ;;  %v3708_v53 = vpack.c.bf16 %v2372_v50, %v2371_v49  ;;  %v2323_v54 = vld [vmem:[%s5768_s10 + $0x40] sm:$0xff]  ;;  %v2342_v24 = vld [vmem:[%s5768_s10 + $0xd8] sm:$0xff]  ;;  %v2325_v60 = vld [vmem:[%s5768_s10 + $0x50] sm:$0xff] }
0x17ce   : > { %3657 = vmatprep.subr.bf16.mxu1 %v3992_v5  ;;  %v3680_v58 = vpack.c.bf16 %v2342_v24, %v2341_v16  ;;  %v2374_v59 = vld [vmem:[%s5768_s10 + $0x1d8] sm:$0xff]  ;;  %v2357_v0 = vld [vmem:[%s5768_s10 + $0x150] sm:$0xff]  ;;  %v2343_v8 = vld [vmem:[%s5768_s10 + $0xe0] sm:$0xff] }
0x17cf   : > { %v2358_v3 = vld [vmem:[%s5768_s10 + $0x158] sm:$0xff]  ;;  %v2344_v9 = vld [vmem:[%s5768_s10 + $0xe8] sm:$0xff]  ;;  %v2375_v12 = vld [vmem:[%s5768_s10 + $0x1e0] sm:$0xff] }
0x17d0   : > { %3644 = vmatpush3.bf16.msra.mxu0 %v3643_v27  ;;  %v3698_v27 = vpack.c.bf16 %v2350_v31, %v2349_v28  ;;  %v2327_v19 = vld [vmem:[%s5768_s10 + $0x60] sm:$0xff]  ;;  %v2328_v23 = vld [vmem:[%s5768_s10 + $0x68] sm:$0xff]  ;;  %v2345_v25 = vld [vmem:[%s5768_s10 + $0xf0] sm:$0xff] }
0x17d1   : > { %3645 = vmatprep.subr.bf16.mxu0 %v3992_v5  ;;  %3659 = vmatpush3.bf16.msra.mxu1 %v3658_v55  ;;  %v2355_v55 = vld [vmem:[%s5768_s10 + $0x140] sm:$0xff]  ;;  %v2360_v48 = vld [vmem:[%s5768_s10 + $0x168] sm:$0xff] }
0x17d2   : > { %3661 = vmatprep.subr.bf16.mxu1 %v3660_v57  ;;  %v2373_v57 = vld [vmem:[%s5768_s10 + $0x1d0] sm:$0xff]  ;;  %v2359_v31 = vld [vmem:[%s5768_s10 + $0x160] sm:$0xff] }
0x17d4   : > { %3647 = vmatpush3.bf16.msra.mxu0 %v3646_v32  ;;  %v2368_v32 = vld [vmem:[%s5768_s10 + $0x1a8] sm:$0xff] }
0x17d5   : > { %3693 = vmatprep.subr.bf16.mxu0 %v3692_v61  ;;  %v2326_v61 = vld [vmem:[%s5768_s10 + $0x58] sm:$0xff] }
0x17d6   : > { %v3682_v63 = vpack.c.bf16 %v2326_v61, %v2325_v60 }
0x1836   : > { %v2097_v33 = vpop.permute.xlu0 %2096 }
0x1837   : > { %3163 = vmatmul.mubr.msk.f32.vlgmr.msra.gmra.mrb[0].mxu0 %vm2114_vm10, %v2097_v33  ;;  %v2319_v33 = vld [vmem:[%s5768_s10 + $0x20] sm:$0xff] }
0x1838   : > { %3695 = vmatpush3.bf16.msra.mxu0 %v3694_v4  ;;  %v3714_v4 = vpack.c.bf16 %v2358_v3, %v2357_v0 }
0x1839   : > { %3697 = vmatprep.subr.bf16.mxu0 %v3696_v18  ;;  %v2376_v18 = vld [vmem:[%s5768_s10 + $0x1e8] sm:$0xff] }
0x183a   : > { %v3716_v28 = vpack.c.bf16 %v2376_v18, %v2375_v12  ;;  %v4000_v12 = vmov 7   ;;  %v4002_v18 = vmov 2  }
0x183c   : > { %3699 = vmatpush3.bf16.msra.mxu0 %v3698_v27  ;;  %v3718_v27 = vpack.c.bf16 %v2360_v48, %v2359_v31  ;;  %v2552_v48 = vld [vmem:[#allocation2 + $0x8] sm:$0xff] }
0x190a   : > { %v2184_v35 = vpop.f32.mrb[0].mxu0 }
0x190b   : > { %v2185_v36 = vadd.f32 %v2184_v35, %v2113_v34  ;;  %v3164_v37 = vpop.f32.mrb[1].mxu0  ;;  %v3700_v34 = vpack.c.bf16 %v2368_v32, %v2367_v20  ;;  %v2320_v35 = vld [vmem:[%s5768_s10 + $0x28] sm:$0xff]  ;;  %v2377_v20 = vld [vmem:[%s5768_s10 + $0x1f0] sm:$0xff]  ;;  %v2378_v32 = vld [vmem:[%s5768_s10 + $0x1f8] sm:$0xff] }
0x190c   : > { %v2352_v37 = vld [vmem:[%s5768_s10 + $0x128] sm:$0xff] }
0x190d   : > { %3920 = vtanh.f32 %v2185_v36  ;;  %v2961_v30 = vmul.f32 -1.442695, %v2185_v36  ;;  %v2351_v36 = vld [vmem:[%s5768_s10 + $0x120] sm:$0xff]  ;;  %3701 = vmatprep.subr.bf16.mxu0 %v3700_v34  ;;  %v3720_v34 = vpack.c.bf16 %v2378_v32, %v2377_v20  ;;  %v2586_v32 = vld [vmem:[#allocation2 + $0x18] sm:$0xff] }
0x190f   : > { %3922 = vpow2.f32 %v2961_v30  ;;  %v2337_v30 = vld [vmem:[%s5768_s10 + $0xb0] sm:$0xff] }
0x1917   : > { %v3921_v38 = vpop.eup %3920 }
0x1918   : > { %2197 = vrot.lane.b32.xlu0 %v3921_v38, %s3991_s21  ;;  %v3670_v38 = vpack.c.bf16 %v2320_v35, %v2319_v33  ;;  %v2329_v35 = vld [vmem:[%s5768_s10 + $0x70] sm:$0xff] }
0x1919   : > { %v3923_v6 = vpop.eup %3922 }
0x191a   : > { %v2191_v39 = vadd.f32 1.0, %v3923_v6  ;;  %v2338_v6 = vld [vmem:[%s5768_s10 + $0xb8] sm:$0xff] }
0x191c   : > { %3924 = vrcp.f32 %v2191_v39  ;;  %v2369_v39 = vld [vmem:[%s5768_s10 + $0x1b0] sm:$0xff] }
0x1926   : > { %v3925_v40 = vpop.eup %3924 }
0x1927   : > { %v2195_v43 = vmul.f32 %v3925_v40, %v5321_v1 }
0x198a   : > { %v2198_v41 = vpop.permute.xlu0 %2197 }
0x198b   : > { %v2200_v42 = vmul.f32 %v3925_v40, %v2198_v41  ;;  %v3672_v41 = vpack.c.bf16 %v2338_v6, %v2337_v30  ;;  %v2362_v30 = vld [vmem:[%s5768_s10 + $0x178] sm:$0xff] }
0x198d   : > { %2202 = vrot.lane.b32.xlu1 %v2200_v42, %s3995_s27  ;;  %v2370_v42 = vld [vmem:[%s5768_s10 + $0x1b8] sm:$0xff] }
0x19ff   : > { %v2203_v44 = vpop.permute.xlu1 %2202 }
0x1a00   : > { %v2205_v45 = vadd.f32 %v2203_v44, %v2195_v43  ;;  %v2321_v43 = vld [vmem:[%s5768_s10 + $0x30] sm:$0xff]  ;;  %v2322_v44 = vld [vmem:[%s5768_s10 + $0x38] sm:$0xff] }
0x1a01   : > { %v3674_v26 = vpack.c.bf16 %v2322_v44, %v2321_v43  ;;  %v2305_v43 = vld [vmem:[#allocation3 + $0x10] sm:$0xff]  ;;  %v2306_v44 = vld [vmem:[#allocation3 + $0x18] sm:$0xff] }
0x1a02   : > { %3926 = vtanh.f32 %v2205_v45 }
0x1a0c   : > { %v3927_v7 = vpop.eup %3926 }
0x1a0d   : > { %2208 = vrot.lane.b32.xlu1 %v3927_v7, %s3991_s21  ;;  %v2324_v7 = vld [vmem:[%s5768_s10 + $0x48] sm:$0xff] }
0x1a7f   : > { %v2209_v56 = vpop.permute.xlu1 %2208 }
0x1a80   : > { %v2211_v15 = vmul.f32 %v3925_v40, %v2209_v56  ;;  %v3702_v40 = vpack.c.bf16 %v2352_v37, %v2351_v36  ;;  %v3678_v56 = vpack.c.bf16 %v2324_v7, %v2323_v54  ;;  %v2330_v36 = vld [vmem:[%s5768_s10 + $0x78] sm:$0xff]  ;;  %v2361_v37 = vld [vmem:[%s5768_s10 + $0x170] sm:$0xff] }
0x1a82   : > { %2213 = vrot.lane.b32.xlu0 %v2211_v15, %s3995_s27  ;;  %3703 = vmatpush3.bf16.msra.mxu0 %v3702_v40  ;;  %v2356_v15 = vld [vmem:[%s5768_s10 + $0x148] sm:$0xff] }
0x1a83   : > { %v3710_v14 = vpack.c.bf16 %v2356_v15, %v2355_v55 }
0x1af4   : > { %v5412_v21 = vpop.permute.xlu0 %2213 }
0x1af5   : > { %v5416_v10 = vsel %vm201_vm2, %v5412_v21, %v2205_v45  ;;  %v3704_v45 = vpack.c.bf16 %v2370_v42, %v2369_v39  ;;  %v3722_v39 = vpack.c.bf16 %v2362_v30, %v2361_v37  ;;  %v2304_v42 = vld [vmem:[#allocation3 + $0x8] sm:$0xff] }
0x1af6   : > { %3182 = vmatmul.mubr.msk.f32.vlgmr.msra.gmra.mrb[0].mxu1 %vm72_vm3, %v5416_v10  ;;  %v2661_v37 = vld [vmem:[%s5769_s11 + $0x8] sm:$0xff] }
0x1af7   : > { %3663 = vmatpush3.bf16.msra.mxu1 %v3662_v62  ;;  %3705 = vmatprep.subr.bf16.mxu0 %v3704_v45  ;;  %v3712_v62 = vpack.c.bf16 %v2374_v59, %v2373_v57 }
0x1af8   : > { %3665 = vmatprep.subr.bf16.mxu1 %v3664_v17  ;;  %3707 = vmatpush3.bf16.msra.mxu0 %v3706_v51  ;;  %v3684_v17 = vpack.c.bf16 %v2344_v9, %v2343_v8  ;;  %v3998_v8 = vmov 5   ;;  %v3999_v9 = vmov 6  }
0x1af9   : > { %3709 = vmatprep.subr.bf16.mxu0 %v3708_v53 }
0x1afb   : > { %3667 = vmatpush3.bf16.msra.mxu1 %v3666_v29  ;;  %v3686_v29 = vpack.c.bf16 %v2328_v23, %v2327_v19  ;;  %v4003_v19 = vmov 4   ;;  %v2534_v23 = vld [vmem:[#allocation2] sm:$0xff] }
0x1afc   : > { %3669 = vmatprep.subr.bf16.mxu1 %v3668_v22  ;;  %3711 = vmatpush3.bf16.msra.mxu0 %v3710_v14  ;;  %v2346_v22 = vld [vmem:[%s5768_s10 + $0xf8] sm:$0xff] }
0x1afd   : > { %3713 = vmatprep.subr.bf16.mxu0 %v3712_v62  ;;  %v3688_v33 = vpack.c.bf16 %v2346_v22, %v2345_v25  ;;  %v3996_v62 = vmov 3   ;;  %v2569_v22 = vld [vmem:[#allocation2 + $0x10] sm:$0xff] }
0x1afe   : > { %3912 = vset.pattern.permute.xlu1 %v3996_v62 }
0x1aff   : > { %3671 = vmatpush3.bf16.msra.mxu1 %v3670_v38  ;;  %v3690_v38 = vpack.c.bf16 %v2330_v36, %v2329_v35  ;;  %v2965_v35 = vld [vmem:[%s5773_s15 + $0x2] ss:$0 sm:$0xff] }
0x1b00   : > { %3673 = vmatprep.subr.bf16.mxu1 %v3672_v41  ;;  %3715 = vmatpush3.bf16.msra.mxu0 %v3714_v4  ;;  %v2303_v41 = vld [vmem:[#allocation3] sm:$0xff] }
0x1b01   : > { %3717 = vmatprep.subr.bf16.mxu0 %v3716_v28  ;;  %v2660_v36 = vld [vmem:[%s5769_s11] sm:$0xff] }
0x1b02   : > { %v3725_v30 = vpack.c.bf16 %v2661_v37, %v2660_v36 }
0x1b03   : > { %3675 = vmatpush3.bf16.msra.mxu1 %v3674_v26 }
0x1b04   : > { %3677 = vmatprep.subr.bf16.mxu1 %v3676_v52  ;;  %3719 = vmatpush3.bf16.msra.mxu0 %v3718_v27 }
0x1b05   : > { %3721 = vmatprep.subr.bf16.mxu0 %v3720_v34 }
0x1b07   : > { %3679 = vmatpush3.bf16.msra.mxu1 %v3678_v56  ;;  %v2519_v56 = vld [vmem:[%s5763_s5] sm:$0xff]  ;;  %s3957_s5 = scalar_lea.vmem (%p2090_p0), %s2900_s0, 32 }
0x1b08   : > { %3681 = vmatprep.subr.bf16.mxu1 %v3680_v58  ;;  %3723 = vmatpush3.bf16.msra.mxu0 %v3722_v39  ;;  %vm2520_vm11 = vcmp.eq.f32.partialorder %v2519_v56, 0.0  ;;  %p3959_p3 = scmp.lt.s32.totalorder (%p2090_p0), %s3957_s5, %s3953_s18 }
0x1b09   : > { %3742 = vmatprep.subr.bf16.mxu0 %v3992_v5 }
0x1b0a   :  { %p3960_p4 = por (%p2090_p0), %p3959_p3, %p3958_p2 }
0x1b0b   : > { %3683 = vmatpush3.bf16.msra.mxu1 %v3682_v63  ;;  %v3997_v63 = vmov 1  }
0x1b0c   : > { %3685 = vmatprep.subr.bf16.mxu1 %v3684_v17  ;;  %3911 = vset.pattern.permute.xlu0 %v3997_v63  ;;  %v4001_v17 = vmov 0   ;;  %p3961_p5 = pnand (%p2090_p0), %p3960_p4, %p3954_p1 }
0x1b0f   : > { %3687 = vmatpush3.bf16.msra.mxu1 %v3686_v29 }
0x1b10   : > { %3689 = vmatprep.subr.bf16.mxu1 %v3688_v33 }
0x1b13   : > { %3691 = vmatpush3.bf16.msra.mxu1 %v3690_v38  ;;  %v2662_v38 = vld [vmem:[%s5769_s11 + $0x10] sm:$0xff] }
0x1b14   : > { %3724 = vmatprep.subr.bf16.mxu1 %v3992_v5 }
0x1bc9   : > { %v2294_v6 = vpop.f32.mrb[0].mxu1 }
0x1bca   : > { %2299 = vrot.lane.b32.xlu1 %v2294_v6, %s3991_s21  ;;  %v3183_v40 = vpop.f32.mrb[1].mxu1 }
0x1bcb   : > { %v2664_v40 = vld [vmem:[%s5769_s11 + $0x20] sm:$0xff] }
0x1c3c   : > { %v2300_v45 = vpop.permute.xlu1 %2299 }
0x1c3d   : > { %v2302_v46 = vsel %vm72_vm3, %v2294_v6, %v2300_v45  ;;  %v2663_v6 = vld [vmem:[%s5769_s11 + $0x18] sm:$0xff] }
0x1c3e   : > { %v2307_v47 = vadd.f32 %v2303_v41, %v2302_v46  ;;  %v2308_v11 = vadd.f32 %v2304_v42, %v2302_v46  ;;  %v2309_v2 = vadd.f32 %v2305_v43, %v2302_v46  ;;  %v2310_v49 = vadd.f32 %v2306_v44, %v2302_v46  ;;  %v2665_v41 = vld [vmem:[%s5769_s11 + $0x28] sm:$0xff]  ;;  %v2666_v43 = vld [vmem:[%s5769_s11 + $0x30] sm:$0xff]  ;;  %v2667_v44 = vld [vmem:[%s5769_s11 + $0x38] sm:$0xff] }
0x1c3f   : > { %v3728_v39 = vpack.c.bf16 %v2663_v6, %v2662_v38  ;;  %v3731_v42 = vpack.c.bf16 %v2665_v41, %v2664_v40  ;;  %v3734_v45 = vpack.c.bf16 %v2667_v44, %v2666_v43  ;;  %v2668_v46 = vld [vmem:[%s5769_s11 + $0x40] sm:$0xff] }
0x1c40   : > { %3928 = vtanh.f32 %v2307_v47  ;;  %v2669_v47 = vld [vmem:[%s5769_s11 + $0x48] sm:$0xff] }
0x1c41   : > { %3930 = vtanh.f32 %v2308_v11  ;;  %v3737_v11 = vpack.c.bf16 %v2669_v47, %v2668_v46 }
0x1c42   : > { %3932 = vtanh.f32 %v2309_v2  ;;  %v2670_v2 = vld [vmem:[%s5769_s11 + $0x50] sm:$0xff] }
0x1c43   : > { %3934 = vtanh.f32 %v2310_v49  ;;  %v2671_v49 = vld [vmem:[%s5769_s11 + $0x58] sm:$0xff] }
0x1c4a   : > { %v3929_v50 = vpop.eup %3928 }
0x1c4b   : > { %v3931_v26 = vpop.eup %3930 }
0x1c4c   : > { %v3933_v51 = vpop.eup %3932  ;;  %2443 = vmatprep.mubr.f32.mxu1 %v3931_v26 }
0x1c4d   : > { %v3935_v52 = vpop.eup %3934  ;;  %2444 = vmatmul.mubr.f32.vlgmr.msra.gmra.mrb[2].mxu1 %v3929_v50  ;;  %v3740_v50 = vpack.c.bf16 %v2671_v49, %v2670_v2 }
0x1c4e   : > { %2513 = vmatprep.mubr.f32.mxu0 %v3935_v52  ;;  %3208 = vmatprep.mubr.msk.f32.mxu1 %vm3993_vm9, %v3994_v13 }
0x1c4f   : > { %2514 = vmatmul.mubr.f32.vlgmr.msra.gmra.mrb[2].mxu0 %v3933_v51  ;;  %3726 = vmatpush3.bf16.msra.mxu1 %v3725_v30 }
0x1c50   : > { %3219 = vmatprep.mubr.msk.f32.mxu0 %vm3993_vm9, %v3994_v13  ;;  %3727 = vmatprep.subr.bf16.mxu1 %v3992_v5 }
0x1c53   : > { %3729 = vmatpush3.bf16.msra.mxu1 %v3728_v39 }
0x1c54   : > { %3730 = vmatprep.subr.bf16.mxu1 %v3992_v5 }
0x1c57   : > { %3732 = vmatpush3.bf16.msra.mxu1 %v3731_v42 }
0x1c58   : > { %3733 = vmatprep.subr.bf16.mxu1 %v3992_v5 }
0x1c5b   : > { %3735 = vmatpush3.bf16.msra.mxu1 %v3734_v45 }
0x1c5c   : > { %3736 = vmatprep.subr.bf16.mxu1 %v3992_v5 }
0x1c5f   : > { %3738 = vmatpush3.bf16.msra.mxu1 %v3737_v11 }
0x1c60   : > { %3739 = vmatprep.subr.bf16.mxu1 %v3992_v5 }
0x1c63   : > { %3741 = vmatpush3.bf16.msra.mxu1 %v3740_v50 }
0x1d20   : > { %v3044_v53 = vpop.f32.mrb[2].mxu1 }
0x1d21   : > { %v3045_v54 = vpop.f32.mrb[3].mxu1 }
0x1d22   : > { %v3079_v7 = vpop.f32.mrb[2].mxu0  ;;  %v3046_v55 = vadd.f32 %v3045_v54, %v3044_v53 }
0x1d23   : > { %v3080_v15 = vpop.f32.mrb[3].mxu0 }
0x1d24   : > { %v3081_v14 = vadd.f32 %v3080_v15, %v3079_v7 }
0x1d26   : > { %v2516_v16 = vadd.f32 %v3081_v14, %v3046_v55 }
0x1d28   : > { %v2521_v24 = vsel %vm2520_vm11, -1e+30, %v2516_v16 }
0x1d29   : > { %v2523_v57 = vsel %vm2522_vm12, %v2521_v24, -inf }
0x1d2a   : > { %2524 = vmax.xlane.f32.xlu0 %v2523_v57 }
0x1db7   : > { %v2525_v58 = vpop.xlane.xlu0 %2524 }
0x1db8   : > { %v2526_v59 = vsub.f32 %v2521_v24, %v2525_v58 }
0x1dba   : > { %v2527_v13 = vmul.f32 1.442695, %v2526_v59 }
0x1dbc   : > { %3936 = vpow2.f32 %v2527_v13 }
0x1dc6   : > { %v3937_v60 = vpop.eup %3936 }
0x1dc7   : > { %v2529_v61 = vsel %vm2522_vm12, %v3937_v60, 0.0 }
0x1dc8   : > { %2530 = vadd.xlane.f32.xlu1 %v2529_v61 }
0x1e55   : > { %v2531_v0 = vpop.xlane.xlu1 %2530 }
0x1e56   : > { %3938 = vrcp.f32 %v2531_v0 }
0x1e60   : > { %v3939_v3 = vpop.eup %3938 }
0x1e61   : > { %v5625_v4 = vmul.f32 %v3939_v3, %v3937_v60  ;;  %v5691_v3 = vld [vmem:[%s2603_s24] sm:$0xff] }
0x1e63   : > { %2560 = vperm.xlu1 %3912, %v5625_v4   ;;  %2543 = vperm.xlu0 %3911, %v5625_v4  }
0x1e67   : > { %3913 = vset.pattern.permute.xlu1 %v3998_v8  ;;  %3918 = vset.pattern.permute.xlu0 %v3999_v9  ;;  %v2963_v8 = vld [vmem:[%s5773_s15] ss:$0 sm:$0xff] }
0x1e68   : > { %2577 = vperm.xlu1 %3913, %v5625_v4   ;;  %2588 = vperm.xlu0 %3918, %v5625_v4  }
0x1e6c   : > { %3914 = vset.pattern.permute.xlu1 %v4000_v12  ;;  %3919 = vset.pattern.permute.xlu0 %v4000_v12  ;;  %v2751_v12 = vld [vmem:[%s5770_s12] sm:$0xff] }
0x1e6d   : > { %2594 = vperm.xlu1 %3914, %v5625_v4  }
0x1e71   : > { %3915 = vset.pattern.permute.xlu1 %v4001_v17  ;;  %v2752_v17 = vld [vmem:[%s5770_s12 + $0x8] sm:$0xff] }
0x1e72   : > { %2537 = vperm.xlu1 %3915, %v5625_v4  }
0x1e76   : > { %3916 = vset.pattern.permute.xlu1 %v4002_v18  ;;  %v3743_v18 = vpack.c.bf16 %v2752_v17, %v2751_v12 }
0x1e77   : > { %2554 = vperm.xlu1 %3916, %v5625_v4  }
0x1e78   : > { %3744 = vmatpush3.bf16.msra.mxu0 %v3743_v18  ;;  %v4006_v18 = vmov (%p2090_p0), 0  }
0x1e79   : > { %3745 = vmatprep.subr.bf16.mxu0 %v3992_v5  ;;  %v2968_v5 = vld [vmem:[%s5773_s15 + $0x4] ss:$0 sm:$0xff]  ;;  %3952 = vset.pattern.permute.xlu0 (%p2090_p0), %v4006_v18 }
0x1e7b   : > { %3917 = vset.pattern.permute.xlu1 %v4003_v19 }
0x1e7c   : > { %2571 = vperm.xlu1 %3917, %v5625_v4  }
0x1ee2   : > { %v2561_v28 = vpop.permute.xlu1 %2560  ;;  %v2544_v29 = vpop.permute.xlu0 %2543 }
0x1ee3   : > { %v2546_v31 = vmul.f32 %v2544_v29, %v2534_v23  ;;  %v2563_v25 = vmul.f32 %v2561_v28, %v2552_v48  ;;  %v2753_v28 = vld [vmem:[%s5770_s12 + $0x10] sm:$0xff]  ;;  %v2754_v29 = vld [vmem:[%s5770_s12 + $0x18] sm:$0xff] }
0x1ee5   : > { %2548 = vrot.lane.b32.xlu1 %v2546_v31, %s3991_s21  ;;  %v3746_v31 = vpack.c.bf16 %v2754_v29, %v2753_v28 }
0x1ee7   : > { %v2578_v27 = vpop.permute.xlu1 %2577  ;;  %v2589_v24 = vpop.permute.xlu0 %2588  ;;  %3747 = vmatpush3.bf16.msra.mxu0 %v3746_v31 }
0x1ee8   : > { %v2580_v20 = vmul.f32 %v2578_v27, %v2569_v22  ;;  %v2591_v59 = vmul.f32 %v2589_v24, %v2586_v32 }
0x1ee9   : > { %2565 = vrot.lane.b32.xlu1 %v2563_v25, %s3991_s21 }
0x1eec   : > { %v2595_v33 = vpop.permute.xlu1 %2594 }
0x1eed   : > { %v2597_v34 = vmul.f32 %v2595_v33, %v2586_v32  ;;  %2582 = vrot.lane.b32.xlu1 %v2580_v20, %s3991_s21  ;;  %v2970_v20 = vld [vmem:[%s5773_s15 + $0x5] ss:$0 sm:$0xff]  ;;  %v2964_v32 = vld [vmem:[%s5773_s15 + $0x1] ss:$0 sm:$0xff] }
0x1eee   : > { %v2619_v38 = vmul.f32 %v2964_v32, %v5416_v10 }
0x1eef   : > { %2599 = vrot.lane.b32.xlu0 %v2597_v34, %s3991_s21  ;;  %v2841_v34 = vld [vmem:[%s2840_s23] sm:$0xff] }
0x1ef0   : > { %v2620_v39 = vsel %vm72_vm3, %v2619_v38, 0.0 }
0x1ef1   : > { %v2538_v26 = vpop.permute.xlu1 %2537 }
0x1ef2   : > { %v2540_v53 = vmul.f32 %v2538_v26, %v2534_v23  ;;  %v2966_v26 = vld [vmem:[%s5773_s15 + $0x3] ss:$0 sm:$0xff] }
0x1ef3   : > { %2630 = vrot.lane.b32.xlu0 %v2965_v35, %s3991_s21 }
0x1ef6   : > { %v2555_v51 = vpop.permute.xlu1 %2554 }
0x1ef7   : > { %v2557_v7 = vmul.f32 %v2555_v51, %v2552_v48 }
0x1efb   : > { %v2572_v52 = vpop.permute.xlu1 %2571 }
0x1efc   : > { %v2574_v14 = vmul.f32 %v2572_v52, %v2569_v22 }
0x1f57   : > { %v2549_v54 = vpop.permute.xlu1 %2548 }
0x1f58   : > { %v2551_v55 = vadd.f32 %v2549_v54, %v2540_v53 }
0x1f5a   : > { %v2558_v56 = vadd.f32 %v2557_v7, %v2551_v55 }
0x1f5b   : > { %v2566_v15 = vpop.permute.xlu1 %2565 }
0x1f5c   : > { %v2568_v16 = vadd.f32 %v2566_v15, %v2558_v56 }
0x1f5e   : > { %v2575_v57 = vadd.f32 %v2574_v14, %v2568_v16 }
0x1f5f   : > { %v2583_v58 = vpop.permute.xlu1 %2582 }
0x1f60   : > { %v2585_v13 = vadd.f32 %v2583_v58, %v2575_v57 }
0x1f61   : > { %v2600_v60 = vpop.permute.xlu0 %2599 }
0x1f62   : > { %v2592_v61 = vadd.f32 %v2591_v59, %v2585_v13 }
0x1f64   : > { %v2602_v62 = vadd.f32 %v2600_v60, %v2592_v61 }
0x1f65   : > { %v2631_v63 = vpop.permute.xlu0 %2630 }
0x1f66   : > { %v2633_v0 = vmul.f32 %v2631_v63, %v5321_v1  ;;  %2656 = vrot.lane.b32.xlu1 %v2602_v62, %s3995_s27  ;;  %v2610_v9 = vmul.f32 %v2963_v8, %v2602_v62 }
0x1f68   : > { %2635 = vrot.lane.b32.xlu0 %v2633_v0, %s3991_s21  ;;  %v2611_v1 = vsel %vm72_vm3, %v2610_v9, 0.0 }
0x1f6c   : > { %2853 = vrot.lane.b32.xlu0 %v5691_v3, %s4004_s26 }
0x1f8b   : > { %2612 = vadd.xlane.f32.xlu0 %v2611_v1  ;;  %v2862_v1 = vld [vmem:[#allocation5] sm:$0xff] }
0x1fd8   : > { %v2657_v19 = vpop.permute.xlu1 %2656 }
0x1fd9   : > { %v2659_v23 = vsel %vm201_vm2, %v5412_v21, %v2657_v19 }
0x1fda   : > { %3209 = vmatmul.mubr.msk.f32.vlgmr.msra.gmra.mrb[4].mxu1 %vm2114_vm10, %v2659_v23  ;;  %v2636_v22 = vpop.permute.xlu0 %2635 }
0x1fdb   : > { %v2638_v41 = vsel %vm72_vm3, %v2636_v22, 0.0 }
0x1fde   : > { %v2854_v35 = vpop.permute.xlu0 %2853 }
0x1fdf   : > { %v2856_v6 = vmul.f32 %v2854_v35, %v5625_v4 }
0x1fe1   : > { %v2857_v40 = vsel %vm2522_vm12, %v2856_v6, 0.0 }
0x2018   : > { %v2613_v42 = vpop.xlane.xlu0 %2612 }
0x20ad   : > { %v2746_v48 = vpop.f32.mrb[4].mxu1 }
0x20ae   : > { %v2747_v25 = vadd.f32 %v2968_v5, %v2746_v48  ;;  %v3210_v27 = vpop.f32.mrb[5].mxu1 }
0x20b0   : > { %v2750_v21 = vmax.f32 %v2747_v25, 0.0 }
0x20b2   : > { %3220 = vmatmul.mubr.msk.f32.vlgmr.msra.gmra.mrb[4].mxu0 %vm201_vm2, %v2750_v21 }
0x2185   : > { %v2829_v33 = vpop.f32.mrb[4].mxu0 }
0x2186   : > { %v2830_v36 = vadd.f32 %v2970_v20, %v2829_v33  ;;  %v3221_v37 = vpop.f32.mrb[5].mxu0 }
0x2188   : > { %2833 = vmax.xlane.f32.xlu1 %v2830_v36  ;;  %v2842_v30 = vmul.f32 %v2841_v34, %v2830_v36 }
0x218a   : > { %2843 = vadd.xlane.f32.xlu0 %v2842_v30 }
0x218c   : > { %2621 = vadd.xlane.f32.xlu1 %v2620_v39 }
0x218e   : > { %2858 = vadd.xlane.f32.xlu0 %v2857_v40 }
0x2190   : > { %2639 = vadd.xlane.f32.xlu1 %v2638_v41 }
0x21a4   : > { %2873 = vrot.lane.b32.xlu0 %v2602_v62, %s3991_s21  ;;  %s4005_s21 = smov 127  }
0x2215   : > { %v2834_v43 = vpop.xlane.xlu1 %2833 }
0x2216   : > { %v2835_v44 = vsub.f32 %v2830_v36, %v2834_v43 }
0x2217   : > { %v2844_v45 = vpop.xlane.xlu0 %2843 }
0x2218   : > { %v2836_v46 = vmul.f32 1.442695, %v2835_v44  ;;  %v2845_v47 = vsub.f32 %v2844_v45, %v2834_v43 }
0x2219   : > { %v2622_v11 = vpop.xlane.xlu1 %2621 }
0x221a   : > { %3940 = vpow2.f32 %v2836_v46  ;;  %v2623_v2 = vadd.f32 %v2622_v11, %v2613_v42  ;;  %v2846_v56 = vmul.f32 1.442695, %v2845_v47 }
0x221b   : > { %v2859_v4 = vpop.xlane.xlu0 %2858 }
0x221d   : > { %v2640_v49 = vpop.xlane.xlu1 %2639 }
0x221e   : > { %v2641_v50 = vadd.f32 %v2640_v49, %v2623_v2 }
0x221f   : > { %v2874_v51 = vpop.permute.xlu0 %2873 }
0x2220   : > { %v2642_v52 = vadd.f32 %v2641_v50, %v5691_v3  ;;  %v2876_v53 = vsel %vm72_vm3, %v5416_v10, %v2874_v51 }
0x2221   : > { %2877 = vst [vmem:[#allocation4] sm:$0xff] %v2876_v53 }
0x2222   : > { %v2648_v54 = vadd.f32 %v2966_v26, %v2642_v52 }
0x2224   : > { %v3941_v7 = vpop.eup %3940  ;;  %v2967_v55 = vmul.f32 -1.442695, %v2648_v54 }
0x2225   : > { %2838 = vadd.xlane.f32.xlu1 %v3941_v7 }
0x2226   : > { %3942 = vpow2.f32 %v2967_v55 }
0x2227   : > { %3944 = vpow2.f32 %v2846_v56 }
0x2230   : > { %v3943_v15 = vpop.eup %3942 }
0x2231   : > { %v2652_v14 = vadd.f32 1.0, %v3943_v15  ;;  %v3945_v16 = vpop.eup %3944 }
0x2233   : > { %3946 = vrcp.f32 %v2652_v14 }
0x2236   : > { %2867 = vrot.lane.b32.xlu1 %v5691_v3, %s4005_s21 }
0x223d   : > { %v3947_v24 = vpop.eup %3946 }
0x223e   : > { %v2848_v57 = vmul.f32 %v3947_v24, %v3945_v16  ;;  %v2851_v58 = vsub.f32 1.0, %v3947_v24 }
0x2240   : > { %v2860_v59 = vmul.f32 %v2859_v4, %v2851_v58 }
0x22b2   : > { %v2839_v10 = vpop.xlane.xlu1 %2838 }
0x22b3   : > { %3948 = vrcp.f32 %v2839_v10 }
0x22b6   : > { %v2868_v8 = vpop.permute.xlu1 %2867 }
0x22bd   : > { %v3949_v13 = vpop.eup %3948 }
0x22be   : > { %v2850_v60 = vmul.f32 %v3949_v13, %v2848_v57 }
0x22c0   : > { %v2861_v61 = vadd.f32 %v2860_v59, %v2850_v60 }
0x22c2   : > { %v2863_v62 = vadd.f32 1e-12, %v2861_v61 }
0x22c4   : > { %3950 = vlog2.f32 %v2863_v62 }
0x22ce   : > { %v3951_v63 = vpop.eup %3950 }
0x22cf   : > { %v2865_v0 = vmul.f32 0.6931472, %v3951_v63 }
0x22d1   : > { %v2866_v9 = vsub.f32 0.0, %v2865_v0  ;;  %2092 = sbr.rel (!%p2090_p0) target bundleno = 6077 (0x17bd), region = 101 }
0x22d3   : > { %v2870_v12 = vmul.f32 %v2868_v8, %v2866_v9 }
0x22d5   : > { %v2871_v17 = vadd.f32 %v2870_v12, %v2862_v1 }
0x22d7   : > { %2872 = vst.msk [vmem:[#allocation5] sm:$0xff] %vm2086_vm0, %v2871_v17 }
0x22de   :  { %v2878_v3 = vld [vmem:[#allocation5] sm:$0xff] }
0x22df   :  { %v2879_v19 = vsel %vm2086_vm0, %v2878_v3, 0.0 }
0x22e0   :  { %v2880_v23 = vrot.slane %v2879_v19, 4 }
0x22e2   :  { %v2881_v28 = vadd.f32 %v2880_v23, %v2879_v19 }
0x22e4   :  { %v2882_v29 = vrot.slane %v2881_v28, 2 }
0x22e6   :  { %v2883_v31 = vadd.f32 %v2882_v29, %v2881_v28 }
0x22e8   :  { %v2884_v5 = vrot.slane %v2883_v31, 1 }
0x22ea   :  { %v2885_v48 = vadd.f32 %v2884_v5, %v2883_v31 }
0x22ec   :  { %v2886_v25 = vmul.f32 0.5, %v2885_v48 }
0x22ee   :  { %2889 = vperm.xlu0 %3952, %v2886_v25  }
0x236d   :  { %v2890_v27 = vpop.permute.xlu0 %2889 }
0x236e   :  { %2892 = vst [vmem:[#allocation6] sm:$0x1] %v2890_v27 }
0x236f   :  { %3964 = shalt.err (!%p3961_p5)
}
0x2370   :  { %s3965_s9 = scalar_lea.hbm %s5774_s16, 16 }
0x2371   :  { %p3966_p6 = scmp.ne.s32.totalorder %s5774_s16, %s3965_s9  ;;  %p3969_p7 = scmp.lt.u32.totalorder %s3965_s9, %s5774_s16 }
0x2373   :  { %p3971_p8 = pnand %p3969_p7, %p3966_p6 }
0x2375   :  { %3974 = shalt.err (!%p3971_p8)
}
0x2376   :  { %2902 = dma.vmem_to_hbm [thread:$0]  %s2900_s0, 16, %s5774_s16, [#allocation7]  }
0x2377   :  { %3979 = dma.done.wait [#allocation7], 16  }
0x2378   :  { %3980 = vsyncadd [#allocation7], 4294967280 }
0x2379   :  { %2906 = vsyncpa [#allocation7], 1 }

</bundles_post_ra>
